<compile_context>
chip_gen: v7x
topology: tpu7x:2x2x1
jax: 0.10.0
libtpu: 0.0.40
codegen_flags: <defaults>
</compile_context>

<pallas_src>
import functools

import jax
import jax.numpy as jnp
from jax.experimental import pallas as pl
from jax.experimental.pallas import tpu as pltpu

EPS = 1e-5
VMEM_LIMIT = 32 * 1024 * 1024          # stay well under v7x's 64 MiB physical VMEM
_FUSED_VMEM_BUDGET = 20 * 1024 * 1024  # static gate for the single-kernel path
_FUSED_MAX_UNROLL_ROWS = 256           # cap on statically unrolled output rows


def _largest_divisor(n, cap):
    cap = min(cap, n)
    for d in range(cap, 0, -1):
        if n % d == 0:
            return d
    return n


def _pad_lanes(c):
    return ((c + 127) // 128) * 128


def _interp_matrix(in_size, out_size):
    """Dense bilinear (align_corners=True) interpolation matrix (out, in)."""
    if out_size == 1:
        src = jnp.zeros((1,), jnp.float32)
    else:
        src = jnp.arange(out_size, dtype=jnp.float32) * (
            float(in_size - 1) / float(out_size - 1))
    i0 = jnp.clip(jnp.floor(src), 0, in_size - 1).astype(jnp.int32)
    i1 = jnp.clip(i0 + 1, 0, in_size - 1)
    w1 = src - i0.astype(jnp.float32)
    w0 = 1.0 - w1
    eye = jnp.eye(in_size, dtype=jnp.float32)
    return w0[:, None] * eye[i0] + w1[:, None] * eye[i1]


# ---------------------------------------------------------------------------
# Shared kernel body: conv3x3(pad=1)+BN+ReLU then conv1x1+BN on tH rows (NHWC)
# ---------------------------------------------------------------------------
def _conv_bn_body(xp_ref, w3_ref, s3_ref, b3_ref, w1_ref, b1_ref,
                  row0, tH, has_3x3, mxu_dtype):
    """Returns ((tH*W, Cout) float32 pre-activation, W)."""
    Hp, Wp, Cin = xp_ref.shape
    if has_3x3:
        W = Wp - 2
        Cmid = w3_ref.shape[-1]
        # 3x3 conv: 9 shifted (tH*W, Cin) x (Cin, Cmid) MXU matmuls, f32 acc.
        acc = jnp.zeros((tH * W, Cmid), jnp.float32)
        for ky in range(3):
            for kx in range(3):
                xs = xp_ref[pl.ds(row0 + ky, tH), pl.ds(kx, W), :]
                acc = acc + jnp.dot(
                    xs.reshape(tH * W, Cin).astype(mxu_dtype),
                    w3_ref[ky * 3 + kx].astype(mxu_dtype),
                    preferred_element_type=jnp.float32)
        y = jnp.maximum(acc * s3_ref[...] + b3_ref[...], 0.0)      # (tH*W, Cmid)
    else:
        W = Wp
        y = xp_ref[pl.ds(row0, tH), :, :].reshape(tH * W, Cin)
    # fused 1x1 conv + BN (pre-activation; ReLU applied by the caller)
    z = jnp.dot(y.astype(mxu_dtype), w1_ref[...].astype(mxu_dtype),
                preferred_element_type=jnp.float32) + b1_ref[...]
    return z, W


# ---------------------------------------------------------------------------
# Kernel A (single launch): conv3x3+BN+ReLU + conv1x1+BN + bilinear up + ReLU
# ---------------------------------------------------------------------------
def _conv_block_upsample_kernel(xp_ref, w3_ref, s3_ref, b3_ref, w1_ref,
                                b1_ref, aw_ref, o_ref, *, has_3x3, hout,
                                mxu_dtype):
    # xp_ref: (Hp, Wp, Cin) padded (has_3x3) / raw image of this batch element
    # aw_ref: (Wout, Win) column interpolation matrix
    # o_ref:  (hout, Wout, Cout)
    Hp = xp_ref.shape[0]
    H = Hp - 2 if has_3x3 else Hp
    z, W = _conv_bn_body(xp_ref, w3_ref, s3_ref, b3_ref, w1_ref, b1_ref,
                         0, H, has_3x3, mxu_dtype)
    Cout = w1_ref.shape[-1]
    z3 = z.reshape(H, W, Cout)
    aw = aw_ref[...].astype(mxu_dtype)                       # (Wout, W)
    denom = max(hout - 1, 1)
    for oy in range(hout):                                   # static, unrolled
        # align_corners=True row mapping -> compile-time constants.
        num = oy * (H - 1)
        r0 = num // denom
        r1 = min(r0 + 1, H - 1)
        frac = (num - r0 * denom) / float(denom)
        if frac == 0.0:
            row = z3[r0]                                     # (W, Cout)
        else:
            row = (1.0 - frac) * z3[r0] + frac * z3[r1]
        up = jnp.dot(aw, row.astype(mxu_dtype),
                     preferred_element_type=jnp.float32)     # (Wout, Cout)
        o_ref[oy] = jnp.maximum(up, 0.0)


def fused_conv_bn_upsample(x, w3, s3, b3, w1s, b1, hout, wout, *,
                           has_3x3, mxu_dtype=jnp.float32):
    """x: (B,H,W,Cin) f32 -> (B,hout,wout,Cout) f32 (whole module, one launch)."""
    B, H, W, Cin = x.shape
    Cmid = w3.shape[-1]
    C1in, Cout = w1s.shape
    xp = jnp.pad(x, ((0, 0), (1, 1), (1, 1), (0, 0))) if has_3x3 else x
    Hp, Wp = xp.shape[1], xp.shape[2]
    aw = _interp_matrix(W, wout)                              # (wout, W)
    kernel = functools.partial(_conv_block_upsample_kernel, has_3x3=has_3x3,
                               hout=hout, mxu_dtype=mxu_dtype)
    return pl.pallas_call(
        kernel,
        out_shape=jax.ShapeDtypeStruct((B, hout, wout, Cout), jnp.float32),
        grid_spec=pltpu.PrefetchScalarGridSpec(
            num_scalar_prefetch=0,
            grid=(B,),
            in_specs=[
                pl.BlockSpec((None, Hp, Wp, Cin), lambda b: (b, 0, 0, 0)),
                pl.BlockSpec((9, Cin, Cmid), lambda b: (0, 0, 0)),
                pl.BlockSpec((1, Cmid), lambda b: (0, 0)),
                pl.BlockSpec((1, Cmid), lambda b: (0, 0)),
                pl.BlockSpec((C1in, Cout), lambda b: (0, 0)),
                pl.BlockSpec((1, Cout), lambda b: (0, 0)),
                pl.BlockSpec((wout, W), lambda b: (0, 0)),
            ],
            out_specs=pl.BlockSpec((None, hout, wout, Cout),
                                   lambda b: (b, 0, 0, 0)),
        ),
        compiler_params=pltpu.CompilerParams(
            dimension_semantics=("parallel",),
            vmem_limit_bytes=VMEM_LIMIT),
    )(xp,
      w3.reshape(9, Cin, Cmid).astype(jnp.float32),
      s3.reshape(1, Cmid).astype(jnp.float32),
      b3.reshape(1, Cmid).astype(jnp.float32),
      w1s.astype(jnp.float32),
      b1.reshape(1, Cout).astype(jnp.float32),
      aw)


def _fused_upsample_fits(Hp, Wp, Cin, H, W, Cmid, Cout, hout, wout):
    """Static check that the single-kernel path fits VMEM / unroll limits."""
    if hout > _FUSED_MAX_UNROLL_ROWS:
        return False
    est = 4 * (2 * Hp * Wp * _pad_lanes(Cin)                 # input block (2-buf)
               + H * W * (_pad_lanes(Cmid) + _pad_lanes(Cout))   # intermediates
               + 2 * hout * wout * _pad_lanes(Cout)          # output block (2-buf)
               + wout * _pad_lanes(W)                        # column interp matrix
               + 9 * Cin * _pad_lanes(Cmid)
               + Cmid * _pad_lanes(Cout))
    return est <= _FUSED_VMEM_BUDGET


# ---------------------------------------------------------------------------
# Kernel B1 (fallback / no-upsample): conv3x3+BN+ReLU + conv1x1+BN, H-tiled
# ---------------------------------------------------------------------------
def _conv_block_kernel(xp_ref, w3_ref, s3_ref, b3_ref, w1_ref, b1_ref, o_ref,
                       *, tH, has_3x3, relu_out, mxu_dtype):
    h = pl.program_id(1)
    z, W = _conv_bn_body(xp_ref, w3_ref, s3_ref, b3_ref, w1_ref, b1_ref,
                         h * tH, tH, has_3x3, mxu_dtype)
    if relu_out:
        z = jnp.maximum(z, 0.0)
    Cout = w1_ref.shape[-1]
    o_ref[...] = z.reshape(tH, W, Cout)


def fused_conv_bn(x, w3, s3, b3, w1s, b1, *, has_3x3, relu_out,
                  tile_h=32, mxu_dtype=jnp.float32):
    """x: (B,H,W,Cin) f32 -> (B,H,W,Cout) f32."""
    B, H, W, Cin = x.shape
    Cmid = w3.shape[-1]
    C1in, Cout = w1s.shape
    tH = _largest_divisor(H, tile_h)
    nH = H // tH
    xp = jnp.pad(x, ((0, 0), (1, 1), (1, 1), (0, 0))) if has_3x3 else x
    Hp, Wp = xp.shape[1], xp.shape[2]
    kernel = functools.partial(_conv_block_kernel, tH=tH, has_3x3=has_3x3,
                               relu_out=relu_out, mxu_dtype=mxu_dtype)
    return pl.pallas_call(
        kernel,
        out_shape=jax.ShapeDtypeStruct((B, H, W, Cout), jnp.float32),
        grid_spec=pltpu.PrefetchScalarGridSpec(
            num_scalar_prefetch=0,
            grid=(B, nH),
            in_specs=[
                # whole (padded) image of this batch element; block index is
                # constant in h so it is fetched once per batch element.
                pl.BlockSpec((None, Hp, Wp, Cin), lambda b, h: (b, 0, 0, 0)),
                pl.BlockSpec((9, Cin, Cmid), lambda b, h: (0, 0, 0)),
                pl.BlockSpec((1, Cmid), lambda b, h: (0, 0)),
                pl.BlockSpec((1, Cmid), lambda b, h: (0, 0)),
                pl.BlockSpec((C1in, Cout), lambda b, h: (0, 0)),
                pl.BlockSpec((1, Cout), lambda b, h: (0, 0)),
            ],
            out_specs=pl.BlockSpec((None, tH, W, Cout),
                                   lambda b, h: (b, h, 0, 0)),
        ),
        compiler_params=pltpu.CompilerParams(
            dimension_semantics=("parallel", "arbitrary"),
            vmem_limit_bytes=VMEM_LIMIT),
    )(xp,
      w3.reshape(9, Cin, Cmid).astype(jnp.float32),
      s3.reshape(1, Cmid).astype(jnp.float32),
      b3.reshape(1, Cmid).astype(jnp.float32),
      w1s.astype(jnp.float32),
      b1.reshape(1, Cout).astype(jnp.float32))


# ---------------------------------------------------------------------------
# Kernel B2 (fallback): bilinear upsample (align_corners=True) + ReLU, tiled
# ---------------------------------------------------------------------------
def _upsample_relu_kernel(z_ref, aw_ref, o_ref, *, tHo, hout, mxu_dtype):
    # z_ref:  (Hin, Win, C) full per-batch pre-activation feature map
    # aw_ref: (Wout, Win) column interpolation matrix
    # o_ref:  (tHo, Wout, C)
    h = pl.program_id(1)
    hin = z_ref.shape[0]
    denom = max(hout - 1, 1)
    aw = aw_ref[...].astype(mxu_dtype)
    for t in range(tHo):                                  # static, unrolled
        oy = h * tHo + t
        # exact integer align_corners=True row mapping: src = oy*(hin-1)/(hout-1)
        num = oy * (hin - 1)
        r0 = num // denom
        r1 = jnp.minimum(r0 + 1, hin - 1)
        frac = (num - r0 * denom).astype(jnp.float32) * (1.0 / float(denom))
        row = (1.0 - frac) * z_ref[r0] + frac * z_ref[r1]          # (Win, C)
        up = jnp.dot(aw, row.astype(mxu_dtype),
                     preferred_element_type=jnp.float32)           # (Wout, C)
        o_ref[t] = jnp.maximum(up, 0.0)


def bilinear_upsample_relu(z, hout, wout, *, tile_h=16, mxu_dtype=jnp.float32):
    """z: (B,Hin,Win,C) -> ReLU(bilinear_resize(z, (hout,wout))), NHWC."""
    B, Hin, Win, C = z.shape
    tHo = _largest_divisor(hout, tile_h)
    nHo = hout // tHo
    aw = _interp_matrix(Win, wout)                                 # (wout, Win)
    kernel = functools.partial(_upsample_relu_kernel, tHo=tHo, hout=hout,
                               mxu_dtype=mxu_dtype)
    return pl.pallas_call(
        kernel,
        out_shape=jax.ShapeDtypeStruct((B, hout, wout, C), jnp.float32),
        grid_spec=pltpu.PrefetchScalarGridSpec(
            num_scalar_prefetch=0,
            grid=(B, nHo),
            in_specs=[
                pl.BlockSpec((None, Hin, Win, C), lambda b, h: (b, 0, 0, 0)),
                pl.BlockSpec((wout, Win), lambda b, h: (0, 0)),
            ],
            out_specs=pl.BlockSpec((None, tHo, wout, C),
                                   lambda b, h: (b, h, 0, 0)),
        ),
        compiler_params=pltpu.CompilerParams(
            dimension_semantics=("parallel", "arbitrary"),
            vmem_limit_bytes=VMEM_LIMIT),
    )(z, aw)


# ---------------------------------------------------------------------------
# Module glue
# ---------------------------------------------------------------------------
def _fuse_bn(p):
    a = p["gamma"] / jnp.sqrt(p["var"] + EPS)
    return a, p["beta"] - a * p["mean"]


@functools.partial(jax.jit,
                   static_argnames=("scale", "last", "mxu_dtype",
                                    "fuse_upsample"))
def conv_block_forward(x_nchw, params, *, scale=2, last=False,
                       mxu_dtype=jnp.float32, fuse_upsample=True):
    """Conv_block forward.  x_nchw: (B, in_planes, H, W) -> (B, 2*out_planes, sH, sW)."""
    x = jnp.transpose(x_nchw.astype(jnp.float32), (0, 2, 3, 1))    # NCHW->NHWC
    s3, b3 = _fuse_bn(params["bn3"])
    a1, b1 = _fuse_bn(params["bn1"])
    w1s = params["conv1"]["w"] * a1[None, :]          # BN scale folded into 1x1
    B, H, W, Cin = x.shape
    Cmid = params["conv3"]["w"].shape[-1]
    Cout = w1s.shape[-1]
    has_3x3 = not last
    upsampling = scale > 1

    if not upsampling:
        z = fused_conv_bn(x, params["conv3"]["w"], s3, b3, w1s, b1,
                          has_3x3=has_3x3, relu_out=True, mxu_dtype=mxu_dtype)
        return jnp.transpose(z, (0, 3, 1, 2))                      # NHWC->NCHW

    hout, wout = int(H * scale), int(W * scale)
    Hp, Wp = (H + 2, W + 2) if has_3x3 else (H, W)
    if fuse_upsample and _fused_upsample_fits(Hp, Wp, Cin, H, W, Cmid, Cout,
                                              hout, wout):
        # Single-launch fully fused path.
        z = fused_conv_bn_upsample(x, params["conv3"]["w"], s3, b3, w1s, b1,
                                   hout, wout, has_3x3=has_3x3,
                                   mxu_dtype=mxu_dtype)
    else:
        # Tiled two-kernel fallback for large spatial extents.
        z = fused_conv_bn(x, params["conv3"]["w"], s3, b3, w1s, b1,
                          has_3x3=has_3x3, relu_out=False, mxu_dtype=mxu_dtype)
        z = bilinear_upsample_relu(z, hout, wout, mxu_dtype=mxu_dtype)
    return jnp.transpose(z, (0, 3, 1, 2))                          # NHWC->NCHW


def init_conv_block_params(key, in_planes, out_planes):
    c2 = 2 * out_planes
    ks = jax.random.split(key, 4)

    def bn(k, n):
        k1, k2, k3, k4 = jax.random.split(k, 4)
        return {
            "gamma": 1.0 + 0.02 * jax.random.normal(k1, (n,), jnp.float32),
            "beta": 0.05 * jax.random.normal(k2, (n,), jnp.float32),
            "mean": 0.1 * jax.random.normal(k3, (n,), jnp.float32),
            "var": 1.0 + 0.1 * jax.random.uniform(k4, (n,), jnp.float32),
        }

    return {
        "conv3": {"w": 0.2 * jax.random.normal(
            ks[0], (3, 3, in_planes, in_planes), jnp.float32)},
        "bn3": bn(ks[1], in_planes),
        "conv1": {"w": 0.2 * jax.random.normal(
            ks[2], (in_planes, c2), jnp.float32)},
        "bn1": bn(ks[3], c2),
    }


def reference_forward(x_nchw, params, *, scale=2, last=False):
    """Pure-XLA reference in the exact PyTorch op order (conv1x1 after upsample)."""
    def bn(v, p):
        a = p["gamma"] / jnp.sqrt(p["var"] + EPS)
        return (v - p["mean"]) * a + p["beta"]

    x = jnp.transpose(x_nchw.astype(jnp.float32), (0, 2, 3, 1))
    if not last:
        y = jax.lax.conv_general_dilated(
            x, params["conv3"]["w"], window_strides=(1, 1), padding="SAME",
            dimension_numbers=("NHWC", "HWIO", "NHWC"))
        y = jnp.maximum(bn(y, params["bn3"]), 0.0)
    else:
        y = x
    if scale > 1:
        _, H, W, _ = y.shape
        ah = _interp_matrix(H, int(H * scale))
        aw = _interp_matrix(W, int(W * scale))
        y = jnp.einsum("oh,bhwc->bowc", ah, y)
        y = jnp.einsum("pw,bowc->bopc", aw, y)
    z = jnp.einsum("bhwc,co->bhwo", y, params["conv1"]["w"])
    z = jnp.maximum(bn(z, params["bn1"]), 0.0)
    return jnp.transpose(z, (0, 3, 1, 2))


if __name__ == "__main__":
    B, in_planes, H, W = 2, 4, 16, 16
    out_planes = 16                      # conv_1x1 outputs 2*out_planes = 32
    scale = 2

    key = jax.random.PRNGKey(0)
    kx, kp = jax.random.split(key)
    x = jax.random.normal(kx, (B, in_planes, H, W), jnp.float32)   # NCHW
    params = init_conv_block_params(kp, in_planes, out_planes)

    # Main path: single fully fused kernel.
    out = conv_block_forward(x, params, scale=scale, last=False)
    out = jax.block_until_ready(out)
    assert out.shape == (B, 2 * out_planes, H * scale, W * scale), out.shape
    assert bool(jnp.all(jnp.isfinite(out)))
    ref = reference_forward(x, params, scale=scale, last=False)
    err = float(jnp.max(jnp.abs(out - ref)))
    assert err < 2e-3, f"fused-path max abs error vs reference: {err}"

    # Two-kernel fallback path (exercised explicitly).
    out2 = conv_block_forward(x, params, scale=scale, last=False,
                              fuse_upsample=False)
    out2 = jax.block_until_ready(out2)
    err2 = float(jnp.max(jnp.abs(out2 - ref)))
    assert err2 < 2e-3, f"fallback-path max abs error vs reference: {err2}"

    # last=True branch (no 3x3 conv).
    out3 = conv_block_forward(x, params, scale=scale, last=True)
    out3 = jax.block_until_ready(out3)
    ref3 = reference_forward(x, params, scale=scale, last=True)
    err3 = float(jnp.max(jnp.abs(out3 - ref3)))
    assert err3 < 2e-3, f"last=True max abs error vs reference: {err3}"

    print("KERNEL_OK")
</pallas_src>

<mosaic_0001>
module attributes {stable_mosaic.version = 11 : i64} {
  func.func @_conv_block_upsample_kernel(%arg0: i32, %arg1: memref<1x18x18x4xf32, #tpu.memory_space<vmem>>, %arg2: memref<9x4x4xf32, #tpu.memory_space<vmem>>, %arg3: memref<1x4xf32, #tpu.memory_space<vmem>>, %arg4: memref<1x4xf32, #tpu.memory_space<vmem>>, %arg5: memref<4x32xf32, #tpu.memory_space<vmem>>, %arg6: memref<1x32xf32, #tpu.memory_space<vmem>>, %arg7: memref<32x16xf32, #tpu.memory_space<vmem>>, %arg8: memref<1x32x32x32xf32, #tpu.memory_space<vmem>>) attributes {dimension_semantics = [#tpu.dimension_semantics<parallel>], iteration_bounds = array<i64: 2>, scalar_prefetch = 0 : i64, scratch_operands = 0 : i64, tpu.core_type = #tpu.core_type<tc>, window_params = [{transform_indices = @transform_0, window_bounds = array<i64: 1, 18, 18, 4>}, {pipeline_mode = #tpu.pipeline_mode<synchronous>, transform_indices = @transform_1, window_bounds = array<i64: 9, 4, 4>}, {pipeline_mode = #tpu.pipeline_mode<synchronous>, transform_indices = @transform_2, window_bounds = array<i64: 1, 4>}, {pipeline_mode = #tpu.pipeline_mode<synchronous>, transform_indices = @transform_3, window_bounds = array<i64: 1, 4>}, {pipeline_mode = #tpu.pipeline_mode<synchronous>, transform_indices = @transform_4, window_bounds = array<i64: 4, 32>}, {pipeline_mode = #tpu.pipeline_mode<synchronous>, transform_indices = @transform_5, window_bounds = array<i64: 1, 32>}, {pipeline_mode = #tpu.pipeline_mode<synchronous>, transform_indices = @transform_6, window_bounds = array<i64: 32, 16>}, {transform_indices = @transform_7, window_bounds = array<i64: 1, 32, 32, 32>}]} {
    %cst = arith.constant 0.000000e+00 : f32
    %0 = vector.broadcast %cst : f32 to vector<256x4xf32>
    %c0 = arith.constant 0 : index
    %c0_0 = arith.constant 0 : index
    %c0_1 = arith.constant 0 : index
    %c0_2 = arith.constant 0 : index
    %1 = vector.load %arg1[%c0, %c0_0, %c0_1, %c0_2] : memref<1x18x18x4xf32, #tpu.memory_space<vmem>>, vector<1x16x16x4xf32>
    %2 = vector.shape_cast %1 : vector<1x16x16x4xf32> to vector<16x16x4xf32>
    %3 = vector.shape_cast %2 : vector<16x16x4xf32> to vector<256x4xf32>
    %c0_3 = arith.constant 0 : index
    %c0_4 = arith.constant 0 : index
    %c0_5 = arith.constant 0 : index
    %4 = vector.load %arg2[%c0_3, %c0_4, %c0_5] : memref<9x4x4xf32, #tpu.memory_space<vmem>>, vector<1x4x4xf32>
    %5 = vector.shape_cast %4 : vector<1x4x4xf32> to vector<4x4xf32>
    %cst_6 = arith.constant dense<0.000000e+00> : vector<256x4xf32>
    %6 = tpu.matmul %3, %5, %cst_6 {dimension_numbers = #tpu.dot_dimension_numbers<[1], [0], [0], [1], [0, 0, 1, 1], [], []>} : vector<256x4xf32>, vector<4x4xf32>, vector<256x4xf32> -> vector<256x4xf32>
    %7 = arith.addf %0, %6 : vector<256x4xf32>
    %c0_7 = arith.constant 0 : index
    %c0_8 = arith.constant 0 : index
    %c1 = arith.constant 1 : index
    %c0_9 = arith.constant 0 : index
    %8 = vector.load %arg1[%c0_7, %c0_8, %c1, %c0_9] : memref<1x18x18x4xf32, #tpu.memory_space<vmem>>, vector<1x16x16x4xf32>
    %9 = vector.shape_cast %8 : vector<1x16x16x4xf32> to vector<16x16x4xf32>
    %10 = vector.shape_cast %9 : vector<16x16x4xf32> to vector<256x4xf32>
    %c1_10 = arith.constant 1 : index
    %c0_11 = arith.constant 0 : index
    %c0_12 = arith.constant 0 : index
    %11 = vector.load %arg2[%c1_10, %c0_11, %c0_12] : memref<9x4x4xf32, #tpu.memory_space<vmem>>, vector<1x4x4xf32>
    %12 = vector.shape_cast %11 : vector<1x4x4xf32> to vector<4x4xf32>
    %cst_13 = arith.constant dense<0.000000e+00> : vector<256x4xf32>
    %13 = tpu.matmul %10, %12, %cst_13 {dimension_numbers = #tpu.dot_dimension_numbers<[1], [0], [0], [1], [0, 0, 1, 1], [], []>} : vector<256x4xf32>, vector<4x4xf32>, vector<256x4xf32> -> vector<256x4xf32>
    %14 = arith.addf %7, %13 : vector<256x4xf32>
    %c0_14 = arith.constant 0 : index
    %c0_15 = arith.constant 0 : index
    %c2 = arith.constant 2 : index
    %c0_16 = arith.constant 0 : index
    %15 = vector.load %arg1[%c0_14, %c0_15, %c2, %c0_16] : memref<1x18x18x4xf32, #tpu.memory_space<vmem>>, vector<1x16x16x4xf32>
    %16 = vector.shape_cast %15 : vector<1x16x16x4xf32> to vector<16x16x4xf32>
    %17 = vector.shape_cast %16 : vector<16x16x4xf32> to vector<256x4xf32>
    %c2_17 = arith.constant 2 : index
    %c0_18 = arith.constant 0 : index
    %c0_19 = arith.constant 0 : index
    %18 = vector.load %arg2[%c2_17, %c0_18, %c0_19] : memref<9x4x4xf32, #tpu.memory_space<vmem>>, vector<1x4x4xf32>
    %19 = vector.shape_cast %18 : vector<1x4x4xf32> to vector<4x4xf32>
    %cst_20 = arith.constant dense<0.000000e+00> : vector<256x4xf32>
    %20 = tpu.matmul %17, %19, %cst_20 {dimension_numbers = #tpu.dot_dimension_numbers<[1], [0], [0], [1], [0, 0, 1, 1], [], []>} : vector<256x4xf32>, vector<4x4xf32>, vector<256x4xf32> -> vector<256x4xf32>
    %21 = arith.addf %14, %20 : vector<256x4xf32>
    %c0_21 = arith.constant 0 : index
    %c1_22 = arith.constant 1 : index
    %c0_23 = arith.constant 0 : index
    %c0_24 = arith.constant 0 : index
    %22 = vector.load %arg1[%c0_21, %c1_22, %c0_23, %c0_24] : memref<1x18x18x4xf32, #tpu.memory_space<vmem>>, vector<1x16x16x4xf32>
    %23 = vector.shape_cast %22 : vector<1x16x16x4xf32> to vector<16x16x4xf32>
    %24 = vector.shape_cast %23 : vector<16x16x4xf32> to vector<256x4xf32>
    %c3 = arith.constant 3 : index
    %c0_25 = arith.constant 0 : index
    %c0_26 = arith.constant 0 : index
    %25 = vector.load %arg2[%c3, %c0_25, %c0_26] : memref<9x4x4xf32, #tpu.memory_space<vmem>>, vector<1x4x4xf32>
    %26 = vector.shape_cast %25 : vector<1x4x4xf32> to vector<4x4xf32>
    %cst_27 = arith.constant dense<0.000000e+00> : vector<256x4xf32>
    %27 = tpu.matmul %24, %26, %cst_27 {dimension_numbers = #tpu.dot_dimension_numbers<[1], [0], [0], [1], [0, 0, 1, 1], [], []>} : vector<256x4xf32>, vector<4x4xf32>, vector<256x4xf32> -> vector<256x4xf32>
    %28 = arith.addf %21, %27 : vector<256x4xf32>
    %c0_28 = arith.constant 0 : index
    %c1_29 = arith.constant 1 : index
    %c1_30 = arith.constant 1 : index
    %c0_31 = arith.constant 0 : index
    %29 = vector.load %arg1[%c0_28, %c1_29, %c1_30, %c0_31] : memref<1x18x18x4xf32, #tpu.memory_space<vmem>>, vector<1x16x16x4xf32>
    %30 = vector.shape_cast %29 : vector<1x16x16x4xf32> to vector<16x16x4xf32>
    %31 = vector.shape_cast %30 : vector<16x16x4xf32> to vector<256x4xf32>
    %c4 = arith.constant 4 : index
    %c0_32 = arith.constant 0 : index
    %c0_33 = arith.constant 0 : index
    %32 = vector.load %arg2[%c4, %c0_32, %c0_33] : memref<9x4x4xf32, #tpu.memory_space<vmem>>, vector<1x4x4xf32>
    %33 = vector.shape_cast %32 : vector<1x4x4xf32> to vector<4x4xf32>
    %cst_34 = arith.constant dense<0.000000e+00> : vector<256x4xf32>
    %34 = tpu.matmul %31, %33, %cst_34 {dimension_numbers = #tpu.dot_dimension_numbers<[1], [0], [0], [1], [0, 0, 1, 1], [], []>} : vector<256x4xf32>, vector<4x4xf32>, vector<256x4xf32> -> vector<256x4xf32>
    %35 = arith.addf %28, %34 : vector<256x4xf32>
    %c0_35 = arith.constant 0 : index
    %c1_36 = arith.constant 1 : index
    %c2_37 = arith.constant 2 : index
    %c0_38 = arith.constant 0 : index
    %36 = vector.load %arg1[%c0_35, %c1_36, %c2_37, %c0_38] : memref<1x18x18x4xf32, #tpu.memory_space<vmem>>, vector<1x16x16x4xf32>
    %37 = vector.shape_cast %36 : vector<1x16x16x4xf32> to vector<16x16x4xf32>
    %38 = vector.shape_cast %37 : vector<16x16x4xf32> to vector<256x4xf32>
    %c5 = arith.constant 5 : index
    %c0_39 = arith.constant 0 : index
    %c0_40 = arith.constant 0 : index
    %39 = vector.load %arg2[%c5, %c0_39, %c0_40] : memref<9x4x4xf32, #tpu.memory_space<vmem>>, vector<1x4x4xf32>
    %40 = vector.shape_cast %39 : vector<1x4x4xf32> to vector<4x4xf32>
    %cst_41 = arith.constant dense<0.000000e+00> : vector<256x4xf32>
    %41 = tpu.matmul %38, %40, %cst_41 {dimension_numbers = #tpu.dot_dimension_numbers<[1], [0], [0], [1], [0, 0, 1, 1], [], []>} : vector<256x4xf32>, vector<4x4xf32>, vector<256x4xf32> -> vector<256x4xf32>
    %42 = arith.addf %35, %41 : vector<256x4xf32>
    %c0_42 = arith.constant 0 : index
    %c2_43 = arith.constant 2 : index
    %c0_44 = arith.constant 0 : index
    %c0_45 = arith.constant 0 : index
    %43 = vector.load %arg1[%c0_42, %c2_43, %c0_44, %c0_45] : memref<1x18x18x4xf32, #tpu.memory_space<vmem>>, vector<1x16x16x4xf32>
    %44 = vector.shape_cast %43 : vector<1x16x16x4xf32> to vector<16x16x4xf32>
    %45 = vector.shape_cast %44 : vector<16x16x4xf32> to vector<256x4xf32>
    %c6 = arith.constant 6 : index
    %c0_46 = arith.constant 0 : index
    %c0_47 = arith.constant 0 : index
    %46 = vector.load %arg2[%c6, %c0_46, %c0_47] : memref<9x4x4xf32, #tpu.memory_space<vmem>>, vector<1x4x4xf32>
    %47 = vector.shape_cast %46 : vector<1x4x4xf32> to vector<4x4xf32>
    %cst_48 = arith.constant dense<0.000000e+00> : vector<256x4xf32>
    %48 = tpu.matmul %45, %47, %cst_48 {dimension_numbers = #tpu.dot_dimension_numbers<[1], [0], [0], [1], [0, 0, 1, 1], [], []>} : vector<256x4xf32>, vector<4x4xf32>, vector<256x4xf32> -> vector<256x4xf32>
    %49 = arith.addf %42, %48 : vector<256x4xf32>
    %c0_49 = arith.constant 0 : index
    %c2_50 = arith.constant 2 : index
    %c1_51 = arith.constant 1 : index
    %c0_52 = arith.constant 0 : index
    %50 = vector.load %arg1[%c0_49, %c2_50, %c1_51, %c0_52] : memref<1x18x18x4xf32, #tpu.memory_space<vmem>>, vector<1x16x16x4xf32>
    %51 = vector.shape_cast %50 : vector<1x16x16x4xf32> to vector<16x16x4xf32>
    %52 = vector.shape_cast %51 : vector<16x16x4xf32> to vector<256x4xf32>
    %c7 = arith.constant 7 : index
    %c0_53 = arith.constant 0 : index
    %c0_54 = arith.constant 0 : index
    %53 = vector.load %arg2[%c7, %c0_53, %c0_54] : memref<9x4x4xf32, #tpu.memory_space<vmem>>, vector<1x4x4xf32>
    %54 = vector.shape_cast %53 : vector<1x4x4xf32> to vector<4x4xf32>
    %cst_55 = arith.constant dense<0.000000e+00> : vector<256x4xf32>
    %55 = tpu.matmul %52, %54, %cst_55 {dimension_numbers = #tpu.dot_dimension_numbers<[1], [0], [0], [1], [0, 0, 1, 1], [], []>} : vector<256x4xf32>, vector<4x4xf32>, vector<256x4xf32> -> vector<256x4xf32>
    %56 = arith.addf %49, %55 : vector<256x4xf32>
    %c0_56 = arith.constant 0 : index
    %c2_57 = arith.constant 2 : index
    %c2_58 = arith.constant 2 : index
    %c0_59 = arith.constant 0 : index
    %57 = vector.load %arg1[%c0_56, %c2_57, %c2_58, %c0_59] : memref<1x18x18x4xf32, #tpu.memory_space<vmem>>, vector<1x16x16x4xf32>
    %58 = vector.shape_cast %57 : vector<1x16x16x4xf32> to vector<16x16x4xf32>
    %59 = vector.shape_cast %58 : vector<16x16x4xf32> to vector<256x4xf32>
    %c8 = arith.constant 8 : index
    %c0_60 = arith.constant 0 : index
    %c0_61 = arith.constant 0 : index
    %60 = vector.load %arg2[%c8, %c0_60, %c0_61] : memref<9x4x4xf32, #tpu.memory_space<vmem>>, vector<1x4x4xf32>
    %61 = vector.shape_cast %60 : vector<1x4x4xf32> to vector<4x4xf32>
    %cst_62 = arith.constant dense<0.000000e+00> : vector<256x4xf32>
    %62 = tpu.matmul %59, %61, %cst_62 {dimension_numbers = #tpu.dot_dimension_numbers<[1], [0], [0], [1], [0, 0, 1, 1], [], []>} : vector<256x4xf32>, vector<4x4xf32>, vector<256x4xf32> -> vector<256x4xf32>
    %63 = arith.addf %56, %62 : vector<256x4xf32>
    %c0_63 = arith.constant 0 : index
    %c0_64 = arith.constant 0 : index
    %64 = vector.load %arg3[%c0_63, %c0_64] : memref<1x4xf32, #tpu.memory_space<vmem>>, vector<1x4xf32>
    %65 = vector.broadcast %64 : vector<1x4xf32> to vector<256x4xf32>
    %66 = arith.mulf %63, %65 : vector<256x4xf32>
    %c0_65 = arith.constant 0 : index
    %c0_66 = arith.constant 0 : index
    %67 = vector.load %arg4[%c0_65, %c0_66] : memref<1x4xf32, #tpu.memory_space<vmem>>, vector<1x4xf32>
    %68 = vector.broadcast %67 : vector<1x4xf32> to vector<256x4xf32>
    %69 = arith.addf %66, %68 : vector<256x4xf32>
    %cst_67 = arith.constant 0.000000e+00 : f32
    %70 = vector.broadcast %cst_67 : f32 to vector<256x4xf32>
    %71 = arith.maximumf %69, %70 : vector<256x4xf32>
    %c0_68 = arith.constant 0 : index
    %c0_69 = arith.constant 0 : index
    %72 = vector.load %arg5[%c0_68, %c0_69] : memref<4x32xf32, #tpu.memory_space<vmem>>, vector<4x32xf32>
    %cst_70 = arith.constant dense<0.000000e+00> : vector<256x32xf32>
    %73 = tpu.matmul %71, %72, %cst_70 {dimension_numbers = #tpu.dot_dimension_numbers<[1], [0], [0], [1], [0, 0, 1, 1], [], []>} : vector<256x4xf32>, vector<4x32xf32>, vector<256x32xf32> -> vector<256x32xf32>
    %c0_71 = arith.constant 0 : index
    %c0_72 = arith.constant 0 : index
    %74 = vector.load %arg6[%c0_71, %c0_72] : memref<1x32xf32, #tpu.memory_space<vmem>>, vector<1x32xf32>
    %75 = vector.broadcast %74 : vector<1x32xf32> to vector<256x32xf32>
    %76 = arith.addf %73, %75 : vector<256x32xf32>
    %77 = vector.shape_cast %76 : vector<256x32xf32> to vector<16x16x32xf32>
    %c0_73 = arith.constant 0 : index
    %c0_74 = arith.constant 0 : index
    %78 = vector.load %arg7[%c0_73, %c0_74] : memref<32x16xf32, #tpu.memory_space<vmem>>, vector<32x16xf32>
    %79 = vector.extract_strided_slice %77 {offsets = [0, 0, 0], sizes = [1, 16, 32], strides = [1, 1, 1]} : vector<16x16x32xf32> to vector<1x16x32xf32>
    %80 = vector.shape_cast %79 : vector<1x16x32xf32> to vector<16x32xf32>
    %cst_75 = arith.constant dense<0.000000e+00> : vector<32x32xf32>
    %81 = tpu.matmul %78, %80, %cst_75 {dimension_numbers = #tpu.dot_dimension_numbers<[1], [0], [0], [1], [0, 0, 1, 1], [], []>} : vector<32x16xf32>, vector<16x32xf32>, vector<32x32xf32> -> vector<32x32xf32>
    %cst_76 = arith.constant 0.000000e+00 : f32
    %82 = vector.broadcast %cst_76 : f32 to vector<32x32xf32>
    %83 = arith.maximumf %81, %82 : vector<32x32xf32>
    %c0_77 = arith.constant 0 : index
    %c0_78 = arith.constant 0 : index
    %c0_79 = arith.constant 0 : index
    %c0_80 = arith.constant 0 : index
    %84 = vector.load %arg8[%c0_77, %c0_78, %c0_79, %c0_80] : memref<1x32x32x32xf32, #tpu.memory_space<vmem>>, vector<1x1x32x32xf32>
    %85 = vector.shape_cast %84 : vector<1x1x32x32xf32> to vector<32x32xf32>
    %86 = vector.shape_cast %83 : vector<32x32xf32> to vector<1x1x32x32xf32>
    tpu.vector_store %arg8[%c0_77, %c0_78, %c0_79, %c0_80], %86 {strides = array<i32>} : memref<1x32x32x32xf32, #tpu.memory_space<vmem>>, vector<1x1x32x32xf32>,
    %87 = vector.extract_strided_slice %77 {offsets = [0, 0, 0], sizes = [1, 16, 32], strides = [1, 1, 1]} : vector<16x16x32xf32> to vector<1x16x32xf32>
    %88 = vector.shape_cast %87 : vector<1x16x32xf32> to vector<16x32xf32>
    %cst_81 = arith.constant 5.161290e-01 : f32
    %89 = vector.broadcast %cst_81 : f32 to vector<16x32xf32>
    %90 = arith.mulf %89, %88 : vector<16x32xf32>
    %91 = vector.extract_strided_slice %77 {offsets = [1, 0, 0], sizes = [1, 16, 32], strides = [1, 1, 1]} : vector<16x16x32xf32> to vector<1x16x32xf32>
    %92 = vector.shape_cast %91 : vector<1x16x32xf32> to vector<16x32xf32>
    %cst_82 = arith.constant 0.483870953 : f32
    %93 = vector.broadcast %cst_82 : f32 to vector<16x32xf32>
    %94 = arith.mulf %93, %92 : vector<16x32xf32>
    %95 = arith.addf %90, %94 : vector<16x32xf32>
    %cst_83 = arith.constant dense<0.000000e+00> : vector<32x32xf32>
    %96 = tpu.matmul %78, %95, %cst_83 {dimension_numbers = #tpu.dot_dimension_numbers<[1], [0], [0], [1], [0, 0, 1, 1], [], []>} : vector<32x16xf32>, vector<16x32xf32>, vector<32x32xf32> -> vector<32x32xf32>
    %cst_84 = arith.constant 0.000000e+00 : f32
    %97 = vector.broadcast %cst_84 : f32 to vector<32x32xf32>
    %98 = arith.maximumf %96, %97 : vector<32x32xf32>
    %c0_85 = arith.constant 0 : index
    %c1_86 = arith.constant 1 : index
    %c0_87 = arith.constant 0 : index
    %c0_88 = arith.constant 0 : index
    %99 = vector.load %arg8[%c0_85, %c1_86, %c0_87, %c0_88] : memref<1x32x32x32xf32, #tpu.memory_space<vmem>>, vector<1x1x32x32xf32>
    %100 = vector.shape_cast %99 : vector<1x1x32x32xf32> to vector<32x32xf32>
    %101 = vector.shape_cast %98 : vector<32x32xf32> to vector<1x1x32x32xf32>
    tpu.vector_store %arg8[%c0_85, %c1_86, %c0_87, %c0_88], %101 {strides = array<i32>} : memref<1x32x32x32xf32, #tpu.memory_space<vmem>>, vector<1x1x32x32xf32>,
    %102 = vector.extract_strided_slice %77 {offsets = [0, 0, 0], sizes = [1, 16, 32], strides = [1, 1, 1]} : vector<16x16x32xf32> to vector<1x16x32xf32>
    %103 = vector.shape_cast %102 : vector<1x16x32xf32> to vector<16x32xf32>
    %cst_89 = arith.constant 0.0322580636 : f32
    %104 = vector.broadcast %cst_89 : f32 to vector<16x32xf32>
    %105 = arith.mulf %104, %103 : vector<16x32xf32>
    %106 = vector.extract_strided_slice %77 {offsets = [1, 0, 0], sizes = [1, 16, 32], strides = [1, 1, 1]} : vector<16x16x32xf32> to vector<1x16x32xf32>
    %107 = vector.shape_cast %106 : vector<1x16x32xf32> to vector<16x32xf32>
    %cst_90 = arith.constant 0.967741906 : f32
    %108 = vector.broadcast %cst_90 : f32 to vector<16x32xf32>
    %109 = arith.mulf %108, %107 : vector<16x32xf32>
    %110 = arith.addf %105, %109 : vector<16x32xf32>
    %cst_91 = arith.constant dense<0.000000e+00> : vector<32x32xf32>
    %111 = tpu.matmul %78, %110, %cst_91 {dimension_numbers = #tpu.dot_dimension_numbers<[1], [0], [0], [1], [0, 0, 1, 1], [], []>} : vector<32x16xf32>, vector<16x32xf32>, vector<32x32xf32> -> vector<32x32xf32>
    %cst_92 = arith.constant 0.000000e+00 : f32
    %112 = vector.broadcast %cst_92 : f32 to vector<32x32xf32>
    %113 = arith.maximumf %111, %112 : vector<32x32xf32>
    %c0_93 = arith.constant 0 : index
    %c2_94 = arith.constant 2 : index
    %c0_95 = arith.constant 0 : index
    %c0_96 = arith.constant 0 : index
    %114 = vector.load %arg8[%c0_93, %c2_94, %c0_95, %c0_96] : memref<1x32x32x32xf32, #tpu.memory_space<vmem>>, vector<1x1x32x32xf32>
    %115 = vector.shape_cast %114 : vector<1x1x32x32xf32> to vector<32x32xf32>
    %116 = vector.shape_cast %113 : vector<32x32xf32> to vector<1x1x32x32xf32>
    tpu.vector_store %arg8[%c0_93, %c2_94, %c0_95, %c0_96], %116 {strides = array<i32>} : memref<1x32x32x32xf32, #tpu.memory_space<vmem>>, vector<1x1x32x32xf32>,
    %117 = vector.extract_strided_slice %77 {offsets = [1, 0, 0], sizes = [1, 16, 32], strides = [1, 1, 1]} : vector<16x16x32xf32> to vector<1x16x32xf32>
    %118 = vector.shape_cast %117 : vector<1x16x32xf32> to vector<16x32xf32>
    %cst_97 = arith.constant 0.54838711 : f32
    %119 = vector.broadcast %cst_97 : f32 to vector<16x32xf32>
    %120 = arith.mulf %119, %118 : vector<16x32xf32>
    %121 = vector.extract_strided_slice %77 {offsets = [2, 0, 0], sizes = [1, 16, 32], strides = [1, 1, 1]} : vector<16x16x32xf32> to vector<1x16x32xf32>
    %122 = vector.shape_cast %121 : vector<1x16x32xf32> to vector<16x32xf32>
    %cst_98 = arith.constant 0.45161289 : f32
    %123 = vector.broadcast %cst_98 : f32 to vector<16x32xf32>
    %124 = arith.mulf %123, %122 : vector<16x32xf32>
    %125 = arith.addf %120, %124 : vector<16x32xf32>
    %cst_99 = arith.constant dense<0.000000e+00> : vector<32x32xf32>
    %126 = tpu.matmul %78, %125, %cst_99 {dimension_numbers = #tpu.dot_dimension_numbers<[1], [0], [0], [1], [0, 0, 1, 1], [], []>} : vector<32x16xf32>, vector<16x32xf32>, vector<32x32xf32> -> vector<32x32xf32>
    %cst_100 = arith.constant 0.000000e+00 : f32
    %127 = vector.broadcast %cst_100 : f32 to vector<32x32xf32>
    %128 = arith.maximumf %126, %127 : vector<32x32xf32>
    %c0_101 = arith.constant 0 : index
    %c3_102 = arith.constant 3 : index
    %c0_103 = arith.constant 0 : index
    %c0_104 = arith.constant 0 : index
    %129 = vector.load %arg8[%c0_101, %c3_102, %c0_103, %c0_104] : memref<1x32x32x32xf32, #tpu.memory_space<vmem>>, vector<1x1x32x32xf32>
    %130 = vector.shape_cast %129 : vector<1x1x32x32xf32> to vector<32x32xf32>
    %131 = vector.shape_cast %128 : vector<32x32xf32> to vector<1x1x32x32xf32>
    tpu.vector_store %arg8[%c0_101, %c3_102, %c0_103, %c0_104], %131 {strides = array<i32>} : memref<1x32x32x32xf32, #tpu.memory_space<vmem>>, vector<1x1x32x32xf32>,
    %132 = vector.extract_strided_slice %77 {offsets = [1, 0, 0], sizes = [1, 16, 32], strides = [1, 1, 1]} : vector<16x16x32xf32> to vector<1x16x32xf32>
    %133 = vector.shape_cast %132 : vector<1x16x32xf32> to vector<16x32xf32>
    %cst_105 = arith.constant 0.0645161271 : f32
    %134 = vector.broadcast %cst_105 : f32 to vector<16x32xf32>
    %135 = arith.mulf %134, %133 : vector<16x32xf32>
    %136 = vector.extract_strided_slice %77 {offsets = [2, 0, 0], sizes = [1, 16, 32], strides = [1, 1, 1]} : vector<16x16x32xf32> to vector<1x16x32xf32>
    %137 = vector.shape_cast %136 : vector<1x16x32xf32> to vector<16x32xf32>
    %cst_106 = arith.constant 0.935483872 : f32
    %138 = vector.broadcast %cst_106 : f32 to vector<16x32xf32>
    %139 = arith.mulf %138, %137 : vector<16x32xf32>
    %140 = arith.addf %135, %139 : vector<16x32xf32>
    %cst_107 = arith.constant dense<0.000000e+00> : vector<32x32xf32>
    %141 = tpu.matmul %78, %140, %cst_107 {dimension_numbers = #tpu.dot_dimension_numbers<[1], [0], [0], [1], [0, 0, 1, 1], [], []>} : vector<32x16xf32>, vector<16x32xf32>, vector<32x32xf32> -> vector<32x32xf32>
    %cst_108 = arith.constant 0.000000e+00 : f32
    %142 = vector.broadcast %cst_108 : f32 to vector<32x32xf32>
    %143 = arith.maximumf %141, %142 : vector<32x32xf32>
    %c0_109 = arith.constant 0 : index
    %c4_110 = arith.constant 4 : index
    %c0_111 = arith.constant 0 : index
    %c0_112 = arith.constant 0 : index
    %144 = vector.load %arg8[%c0_109, %c4_110, %c0_111, %c0_112] : memref<1x32x32x32xf32, #tpu.memory_space<vmem>>, vector<1x1x32x32xf32>
    %145 = vector.shape_cast %144 : vector<1x1x32x32xf32> to vector<32x32xf32>
    %146 = vector.shape_cast %143 : vector<32x32xf32> to vector<1x1x32x32xf32>
    tpu.vector_store %arg8[%c0_109, %c4_110, %c0_111, %c0_112], %146 {strides = array<i32>} : memref<1x32x32x32xf32, #tpu.memory_space<vmem>>, vector<1x1x32x32xf32>,
    %147 = vector.extract_strided_slice %77 {offsets = [2, 0, 0], sizes = [1, 16, 32], strides = [1, 1, 1]} : vector<16x16x32xf32> to vector<1x16x32xf32>
    %148 = vector.shape_cast %147 : vector<1x16x32xf32> to vector<16x32xf32>
    %cst_113 = arith.constant 0.580645144 : f32
    %149 = vector.broadcast %cst_113 : f32 to vector<16x32xf32>
    %150 = arith.mulf %149, %148 : vector<16x32xf32>
    %151 = vector.extract_strided_slice %77 {offsets = [3, 0, 0], sizes = [1, 16, 32], strides = [1, 1, 1]} : vector<16x16x32xf32> to vector<1x16x32xf32>
    %152 = vector.shape_cast %151 : vector<1x16x32xf32> to vector<16x32xf32>
    %cst_114 = arith.constant 0.419354826 : f32
    %153 = vector.broadcast %cst_114 : f32 to vector<16x32xf32>
    %154 = arith.mulf %153, %152 : vector<16x32xf32>
    %155 = arith.addf %150, %154 : vector<16x32xf32>
    %cst_115 = arith.constant dense<0.000000e+00> : vector<32x32xf32>
    %156 = tpu.matmul %78, %155, %cst_115 {dimension_numbers = #tpu.dot_dimension_numbers<[1], [0], [0], [1], [0, 0, 1, 1], [], []>} : vector<32x16xf32>, vector<16x32xf32>, vector<32x32xf32> -> vector<32x32xf32>
    %cst_116 = arith.constant 0.000000e+00 : f32
    %157 = vector.broadcast %cst_116 : f32 to vector<32x32xf32>
    %158 = arith.maximumf %156, %157 : vector<32x32xf32>
    %c0_117 = arith.constant 0 : index
    %c5_118 = arith.constant 5 : index
    %c0_119 = arith.constant 0 : index
    %c0_120 = arith.constant 0 : index
    %159 = vector.load %arg8[%c0_117, %c5_118, %c0_119, %c0_120] : memref<1x32x32x32xf32, #tpu.memory_space<vmem>>, vector<1x1x32x32xf32>
    %160 = vector.shape_cast %159 : vector<1x1x32x32xf32> to vector<32x32xf32>
    %161 = vector.shape_cast %158 : vector<32x32xf32> to vector<1x1x32x32xf32>
    tpu.vector_store %arg8[%c0_117, %c5_118, %c0_119, %c0_120], %161 {strides = array<i32>} : memref<1x32x32x32xf32, #tpu.memory_space<vmem>>, vector<1x1x32x32xf32>,
    %162 = vector.extract_strided_slice %77 {offsets = [2, 0, 0], sizes = [1, 16, 32], strides = [1, 1, 1]} : vector<16x16x32xf32> to vector<1x16x32xf32>
    %163 = vector.shape_cast %162 : vector<1x16x32xf32> to vector<16x32xf32>
    %cst_121 = arith.constant 0.0967741906 : f32
    %164 = vector.broadcast %cst_121 : f32 to vector<16x32xf32>
    %165 = arith.mulf %164, %163 : vector<16x32xf32>
    %166 = vector.extract_strided_slice %77 {offsets = [3, 0, 0], sizes = [1, 16, 32], strides = [1, 1, 1]} : vector<16x16x32xf32> to vector<1x16x32xf32>
    %167 = vector.shape_cast %166 : vector<1x16x32xf32> to vector<16x32xf32>
    %cst_122 = arith.constant 0.903225779 : f32
    %168 = vector.broadcast %cst_122 : f32 to vector<16x32xf32>
    %169 = arith.mulf %168, %167 : vector<16x32xf32>
    %170 = arith.addf %165, %169 : vector<16x32xf32>
    %cst_123 = arith.constant dense<0.000000e+00> : vector<32x32xf32>
    %171 = tpu.matmul %78, %170, %cst_123 {dimension_numbers = #tpu.dot_dimension_numbers<[1], [0], [0], [1], [0, 0, 1, 1], [], []>} : vector<32x16xf32>, vector<16x32xf32>, vector<32x32xf32> -> vector<32x32xf32>
    %cst_124 = arith.constant 0.000000e+00 : f32
    %172 = vector.broadcast %cst_124 : f32 to vector<32x32xf32>
    %173 = arith.maximumf %171, %172 : vector<32x32xf32>
    %c0_125 = arith.constant 0 : index
    %c6_126 = arith.constant 6 : index
    %c0_127 = arith.constant 0 : index
    %c0_128 = arith.constant 0 : index
    %174 = vector.load %arg8[%c0_125, %c6_126, %c0_127, %c0_128] : memref<1x32x32x32xf32, #tpu.memory_space<vmem>>, vector<1x1x32x32xf32>
    %175 = vector.shape_cast %174 : vector<1x1x32x32xf32> to vector<32x32xf32>
    %176 = vector.shape_cast %173 : vector<32x32xf32> to vector<1x1x32x32xf32>
    tpu.vector_store %arg8[%c0_125, %c6_126, %c0_127, %c0_128], %176 {strides = array<i32>} : memref<1x32x32x32xf32, #tpu.memory_space<vmem>>, vector<1x1x32x32xf32>,
    %177 = vector.extract_strided_slice %77 {offsets = [3, 0, 0], sizes = [1, 16, 32], strides = [1, 1, 1]} : vector<16x16x32xf32> to vector<1x16x32xf32>
    %178 = vector.shape_cast %177 : vector<1x16x32xf32> to vector<16x32xf32>
    %cst_129 = arith.constant 0.612903237 : f32
    %179 = vector.broadcast %cst_129 : f32 to vector<16x32xf32>
    %180 = arith.mulf %179, %178 : vector<16x32xf32>
    %181 = vector.extract_strided_slice %77 {offsets = [4, 0, 0], sizes = [1, 16, 32], strides = [1, 1, 1]} : vector<16x16x32xf32> to vector<1x16x32xf32>
    %182 = vector.shape_cast %181 : vector<1x16x32xf32> to vector<16x32xf32>
    %cst_130 = arith.constant 0.387096763 : f32
    %183 = vector.broadcast %cst_130 : f32 to vector<16x32xf32>
    %184 = arith.mulf %183, %182 : vector<16x32xf32>
    %185 = arith.addf %180, %184 : vector<16x32xf32>
    %cst_131 = arith.constant dense<0.000000e+00> : vector<32x32xf32>
    %186 = tpu.matmul %78, %185, %cst_131 {dimension_numbers = #tpu.dot_dimension_numbers<[1], [0], [0], [1], [0, 0, 1, 1], [], []>} : vector<32x16xf32>, vector<16x32xf32>, vector<32x32xf32> -> vector<32x32xf32>
    %cst_132 = arith.constant 0.000000e+00 : f32
    %187 = vector.broadcast %cst_132 : f32 to vector<32x32xf32>
    %188 = arith.maximumf %186, %187 : vector<32x32xf32>
    %c0_133 = arith.constant 0 : index
    %c7_134 = arith.constant 7 : index
    %c0_135 = arith.constant 0 : index
    %c0_136 = arith.constant 0 : index
    %189 = vector.load %arg8[%c0_133, %c7_134, %c0_135, %c0_136] : memref<1x32x32x32xf32, #tpu.memory_space<vmem>>, vector<1x1x32x32xf32>
    %190 = vector.shape_cast %189 : vector<1x1x32x32xf32> to vector<32x32xf32>
    %191 = vector.shape_cast %188 : vector<32x32xf32> to vector<1x1x32x32xf32>
    tpu.vector_store %arg8[%c0_133, %c7_134, %c0_135, %c0_136], %191 {strides = array<i32>} : memref<1x32x32x32xf32, #tpu.memory_space<vmem>>, vector<1x1x32x32xf32>,
    %192 = vector.extract_strided_slice %77 {offsets = [3, 0, 0], sizes = [1, 16, 32], strides = [1, 1, 1]} : vector<16x16x32xf32> to vector<1x16x32xf32>
    %193 = vector.shape_cast %192 : vector<1x16x32xf32> to vector<16x32xf32>
    %cst_137 = arith.constant 0.129032254 : f32
    %194 = vector.broadcast %cst_137 : f32 to vector<16x32xf32>
    %195 = arith.mulf %194, %193 : vector<16x32xf32>
    %196 = vector.extract_strided_slice %77 {offsets = [4, 0, 0], sizes = [1, 16, 32], strides = [1, 1, 1]} : vector<16x16x32xf32> to vector<1x16x32xf32>
    %197 = vector.shape_cast %196 : vector<1x16x32xf32> to vector<16x32xf32>
    %cst_138 = arith.constant 0.870967745 : f32
    %198 = vector.broadcast %cst_138 : f32 to vector<16x32xf32>
    %199 = arith.mulf %198, %197 : vector<16x32xf32>
    %200 = arith.addf %195, %199 : vector<16x32xf32>
    %cst_139 = arith.constant dense<0.000000e+00> : vector<32x32xf32>
    %201 = tpu.matmul %78, %200, %cst_139 {dimension_numbers = #tpu.dot_dimension_numbers<[1], [0], [0], [1], [0, 0, 1, 1], [], []>} : vector<32x16xf32>, vector<16x32xf32>, vector<32x32xf32> -> vector<32x32xf32>
    %cst_140 = arith.constant 0.000000e+00 : f32
    %202 = vector.broadcast %cst_140 : f32 to vector<32x32xf32>
    %203 = arith.maximumf %201, %202 : vector<32x32xf32>
    %c0_141 = arith.constant 0 : index
    %c8_142 = arith.constant 8 : index
    %c0_143 = arith.constant 0 : index
    %c0_144 = arith.constant 0 : index
    %204 = vector.load %arg8[%c0_141, %c8_142, %c0_143, %c0_144] : memref<1x32x32x32xf32, #tpu.memory_space<vmem>>, vector<1x1x32x32xf32>
    %205 = vector.shape_cast %204 : vector<1x1x32x32xf32> to vector<32x32xf32>
    %206 = vector.shape_cast %203 : vector<32x32xf32> to vector<1x1x32x32xf32>
    tpu.vector_store %arg8[%c0_141, %c8_142, %c0_143, %c0_144], %206 {strides = array<i32>} : memref<1x32x32x32xf32, #tpu.memory_space<vmem>>, vector<1x1x32x32xf32>,
    %207 = vector.extract_strided_slice %77 {offsets = [4, 0, 0], sizes = [1, 16, 32], strides = [1, 1, 1]} : vector<16x16x32xf32> to vector<1x16x32xf32>
    %208 = vector.shape_cast %207 : vector<1x16x32xf32> to vector<16x32xf32>
    %cst_145 = arith.constant 0.645161271 : f32
    %209 = vector.broadcast %cst_145 : f32 to vector<16x32xf32>
    %210 = arith.mulf %209, %208 : vector<16x32xf32>
    %211 = vector.extract_strided_slice %77 {offsets = [5, 0, 0], sizes = [1, 16, 32], strides = [1, 1, 1]} : vector<16x16x32xf32> to vector<1x16x32xf32>
    %212 = vector.shape_cast %211 : vector<1x16x32xf32> to vector<16x32xf32>
    %cst_146 = arith.constant 0.354838699 : f32
    %213 = vector.broadcast %cst_146 : f32 to vector<16x32xf32>
    %214 = arith.mulf %213, %212 : vector<16x32xf32>
    %215 = arith.addf %210, %214 : vector<16x32xf32>
    %cst_147 = arith.constant dense<0.000000e+00> : vector<32x32xf32>
    %216 = tpu.matmul %78, %215, %cst_147 {dimension_numbers = #tpu.dot_dimension_numbers<[1], [0], [0], [1], [0, 0, 1, 1], [], []>} : vector<32x16xf32>, vector<16x32xf32>, vector<32x32xf32> -> vector<32x32xf32>
    %cst_148 = arith.constant 0.000000e+00 : f32
    %217 = vector.broadcast %cst_148 : f32 to vector<32x32xf32>
    %218 = arith.maximumf %216, %217 : vector<32x32xf32>
    %c0_149 = arith.constant 0 : index
    %c9 = arith.constant 9 : index
    %c0_150 = arith.constant 0 : index
    %c0_151 = arith.constant 0 : index
    %219 = vector.load %arg8[%c0_149, %c9, %c0_150, %c0_151] : memref<1x32x32x32xf32, #tpu.memory_space<vmem>>, vector<1x1x32x32xf32>
    %220 = vector.shape_cast %219 : vector<1x1x32x32xf32> to vector<32x32xf32>
    %221 = vector.shape_cast %218 : vector<32x32xf32> to vector<1x1x32x32xf32>
    tpu.vector_store %arg8[%c0_149, %c9, %c0_150, %c0_151], %221 {strides = array<i32>} : memref<1x32x32x32xf32, #tpu.memory_space<vmem>>, vector<1x1x32x32xf32>,
    %222 = vector.extract_strided_slice %77 {offsets = [4, 0, 0], sizes = [1, 16, 32], strides = [1, 1, 1]} : vector<16x16x32xf32> to vector<1x16x32xf32>
    %223 = vector.shape_cast %222 : vector<1x16x32xf32> to vector<16x32xf32>
    %cst_152 = arith.constant 0.161290318 : f32
    %224 = vector.broadcast %cst_152 : f32 to vector<16x32xf32>
    %225 = arith.mulf %224, %223 : vector<16x32xf32>
    %226 = vector.extract_strided_slice %77 {offsets = [5, 0, 0], sizes = [1, 16, 32], strides = [1, 1, 1]} : vector<16x16x32xf32> to vector<1x16x32xf32>
    %227 = vector.shape_cast %226 : vector<1x16x32xf32> to vector<16x32xf32>
    %cst_153 = arith.constant 0.838709652 : f32
    %228 = vector.broadcast %cst_153 : f32 to vector<16x32xf32>
    %229 = arith.mulf %228, %227 : vector<16x32xf32>
    %230 = arith.addf %225, %229 : vector<16x32xf32>
    %cst_154 = arith.constant dense<0.000000e+00> : vector<32x32xf32>
    %231 = tpu.matmul %78, %230, %cst_154 {dimension_numbers = #tpu.dot_dimension_numbers<[1], [0], [0], [1], [0, 0, 1, 1], [], []>} : vector<32x16xf32>, vector<16x32xf32>, vector<32x32xf32> -> vector<32x32xf32>
    %cst_155 = arith.constant 0.000000e+00 : f32
    %232 = vector.broadcast %cst_155 : f32 to vector<32x32xf32>
    %233 = arith.maximumf %231, %232 : vector<32x32xf32>
    %c0_156 = arith.constant 0 : index
    %c10 = arith.constant 10 : index
    %c0_157 = arith.constant 0 : index
    %c0_158 = arith.constant 0 : index
    %234 = vector.load %arg8[%c0_156, %c10, %c0_157, %c0_158] : memref<1x32x32x32xf32, #tpu.memory_space<vmem>>, vector<1x1x32x32xf32>
    %235 = vector.shape_cast %234 : vector<1x1x32x32xf32> to vector<32x32xf32>
    %236 = vector.shape_cast %233 : vector<32x32xf32> to vector<1x1x32x32xf32>
    tpu.vector_store %arg8[%c0_156, %c10, %c0_157, %c0_158], %236 {strides = array<i32>} : memref<1x32x32x32xf32, #tpu.memory_space<vmem>>, vector<1x1x32x32xf32>,
    %237 = vector.extract_strided_slice %77 {offsets = [5, 0, 0], sizes = [1, 16, 32], strides = [1, 1, 1]} : vector<16x16x32xf32> to vector<1x16x32xf32>
    %238 = vector.shape_cast %237 : vector<1x16x32xf32> to vector<16x32xf32>
    %cst_159 = arith.constant 0.677419364 : f32
    %239 = vector.broadcast %cst_159 : f32 to vector<16x32xf32>
    %240 = arith.mulf %239, %238 : vector<16x32xf32>
    %241 = vector.extract_strided_slice %77 {offsets = [6, 0, 0], sizes = [1, 16, 32], strides = [1, 1, 1]} : vector<16x16x32xf32> to vector<1x16x32xf32>
    %242 = vector.shape_cast %241 : vector<1x16x32xf32> to vector<16x32xf32>
    %cst_160 = arith.constant 0.322580636 : f32
    %243 = vector.broadcast %cst_160 : f32 to vector<16x32xf32>
    %244 = arith.mulf %243, %242 : vector<16x32xf32>
    %245 = arith.addf %240, %244 : vector<16x32xf32>
    %cst_161 = arith.constant dense<0.000000e+00> : vector<32x32xf32>
    %246 = tpu.matmul %78, %245, %cst_161 {dimension_numbers = #tpu.dot_dimension_numbers<[1], [0], [0], [1], [0, 0, 1, 1], [], []>} : vector<32x16xf32>, vector<16x32xf32>, vector<32x32xf32> -> vector<32x32xf32>
    %cst_162 = arith.constant 0.000000e+00 : f32
    %247 = vector.broadcast %cst_162 : f32 to vector<32x32xf32>
    %248 = arith.maximumf %246, %247 : vector<32x32xf32>
    %c0_163 = arith.constant 0 : index
    %c11 = arith.constant 11 : index
    %c0_164 = arith.constant 0 : index
    %c0_165 = arith.constant 0 : index
    %249 = vector.load %arg8[%c0_163, %c11, %c0_164, %c0_165] : memref<1x32x32x32xf32, #tpu.memory_space<vmem>>, vector<1x1x32x32xf32>
    %250 = vector.shape_cast %249 : vector<1x1x32x32xf32> to vector<32x32xf32>
    %251 = vector.shape_cast %248 : vector<32x32xf32> to vector<1x1x32x32xf32>
    tpu.vector_store %arg8[%c0_163, %c11, %c0_164, %c0_165], %251 {strides = array<i32>} : memref<1x32x32x32xf32, #tpu.memory_space<vmem>>, vector<1x1x32x32xf32>,
    %252 = vector.extract_strided_slice %77 {offsets = [5, 0, 0], sizes = [1, 16, 32], strides = [1, 1, 1]} : vector<16x16x32xf32> to vector<1x16x32xf32>
    %253 = vector.shape_cast %252 : vector<1x16x32xf32> to vector<16x32xf32>
    %cst_166 = arith.constant 0.193548381 : f32
    %254 = vector.broadcast %cst_166 : f32 to vector<16x32xf32>
    %255 = arith.mulf %254, %253 : vector<16x32xf32>
    %256 = vector.extract_strided_slice %77 {offsets = [6, 0, 0], sizes = [1, 16, 32], strides = [1, 1, 1]} : vector<16x16x32xf32> to vector<1x16x32xf32>
    %257 = vector.shape_cast %256 : vector<1x16x32xf32> to vector<16x32xf32>
    %cst_167 = arith.constant 0.806451618 : f32
    %258 = vector.broadcast %cst_167 : f32 to vector<16x32xf32>
    %259 = arith.mulf %258, %257 : vector<16x32xf32>
    %260 = arith.addf %255, %259 : vector<16x32xf32>
    %cst_168 = arith.constant dense<0.000000e+00> : vector<32x32xf32>
    %261 = tpu.matmul %78, %260, %cst_168 {dimension_numbers = #tpu.dot_dimension_numbers<[1], [0], [0], [1], [0, 0, 1, 1], [], []>} : vector<32x16xf32>, vector<16x32xf32>, vector<32x32xf32> -> vector<32x32xf32>
    %cst_169 = arith.constant 0.000000e+00 : f32
    %262 = vector.broadcast %cst_169 : f32 to vector<32x32xf32>
    %263 = arith.maximumf %261, %262 : vector<32x32xf32>
    %c0_170 = arith.constant 0 : index
    %c12 = arith.constant 12 : index
    %c0_171 = arith.constant 0 : index
    %c0_172 = arith.constant 0 : index
    %264 = vector.load %arg8[%c0_170, %c12, %c0_171, %c0_172] : memref<1x32x32x32xf32, #tpu.memory_space<vmem>>, vector<1x1x32x32xf32>
    %265 = vector.shape_cast %264 : vector<1x1x32x32xf32> to vector<32x32xf32>
    %266 = vector.shape_cast %263 : vector<32x32xf32> to vector<1x1x32x32xf32>
    tpu.vector_store %arg8[%c0_170, %c12, %c0_171, %c0_172], %266 {strides = array<i32>} : memref<1x32x32x32xf32, #tpu.memory_space<vmem>>, vector<1x1x32x32xf32>,
    %267 = vector.extract_strided_slice %77 {offsets = [6, 0, 0], sizes = [1, 16, 32], strides = [1, 1, 1]} : vector<16x16x32xf32> to vector<1x16x32xf32>
    %268 = vector.shape_cast %267 : vector<1x16x32xf32> to vector<16x32xf32>
    %cst_173 = arith.constant 0.709677398 : f32
    %269 = vector.broadcast %cst_173 : f32 to vector<16x32xf32>
    %270 = arith.mulf %269, %268 : vector<16x32xf32>
    %271 = vector.extract_strided_slice %77 {offsets = [7, 0, 0], sizes = [1, 16, 32], strides = [1, 1, 1]} : vector<16x16x32xf32> to vector<1x16x32xf32>
    %272 = vector.shape_cast %271 : vector<1x16x32xf32> to vector<16x32xf32>
    %cst_174 = arith.constant 0.290322572 : f32
    %273 = vector.broadcast %cst_174 : f32 to vector<16x32xf32>
    %274 = arith.mulf %273, %272 : vector<16x32xf32>
    %275 = arith.addf %270, %274 : vector<16x32xf32>
    %cst_175 = arith.constant dense<0.000000e+00> : vector<32x32xf32>
    %276 = tpu.matmul %78, %275, %cst_175 {dimension_numbers = #tpu.dot_dimension_numbers<[1], [0], [0], [1], [0, 0, 1, 1], [], []>} : vector<32x16xf32>, vector<16x32xf32>, vector<32x32xf32> -> vector<32x32xf32>
    %cst_176 = arith.constant 0.000000e+00 : f32
    %277 = vector.broadcast %cst_176 : f32 to vector<32x32xf32>
    %278 = arith.maximumf %276, %277 : vector<32x32xf32>
    %c0_177 = arith.constant 0 : index
    %c13 = arith.constant 13 : index
    %c0_178 = arith.constant 0 : index
    %c0_179 = arith.constant 0 : index
    %279 = vector.load %arg8[%c0_177, %c13, %c0_178, %c0_179] : memref<1x32x32x32xf32, #tpu.memory_space<vmem>>, vector<1x1x32x32xf32>
    %280 = vector.shape_cast %279 : vector<1x1x32x32xf32> to vector<32x32xf32>
    %281 = vector.shape_cast %278 : vector<32x32xf32> to vector<1x1x32x32xf32>
    tpu.vector_store %arg8[%c0_177, %c13, %c0_178, %c0_179], %281 {strides = array<i32>} : memref<1x32x32x32xf32, #tpu.memory_space<vmem>>, vector<1x1x32x32xf32>,
    %282 = vector.extract_strided_slice %77 {offsets = [6, 0, 0], sizes = [1, 16, 32], strides = [1, 1, 1]} : vector<16x16x32xf32> to vector<1x16x32xf32>
    %283 = vector.shape_cast %282 : vector<1x16x32xf32> to vector<16x32xf32>
    %cst_180 = arith.constant 0.225806445 : f32
    %284 = vector.broadcast %cst_180 : f32 to vector<16x32xf32>
    %285 = arith.mulf %284, %283 : vector<16x32xf32>
    %286 = vector.extract_strided_slice %77 {offsets = [7, 0, 0], sizes = [1, 16, 32], strides = [1, 1, 1]} : vector<16x16x32xf32> to vector<1x16x32xf32>
    %287 = vector.shape_cast %286 : vector<1x16x32xf32> to vector<16x32xf32>
    %cst_181 = arith.constant 0.774193525 : f32
    %288 = vector.broadcast %cst_181 : f32 to vector<16x32xf32>
    %289 = arith.mulf %288, %287 : vector<16x32xf32>
    %290 = arith.addf %285, %289 : vector<16x32xf32>
    %cst_182 = arith.constant dense<0.000000e+00> : vector<32x32xf32>
    %291 = tpu.matmul %78, %290, %cst_182 {dimension_numbers = #tpu.dot_dimension_numbers<[1], [0], [0], [1], [0, 0, 1, 1], [], []>} : vector<32x16xf32>, vector<16x32xf32>, vector<32x32xf32> -> vector<32x32xf32>
    %cst_183 = arith.constant 0.000000e+00 : f32
    %292 = vector.broadcast %cst_183 : f32 to vector<32x32xf32>
    %293 = arith.maximumf %291, %292 : vector<32x32xf32>
    %c0_184 = arith.constant 0 : index
    %c14 = arith.constant 14 : index
    %c0_185 = arith.constant 0 : index
    %c0_186 = arith.constant 0 : index
    %294 = vector.load %arg8[%c0_184, %c14, %c0_185, %c0_186] : memref<1x32x32x32xf32, #tpu.memory_space<vmem>>, vector<1x1x32x32xf32>
    %295 = vector.shape_cast %294 : vector<1x1x32x32xf32> to vector<32x32xf32>
    %296 = vector.shape_cast %293 : vector<32x32xf32> to vector<1x1x32x32xf32>
    tpu.vector_store %arg8[%c0_184, %c14, %c0_185, %c0_186], %296 {strides = array<i32>} : memref<1x32x32x32xf32, #tpu.memory_space<vmem>>, vector<1x1x32x32xf32>,
    %297 = vector.extract_strided_slice %77 {offsets = [7, 0, 0], sizes = [1, 16, 32], strides = [1, 1, 1]} : vector<16x16x32xf32> to vector<1x16x32xf32>
    %298 = vector.shape_cast %297 : vector<1x16x32xf32> to vector<16x32xf32>
    %cst_187 = arith.constant 0.741935492 : f32
    %299 = vector.broadcast %cst_187 : f32 to vector<16x32xf32>
    %300 = arith.mulf %299, %298 : vector<16x32xf32>
    %301 = vector.extract_strided_slice %77 {offsets = [8, 0, 0], sizes = [1, 16, 32], strides = [1, 1, 1]} : vector<16x16x32xf32> to vector<1x16x32xf32>
    %302 = vector.shape_cast %301 : vector<1x16x32xf32> to vector<16x32xf32>
    %cst_188 = arith.constant 0.258064508 : f32
    %303 = vector.broadcast %cst_188 : f32 to vector<16x32xf32>
    %304 = arith.mulf %303, %302 : vector<16x32xf32>
    %305 = arith.addf %300, %304 : vector<16x32xf32>
    %cst_189 = arith.constant dense<0.000000e+00> : vector<32x32xf32>
    %306 = tpu.matmul %78, %305, %cst_189 {dimension_numbers = #tpu.dot_dimension_numbers<[1], [0], [0], [1], [0, 0, 1, 1], [], []>} : vector<32x16xf32>, vector<16x32xf32>, vector<32x32xf32> -> vector<32x32xf32>
    %cst_190 = arith.constant 0.000000e+00 : f32
    %307 = vector.broadcast %cst_190 : f32 to vector<32x32xf32>
    %308 = arith.maximumf %306, %307 : vector<32x32xf32>
    %c0_191 = arith.constant 0 : index
    %c15 = arith.constant 15 : index
    %c0_192 = arith.constant 0 : index
    %c0_193 = arith.constant 0 : index
    %309 = vector.load %arg8[%c0_191, %c15, %c0_192, %c0_193] : memref<1x32x32x32xf32, #tpu.memory_space<vmem>>, vector<1x1x32x32xf32>
    %310 = vector.shape_cast %309 : vector<1x1x32x32xf32> to vector<32x32xf32>
    %311 = vector.shape_cast %308 : vector<32x32xf32> to vector<1x1x32x32xf32>
    tpu.vector_store %arg8[%c0_191, %c15, %c0_192, %c0_193], %311 {strides = array<i32>} : memref<1x32x32x32xf32, #tpu.memory_space<vmem>>, vector<1x1x32x32xf32>,
    %312 = vector.extract_strided_slice %77 {offsets = [7, 0, 0], sizes = [1, 16, 32], strides = [1, 1, 1]} : vector<16x16x32xf32> to vector<1x16x32xf32>
    %313 = vector.shape_cast %312 : vector<1x16x32xf32> to vector<16x32xf32>
    %cst_194 = arith.constant 0.258064508 : f32
    %314 = vector.broadcast %cst_194 : f32 to vector<16x32xf32>
    %315 = arith.mulf %314, %313 : vector<16x32xf32>
    %316 = vector.extract_strided_slice %77 {offsets = [8, 0, 0], sizes = [1, 16, 32], strides = [1, 1, 1]} : vector<16x16x32xf32> to vector<1x16x32xf32>
    %317 = vector.shape_cast %316 : vector<1x16x32xf32> to vector<16x32xf32>
    %cst_195 = arith.constant 0.741935492 : f32
    %318 = vector.broadcast %cst_195 : f32 to vector<16x32xf32>
    %319 = arith.mulf %318, %317 : vector<16x32xf32>
    %320 = arith.addf %315, %319 : vector<16x32xf32>
    %cst_196 = arith.constant dense<0.000000e+00> : vector<32x32xf32>
    %321 = tpu.matmul %78, %320, %cst_196 {dimension_numbers = #tpu.dot_dimension_numbers<[1], [0], [0], [1], [0, 0, 1, 1], [], []>} : vector<32x16xf32>, vector<16x32xf32>, vector<32x32xf32> -> vector<32x32xf32>
    %cst_197 = arith.constant 0.000000e+00 : f32
    %322 = vector.broadcast %cst_197 : f32 to vector<32x32xf32>
    %323 = arith.maximumf %321, %322 : vector<32x32xf32>
    %c0_198 = arith.constant 0 : index
    %c16 = arith.constant 16 : index
    %c0_199 = arith.constant 0 : index
    %c0_200 = arith.constant 0 : index
    %324 = vector.load %arg8[%c0_198, %c16, %c0_199, %c0_200] : memref<1x32x32x32xf32, #tpu.memory_space<vmem>>, vector<1x1x32x32xf32>
    %325 = vector.shape_cast %324 : vector<1x1x32x32xf32> to vector<32x32xf32>
    %326 = vector.shape_cast %323 : vector<32x32xf32> to vector<1x1x32x32xf32>
    tpu.vector_store %arg8[%c0_198, %c16, %c0_199, %c0_200], %326 {strides = array<i32>} : memref<1x32x32x32xf32, #tpu.memory_space<vmem>>, vector<1x1x32x32xf32>,
    %327 = vector.extract_strided_slice %77 {offsets = [8, 0, 0], sizes = [1, 16, 32], strides = [1, 1, 1]} : vector<16x16x32xf32> to vector<1x16x32xf32>
    %328 = vector.shape_cast %327 : vector<1x16x32xf32> to vector<16x32xf32>
    %cst_201 = arith.constant 0.774193525 : f32
    %329 = vector.broadcast %cst_201 : f32 to vector<16x32xf32>
    %330 = arith.mulf %329, %328 : vector<16x32xf32>
    %331 = vector.extract_strided_slice %77 {offsets = [9, 0, 0], sizes = [1, 16, 32], strides = [1, 1, 1]} : vector<16x16x32xf32> to vector<1x16x32xf32>
    %332 = vector.shape_cast %331 : vector<1x16x32xf32> to vector<16x32xf32>
    %cst_202 = arith.constant 0.225806445 : f32
    %333 = vector.broadcast %cst_202 : f32 to vector<16x32xf32>
    %334 = arith.mulf %333, %332 : vector<16x32xf32>
    %335 = arith.addf %330, %334 : vector<16x32xf32>
    %cst_203 = arith.constant dense<0.000000e+00> : vector<32x32xf32>
    %336 = tpu.matmul %78, %335, %cst_203 {dimension_numbers = #tpu.dot_dimension_numbers<[1], [0], [0], [1], [0, 0, 1, 1], [], []>} : vector<32x16xf32>, vector<16x32xf32>, vector<32x32xf32> -> vector<32x32xf32>
    %cst_204 = arith.constant 0.000000e+00 : f32
    %337 = vector.broadcast %cst_204 : f32 to vector<32x32xf32>
    %338 = arith.maximumf %336, %337 : vector<32x32xf32>
    %c0_205 = arith.constant 0 : index
    %c17 = arith.constant 17 : index
    %c0_206 = arith.constant 0 : index
    %c0_207 = arith.constant 0 : index
    %339 = vector.load %arg8[%c0_205, %c17, %c0_206, %c0_207] : memref<1x32x32x32xf32, #tpu.memory_space<vmem>>, vector<1x1x32x32xf32>
    %340 = vector.shape_cast %339 : vector<1x1x32x32xf32> to vector<32x32xf32>
    %341 = vector.shape_cast %338 : vector<32x32xf32> to vector<1x1x32x32xf32>
    tpu.vector_store %arg8[%c0_205, %c17, %c0_206, %c0_207], %341 {strides = array<i32>} : memref<1x32x32x32xf32, #tpu.memory_space<vmem>>, vector<1x1x32x32xf32>,
    %342 = vector.extract_strided_slice %77 {offsets = [8, 0, 0], sizes = [1, 16, 32], strides = [1, 1, 1]} : vector<16x16x32xf32> to vector<1x16x32xf32>
    %343 = vector.shape_cast %342 : vector<1x16x32xf32> to vector<16x32xf32>
    %cst_208 = arith.constant 0.290322572 : f32
    %344 = vector.broadcast %cst_208 : f32 to vector<16x32xf32>
    %345 = arith.mulf %344, %343 : vector<16x32xf32>
    %346 = vector.extract_strided_slice %77 {offsets = [9, 0, 0], sizes = [1, 16, 32], strides = [1, 1, 1]} : vector<16x16x32xf32> to vector<1x16x32xf32>
    %347 = vector.shape_cast %346 : vector<1x16x32xf32> to vector<16x32xf32>
    %cst_209 = arith.constant 0.709677398 : f32
    %348 = vector.broadcast %cst_209 : f32 to vector<16x32xf32>
    %349 = arith.mulf %348, %347 : vector<16x32xf32>
    %350 = arith.addf %345, %349 : vector<16x32xf32>
    %cst_210 = arith.constant dense<0.000000e+00> : vector<32x32xf32>
    %351 = tpu.matmul %78, %350, %cst_210 {dimension_numbers = #tpu.dot_dimension_numbers<[1], [0], [0], [1], [0, 0, 1, 1], [], []>} : vector<32x16xf32>, vector<16x32xf32>, vector<32x32xf32> -> vector<32x32xf32>
    %cst_211 = arith.constant 0.000000e+00 : f32
    %352 = vector.broadcast %cst_211 : f32 to vector<32x32xf32>
    %353 = arith.maximumf %351, %352 : vector<32x32xf32>
    %c0_212 = arith.constant 0 : index
    %c18 = arith.constant 18 : index
    %c0_213 = arith.constant 0 : index
    %c0_214 = arith.constant 0 : index
    %354 = vector.load %arg8[%c0_212, %c18, %c0_213, %c0_214] : memref<1x32x32x32xf32, #tpu.memory_space<vmem>>, vector<1x1x32x32xf32>
    %355 = vector.shape_cast %354 : vector<1x1x32x32xf32> to vector<32x32xf32>
    %356 = vector.shape_cast %353 : vector<32x32xf32> to vector<1x1x32x32xf32>
    tpu.vector_store %arg8[%c0_212, %c18, %c0_213, %c0_214], %356 {strides = array<i32>} : memref<1x32x32x32xf32, #tpu.memory_space<vmem>>, vector<1x1x32x32xf32>,
    %357 = vector.extract_strided_slice %77 {offsets = [9, 0, 0], sizes = [1, 16, 32], strides = [1, 1, 1]} : vector<16x16x32xf32> to vector<1x16x32xf32>
    %358 = vector.shape_cast %357 : vector<1x16x32xf32> to vector<16x32xf32>
    %cst_215 = arith.constant 0.806451618 : f32
    %359 = vector.broadcast %cst_215 : f32 to vector<16x32xf32>
    %360 = arith.mulf %359, %358 : vector<16x32xf32>
    %361 = vector.extract_strided_slice %77 {offsets = [10, 0, 0], sizes = [1, 16, 32], strides = [1, 1, 1]} : vector<16x16x32xf32> to vector<1x16x32xf32>
    %362 = vector.shape_cast %361 : vector<1x16x32xf32> to vector<16x32xf32>
    %cst_216 = arith.constant 0.193548381 : f32
    %363 = vector.broadcast %cst_216 : f32 to vector<16x32xf32>
    %364 = arith.mulf %363, %362 : vector<16x32xf32>
    %365 = arith.addf %360, %364 : vector<16x32xf32>
    %cst_217 = arith.constant dense<0.000000e+00> : vector<32x32xf32>
    %366 = tpu.matmul %78, %365, %cst_217 {dimension_numbers = #tpu.dot_dimension_numbers<[1], [0], [0], [1], [0, 0, 1, 1], [], []>} : vector<32x16xf32>, vector<16x32xf32>, vector<32x32xf32> -> vector<32x32xf32>
    %cst_218 = arith.constant 0.000000e+00 : f32
    %367 = vector.broadcast %cst_218 : f32 to vector<32x32xf32>
    %368 = arith.maximumf %366, %367 : vector<32x32xf32>
    %c0_219 = arith.constant 0 : index
    %c19 = arith.constant 19 : index
    %c0_220 = arith.constant 0 : index
    %c0_221 = arith.constant 0 : index
    %369 = vector.load %arg8[%c0_219, %c19, %c0_220, %c0_221] : memref<1x32x32x32xf32, #tpu.memory_space<vmem>>, vector<1x1x32x32xf32>
    %370 = vector.shape_cast %369 : vector<1x1x32x32xf32> to vector<32x32xf32>
    %371 = vector.shape_cast %368 : vector<32x32xf32> to vector<1x1x32x32xf32>
    tpu.vector_store %arg8[%c0_219, %c19, %c0_220, %c0_221], %371 {strides = array<i32>} : memref<1x32x32x32xf32, #tpu.memory_space<vmem>>, vector<1x1x32x32xf32>,
    %372 = vector.extract_strided_slice %77 {offsets = [9, 0, 0], sizes = [1, 16, 32], strides = [1, 1, 1]} : vector<16x16x32xf32> to vector<1x16x32xf32>
    %373 = vector.shape_cast %372 : vector<1x16x32xf32> to vector<16x32xf32>
    %cst_222 = arith.constant 0.322580636 : f32
    %374 = vector.broadcast %cst_222 : f32 to vector<16x32xf32>
    %375 = arith.mulf %374, %373 : vector<16x32xf32>
    %376 = vector.extract_strided_slice %77 {offsets = [10, 0, 0], sizes = [1, 16, 32], strides = [1, 1, 1]} : vector<16x16x32xf32> to vector<1x16x32xf32>
    %377 = vector.shape_cast %376 : vector<1x16x32xf32> to vector<16x32xf32>
    %cst_223 = arith.constant 0.677419364 : f32
    %378 = vector.broadcast %cst_223 : f32 to vector<16x32xf32>
    %379 = arith.mulf %378, %377 : vector<16x32xf32>
    %380 = arith.addf %375, %379 : vector<16x32xf32>
    %cst_224 = arith.constant dense<0.000000e+00> : vector<32x32xf32>
    %381 = tpu.matmul %78, %380, %cst_224 {dimension_numbers = #tpu.dot_dimension_numbers<[1], [0], [0], [1], [0, 0, 1, 1], [], []>} : vector<32x16xf32>, vector<16x32xf32>, vector<32x32xf32> -> vector<32x32xf32>
    %cst_225 = arith.constant 0.000000e+00 : f32
    %382 = vector.broadcast %cst_225 : f32 to vector<32x32xf32>
    %383 = arith.maximumf %381, %382 : vector<32x32xf32>
    %c0_226 = arith.constant 0 : index
    %c20 = arith.constant 20 : index
    %c0_227 = arith.constant 0 : index
    %c0_228 = arith.constant 0 : index
    %384 = vector.load %arg8[%c0_226, %c20, %c0_227, %c0_228] : memref<1x32x32x32xf32, #tpu.memory_space<vmem>>, vector<1x1x32x32xf32>
    %385 = vector.shape_cast %384 : vector<1x1x32x32xf32> to vector<32x32xf32>
    %386 = vector.shape_cast %383 : vector<32x32xf32> to vector<1x1x32x32xf32>
    tpu.vector_store %arg8[%c0_226, %c20, %c0_227, %c0_228], %386 {strides = array<i32>} : memref<1x32x32x32xf32, #tpu.memory_space<vmem>>, vector<1x1x32x32xf32>,
    %387 = vector.extract_strided_slice %77 {offsets = [10, 0, 0], sizes = [1, 16, 32], strides = [1, 1, 1]} : vector<16x16x32xf32> to vector<1x16x32xf32>
    %388 = vector.shape_cast %387 : vector<1x16x32xf32> to vector<16x32xf32>
    %cst_229 = arith.constant 0.838709652 : f32
    %389 = vector.broadcast %cst_229 : f32 to vector<16x32xf32>
    %390 = arith.mulf %389, %388 : vector<16x32xf32>
    %391 = vector.extract_strided_slice %77 {offsets = [11, 0, 0], sizes = [1, 16, 32], strides = [1, 1, 1]} : vector<16x16x32xf32> to vector<1x16x32xf32>
    %392 = vector.shape_cast %391 : vector<1x16x32xf32> to vector<16x32xf32>
    %cst_230 = arith.constant 0.161290318 : f32
    %393 = vector.broadcast %cst_230 : f32 to vector<16x32xf32>
    %394 = arith.mulf %393, %392 : vector<16x32xf32>
    %395 = arith.addf %390, %394 : vector<16x32xf32>
    %cst_231 = arith.constant dense<0.000000e+00> : vector<32x32xf32>
    %396 = tpu.matmul %78, %395, %cst_231 {dimension_numbers = #tpu.dot_dimension_numbers<[1], [0], [0], [1], [0, 0, 1, 1], [], []>} : vector<32x16xf32>, vector<16x32xf32>, vector<32x32xf32> -> vector<32x32xf32>
    %cst_232 = arith.constant 0.000000e+00 : f32
    %397 = vector.broadcast %cst_232 : f32 to vector<32x32xf32>
    %398 = arith.maximumf %396, %397 : vector<32x32xf32>
    %c0_233 = arith.constant 0 : index
    %c21 = arith.constant 21 : index
    %c0_234 = arith.constant 0 : index
    %c0_235 = arith.constant 0 : index
    %399 = vector.load %arg8[%c0_233, %c21, %c0_234, %c0_235] : memref<1x32x32x32xf32, #tpu.memory_space<vmem>>, vector<1x1x32x32xf32>
    %400 = vector.shape_cast %399 : vector<1x1x32x32xf32> to vector<32x32xf32>
    %401 = vector.shape_cast %398 : vector<32x32xf32> to vector<1x1x32x32xf32>
    tpu.vector_store %arg8[%c0_233, %c21, %c0_234, %c0_235], %401 {strides = array<i32>} : memref<1x32x32x32xf32, #tpu.memory_space<vmem>>, vector<1x1x32x32xf32>,
    %402 = vector.extract_strided_slice %77 {offsets = [10, 0, 0], sizes = [1, 16, 32], strides = [1, 1, 1]} : vector<16x16x32xf32> to vector<1x16x32xf32>
    %403 = vector.shape_cast %402 : vector<1x16x32xf32> to vector<16x32xf32>
    %cst_236 = arith.constant 0.354838699 : f32
    %404 = vector.broadcast %cst_236 : f32 to vector<16x32xf32>
    %405 = arith.mulf %404, %403 : vector<16x32xf32>
    %406 = vector.extract_strided_slice %77 {offsets = [11, 0, 0], sizes = [1, 16, 32], strides = [1, 1, 1]} : vector<16x16x32xf32> to vector<1x16x32xf32>
    %407 = vector.shape_cast %406 : vector<1x16x32xf32> to vector<16x32xf32>
    %cst_237 = arith.constant 0.645161271 : f32
    %408 = vector.broadcast %cst_237 : f32 to vector<16x32xf32>
    %409 = arith.mulf %408, %407 : vector<16x32xf32>
    %410 = arith.addf %405, %409 : vector<16x32xf32>
    %cst_238 = arith.constant dense<0.000000e+00> : vector<32x32xf32>
    %411 = tpu.matmul %78, %410, %cst_238 {dimension_numbers = #tpu.dot_dimension_numbers<[1], [0], [0], [1], [0, 0, 1, 1], [], []>} : vector<32x16xf32>, vector<16x32xf32>, vector<32x32xf32> -> vector<32x32xf32>
    %cst_239 = arith.constant 0.000000e+00 : f32
    %412 = vector.broadcast %cst_239 : f32 to vector<32x32xf32>
    %413 = arith.maximumf %411, %412 : vector<32x32xf32>
    %c0_240 = arith.constant 0 : index
    %c22 = arith.constant 22 : index
    %c0_241 = arith.constant 0 : index
    %c0_242 = arith.constant 0 : index
    %414 = vector.load %arg8[%c0_240, %c22, %c0_241, %c0_242] : memref<1x32x32x32xf32, #tpu.memory_space<vmem>>, vector<1x1x32x32xf32>
    %415 = vector.shape_cast %414 : vector<1x1x32x32xf32> to vector<32x32xf32>
    %416 = vector.shape_cast %413 : vector<32x32xf32> to vector<1x1x32x32xf32>
    tpu.vector_store %arg8[%c0_240, %c22, %c0_241, %c0_242], %416 {strides = array<i32>} : memref<1x32x32x32xf32, #tpu.memory_space<vmem>>, vector<1x1x32x32xf32>,
    %417 = vector.extract_strided_slice %77 {offsets = [11, 0, 0], sizes = [1, 16, 32], strides = [1, 1, 1]} : vector<16x16x32xf32> to vector<1x16x32xf32>
    %418 = vector.shape_cast %417 : vector<1x16x32xf32> to vector<16x32xf32>
    %cst_243 = arith.constant 0.870967745 : f32
    %419 = vector.broadcast %cst_243 : f32 to vector<16x32xf32>
    %420 = arith.mulf %419, %418 : vector<16x32xf32>
    %421 = vector.extract_strided_slice %77 {offsets = [12, 0, 0], sizes = [1, 16, 32], strides = [1, 1, 1]} : vector<16x16x32xf32> to vector<1x16x32xf32>
    %422 = vector.shape_cast %421 : vector<1x16x32xf32> to vector<16x32xf32>
    %cst_244 = arith.constant 0.129032254 : f32
    %423 = vector.broadcast %cst_244 : f32 to vector<16x32xf32>
    %424 = arith.mulf %423, %422 : vector<16x32xf32>
    %425 = arith.addf %420, %424 : vector<16x32xf32>
    %cst_245 = arith.constant dense<0.000000e+00> : vector<32x32xf32>
    %426 = tpu.matmul %78, %425, %cst_245 {dimension_numbers = #tpu.dot_dimension_numbers<[1], [0], [0], [1], [0, 0, 1, 1], [], []>} : vector<32x16xf32>, vector<16x32xf32>, vector<32x32xf32> -> vector<32x32xf32>
    %cst_246 = arith.constant 0.000000e+00 : f32
    %427 = vector.broadcast %cst_246 : f32 to vector<32x32xf32>
    %428 = arith.maximumf %426, %427 : vector<32x32xf32>
    %c0_247 = arith.constant 0 : index
    %c23 = arith.constant 23 : index
    %c0_248 = arith.constant 0 : index
    %c0_249 = arith.constant 0 : index
    %429 = vector.load %arg8[%c0_247, %c23, %c0_248, %c0_249] : memref<1x32x32x32xf32, #tpu.memory_space<vmem>>, vector<1x1x32x32xf32>
    %430 = vector.shape_cast %429 : vector<1x1x32x32xf32> to vector<32x32xf32>
    %431 = vector.shape_cast %428 : vector<32x32xf32> to vector<1x1x32x32xf32>
    tpu.vector_store %arg8[%c0_247, %c23, %c0_248, %c0_249], %431 {strides = array<i32>} : memref<1x32x32x32xf32, #tpu.memory_space<vmem>>, vector<1x1x32x32xf32>,
    %432 = vector.extract_strided_slice %77 {offsets = [11, 0, 0], sizes = [1, 16, 32], strides = [1, 1, 1]} : vector<16x16x32xf32> to vector<1x16x32xf32>
    %433 = vector.shape_cast %432 : vector<1x16x32xf32> to vector<16x32xf32>
    %cst_250 = arith.constant 0.387096763 : f32
    %434 = vector.broadcast %cst_250 : f32 to vector<16x32xf32>
    %435 = arith.mulf %434, %433 : vector<16x32xf32>
    %436 = vector.extract_strided_slice %77 {offsets = [12, 0, 0], sizes = [1, 16, 32], strides = [1, 1, 1]} : vector<16x16x32xf32> to vector<1x16x32xf32>
    %437 = vector.shape_cast %436 : vector<1x16x32xf32> to vector<16x32xf32>
    %cst_251 = arith.constant 0.612903237 : f32
    %438 = vector.broadcast %cst_251 : f32 to vector<16x32xf32>
    %439 = arith.mulf %438, %437 : vector<16x32xf32>
    %440 = arith.addf %435, %439 : vector<16x32xf32>
    %cst_252 = arith.constant dense<0.000000e+00> : vector<32x32xf32>
    %441 = tpu.matmul %78, %440, %cst_252 {dimension_numbers = #tpu.dot_dimension_numbers<[1], [0], [0], [1], [0, 0, 1, 1], [], []>} : vector<32x16xf32>, vector<16x32xf32>, vector<32x32xf32> -> vector<32x32xf32>
    %cst_253 = arith.constant 0.000000e+00 : f32
    %442 = vector.broadcast %cst_253 : f32 to vector<32x32xf32>
    %443 = arith.maximumf %441, %442 : vector<32x32xf32>
    %c0_254 = arith.constant 0 : index
    %c24 = arith.constant 24 : index
    %c0_255 = arith.constant 0 : index
    %c0_256 = arith.constant 0 : index
    %444 = vector.load %arg8[%c0_254, %c24, %c0_255, %c0_256] : memref<1x32x32x32xf32, #tpu.memory_space<vmem>>, vector<1x1x32x32xf32>
    %445 = vector.shape_cast %444 : vector<1x1x32x32xf32> to vector<32x32xf32>
    %446 = vector.shape_cast %443 : vector<32x32xf32> to vector<1x1x32x32xf32>
    tpu.vector_store %arg8[%c0_254, %c24, %c0_255, %c0_256], %446 {strides = array<i32>} : memref<1x32x32x32xf32, #tpu.memory_space<vmem>>, vector<1x1x32x32xf32>,
    %447 = vector.extract_strided_slice %77 {offsets = [12, 0, 0], sizes = [1, 16, 32], strides = [1, 1, 1]} : vector<16x16x32xf32> to vector<1x16x32xf32>
    %448 = vector.shape_cast %447 : vector<1x16x32xf32> to vector<16x32xf32>
    %cst_257 = arith.constant 0.903225779 : f32
    %449 = vector.broadcast %cst_257 : f32 to vector<16x32xf32>
    %450 = arith.mulf %449, %448 : vector<16x32xf32>
    %451 = vector.extract_strided_slice %77 {offsets = [13, 0, 0], sizes = [1, 16, 32], strides = [1, 1, 1]} : vector<16x16x32xf32> to vector<1x16x32xf32>
    %452 = vector.shape_cast %451 : vector<1x16x32xf32> to vector<16x32xf32>
    %cst_258 = arith.constant 0.0967741906 : f32
    %453 = vector.broadcast %cst_258 : f32 to vector<16x32xf32>
    %454 = arith.mulf %453, %452 : vector<16x32xf32>
    %455 = arith.addf %450, %454 : vector<16x32xf32>
    %cst_259 = arith.constant dense<0.000000e+00> : vector<32x32xf32>
    %456 = tpu.matmul %78, %455, %cst_259 {dimension_numbers = #tpu.dot_dimension_numbers<[1], [0], [0], [1], [0, 0, 1, 1], [], []>} : vector<32x16xf32>, vector<16x32xf32>, vector<32x32xf32> -> vector<32x32xf32>
    %cst_260 = arith.constant 0.000000e+00 : f32
    %457 = vector.broadcast %cst_260 : f32 to vector<32x32xf32>
    %458 = arith.maximumf %456, %457 : vector<32x32xf32>
    %c0_261 = arith.constant 0 : index
    %c25 = arith.constant 25 : index
    %c0_262 = arith.constant 0 : index
    %c0_263 = arith.constant 0 : index
    %459 = vector.load %arg8[%c0_261, %c25, %c0_262, %c0_263] : memref<1x32x32x32xf32, #tpu.memory_space<vmem>>, vector<1x1x32x32xf32>
    %460 = vector.shape_cast %459 : vector<1x1x32x32xf32> to vector<32x32xf32>
    %461 = vector.shape_cast %458 : vector<32x32xf32> to vector<1x1x32x32xf32>
    tpu.vector_store %arg8[%c0_261, %c25, %c0_262, %c0_263], %461 {strides = array<i32>} : memref<1x32x32x32xf32, #tpu.memory_space<vmem>>, vector<1x1x32x32xf32>,
    %462 = vector.extract_strided_slice %77 {offsets = [12, 0, 0], sizes = [1, 16, 32], strides = [1, 1, 1]} : vector<16x16x32xf32> to vector<1x16x32xf32>
    %463 = vector.shape_cast %462 : vector<1x16x32xf32> to vector<16x32xf32>
    %cst_264 = arith.constant 0.419354826 : f32
    %464 = vector.broadcast %cst_264 : f32 to vector<16x32xf32>
    %465 = arith.mulf %464, %463 : vector<16x32xf32>
    %466 = vector.extract_strided_slice %77 {offsets = [13, 0, 0], sizes = [1, 16, 32], strides = [1, 1, 1]} : vector<16x16x32xf32> to vector<1x16x32xf32>
    %467 = vector.shape_cast %466 : vector<1x16x32xf32> to vector<16x32xf32>
    %cst_265 = arith.constant 0.580645144 : f32
    %468 = vector.broadcast %cst_265 : f32 to vector<16x32xf32>
    %469 = arith.mulf %468, %467 : vector<16x32xf32>
    %470 = arith.addf %465, %469 : vector<16x32xf32>
    %cst_266 = arith.constant dense<0.000000e+00> : vector<32x32xf32>
    %471 = tpu.matmul %78, %470, %cst_266 {dimension_numbers = #tpu.dot_dimension_numbers<[1], [0], [0], [1], [0, 0, 1, 1], [], []>} : vector<32x16xf32>, vector<16x32xf32>, vector<32x32xf32> -> vector<32x32xf32>
    %cst_267 = arith.constant 0.000000e+00 : f32
    %472 = vector.broadcast %cst_267 : f32 to vector<32x32xf32>
    %473 = arith.maximumf %471, %472 : vector<32x32xf32>
    %c0_268 = arith.constant 0 : index
    %c26 = arith.constant 26 : index
    %c0_269 = arith.constant 0 : index
    %c0_270 = arith.constant 0 : index
    %474 = vector.load %arg8[%c0_268, %c26, %c0_269, %c0_270] : memref<1x32x32x32xf32, #tpu.memory_space<vmem>>, vector<1x1x32x32xf32>
    %475 = vector.shape_cast %474 : vector<1x1x32x32xf32> to vector<32x32xf32>
    %476 = vector.shape_cast %473 : vector<32x32xf32> to vector<1x1x32x32xf32>
    tpu.vector_store %arg8[%c0_268, %c26, %c0_269, %c0_270], %476 {strides = array<i32>} : memref<1x32x32x32xf32, #tpu.memory_space<vmem>>, vector<1x1x32x32xf32>,
    %477 = vector.extract_strided_slice %77 {offsets = [13, 0, 0], sizes = [1, 16, 32], strides = [1, 1, 1]} : vector<16x16x32xf32> to vector<1x16x32xf32>
    %478 = vector.shape_cast %477 : vector<1x16x32xf32> to vector<16x32xf32>
    %cst_271 = arith.constant 0.935483872 : f32
    %479 = vector.broadcast %cst_271 : f32 to vector<16x32xf32>
    %480 = arith.mulf %479, %478 : vector<16x32xf32>
    %481 = vector.extract_strided_slice %77 {offsets = [14, 0, 0], sizes = [1, 16, 32], strides = [1, 1, 1]} : vector<16x16x32xf32> to vector<1x16x32xf32>
    %482 = vector.shape_cast %481 : vector<1x16x32xf32> to vector<16x32xf32>
    %cst_272 = arith.constant 0.0645161271 : f32
    %483 = vector.broadcast %cst_272 : f32 to vector<16x32xf32>
    %484 = arith.mulf %483, %482 : vector<16x32xf32>
    %485 = arith.addf %480, %484 : vector<16x32xf32>
    %cst_273 = arith.constant dense<0.000000e+00> : vector<32x32xf32>
    %486 = tpu.matmul %78, %485, %cst_273 {dimension_numbers = #tpu.dot_dimension_numbers<[1], [0], [0], [1], [0, 0, 1, 1], [], []>} : vector<32x16xf32>, vector<16x32xf32>, vector<32x32xf32> -> vector<32x32xf32>
    %cst_274 = arith.constant 0.000000e+00 : f32
    %487 = vector.broadcast %cst_274 : f32 to vector<32x32xf32>
    %488 = arith.maximumf %486, %487 : vector<32x32xf32>
    %c0_275 = arith.constant 0 : index
    %c27 = arith.constant 27 : index
    %c0_276 = arith.constant 0 : index
    %c0_277 = arith.constant 0 : index
    %489 = vector.load %arg8[%c0_275, %c27, %c0_276, %c0_277] : memref<1x32x32x32xf32, #tpu.memory_space<vmem>>, vector<1x1x32x32xf32>
    %490 = vector.shape_cast %489 : vector<1x1x32x32xf32> to vector<32x32xf32>
    %491 = vector.shape_cast %488 : vector<32x32xf32> to vector<1x1x32x32xf32>
    tpu.vector_store %arg8[%c0_275, %c27, %c0_276, %c0_277], %491 {strides = array<i32>} : memref<1x32x32x32xf32, #tpu.memory_space<vmem>>, vector<1x1x32x32xf32>,
    %492 = vector.extract_strided_slice %77 {offsets = [13, 0, 0], sizes = [1, 16, 32], strides = [1, 1, 1]} : vector<16x16x32xf32> to vector<1x16x32xf32>
    %493 = vector.shape_cast %492 : vector<1x16x32xf32> to vector<16x32xf32>
    %cst_278 = arith.constant 0.45161289 : f32
    %494 = vector.broadcast %cst_278 : f32 to vector<16x32xf32>
    %495 = arith.mulf %494, %493 : vector<16x32xf32>
    %496 = vector.extract_strided_slice %77 {offsets = [14, 0, 0], sizes = [1, 16, 32], strides = [1, 1, 1]} : vector<16x16x32xf32> to vector<1x16x32xf32>
    %497 = vector.shape_cast %496 : vector<1x16x32xf32> to vector<16x32xf32>
    %cst_279 = arith.constant 0.54838711 : f32
    %498 = vector.broadcast %cst_279 : f32 to vector<16x32xf32>
    %499 = arith.mulf %498, %497 : vector<16x32xf32>
    %500 = arith.addf %495, %499 : vector<16x32xf32>
    %cst_280 = arith.constant dense<0.000000e+00> : vector<32x32xf32>
    %501 = tpu.matmul %78, %500, %cst_280 {dimension_numbers = #tpu.dot_dimension_numbers<[1], [0], [0], [1], [0, 0, 1, 1], [], []>} : vector<32x16xf32>, vector<16x32xf32>, vector<32x32xf32> -> vector<32x32xf32>
    %cst_281 = arith.constant 0.000000e+00 : f32
    %502 = vector.broadcast %cst_281 : f32 to vector<32x32xf32>
    %503 = arith.maximumf %501, %502 : vector<32x32xf32>
    %c0_282 = arith.constant 0 : index
    %c28 = arith.constant 28 : index
    %c0_283 = arith.constant 0 : index
    %c0_284 = arith.constant 0 : index
    %504 = vector.load %arg8[%c0_282, %c28, %c0_283, %c0_284] : memref<1x32x32x32xf32, #tpu.memory_space<vmem>>, vector<1x1x32x32xf32>
    %505 = vector.shape_cast %504 : vector<1x1x32x32xf32> to vector<32x32xf32>
    %506 = vector.shape_cast %503 : vector<32x32xf32> to vector<1x1x32x32xf32>
    tpu.vector_store %arg8[%c0_282, %c28, %c0_283, %c0_284], %506 {strides = array<i32>} : memref<1x32x32x32xf32, #tpu.memory_space<vmem>>, vector<1x1x32x32xf32>,
    %507 = vector.extract_strided_slice %77 {offsets = [14, 0, 0], sizes = [1, 16, 32], strides = [1, 1, 1]} : vector<16x16x32xf32> to vector<1x16x32xf32>
    %508 = vector.shape_cast %507 : vector<1x16x32xf32> to vector<16x32xf32>
    %cst_285 = arith.constant 0.967741906 : f32
    %509 = vector.broadcast %cst_285 : f32 to vector<16x32xf32>
    %510 = arith.mulf %509, %508 : vector<16x32xf32>
    %511 = vector.extract_strided_slice %77 {offsets = [15, 0, 0], sizes = [1, 16, 32], strides = [1, 1, 1]} : vector<16x16x32xf32> to vector<1x16x32xf32>
    %512 = vector.shape_cast %511 : vector<1x16x32xf32> to vector<16x32xf32>
    %cst_286 = arith.constant 0.0322580636 : f32
    %513 = vector.broadcast %cst_286 : f32 to vector<16x32xf32>
    %514 = arith.mulf %513, %512 : vector<16x32xf32>
    %515 = arith.addf %510, %514 : vector<16x32xf32>
    %cst_287 = arith.constant dense<0.000000e+00> : vector<32x32xf32>
    %516 = tpu.matmul %78, %515, %cst_287 {dimension_numbers = #tpu.dot_dimension_numbers<[1], [0], [0], [1], [0, 0, 1, 1], [], []>} : vector<32x16xf32>, vector<16x32xf32>, vector<32x32xf32> -> vector<32x32xf32>
    %cst_288 = arith.constant 0.000000e+00 : f32
    %517 = vector.broadcast %cst_288 : f32 to vector<32x32xf32>
    %518 = arith.maximumf %516, %517 : vector<32x32xf32>
    %c0_289 = arith.constant 0 : index
    %c29 = arith.constant 29 : index
    %c0_290 = arith.constant 0 : index
    %c0_291 = arith.constant 0 : index
    %519 = vector.load %arg8[%c0_289, %c29, %c0_290, %c0_291] : memref<1x32x32x32xf32, #tpu.memory_space<vmem>>, vector<1x1x32x32xf32>
    %520 = vector.shape_cast %519 : vector<1x1x32x32xf32> to vector<32x32xf32>
    %521 = vector.shape_cast %518 : vector<32x32xf32> to vector<1x1x32x32xf32>
    tpu.vector_store %arg8[%c0_289, %c29, %c0_290, %c0_291], %521 {strides = array<i32>} : memref<1x32x32x32xf32, #tpu.memory_space<vmem>>, vector<1x1x32x32xf32>,
    %522 = vector.extract_strided_slice %77 {offsets = [14, 0, 0], sizes = [1, 16, 32], strides = [1, 1, 1]} : vector<16x16x32xf32> to vector<1x16x32xf32>
    %523 = vector.shape_cast %522 : vector<1x16x32xf32> to vector<16x32xf32>
    %cst_292 = arith.constant 0.483870953 : f32
    %524 = vector.broadcast %cst_292 : f32 to vector<16x32xf32>
    %525 = arith.mulf %524, %523 : vector<16x32xf32>
    %526 = vector.extract_strided_slice %77 {offsets = [15, 0, 0], sizes = [1, 16, 32], strides = [1, 1, 1]} : vector<16x16x32xf32> to vector<1x16x32xf32>
    %527 = vector.shape_cast %526 : vector<1x16x32xf32> to vector<16x32xf32>
    %cst_293 = arith.constant 5.161290e-01 : f32
    %528 = vector.broadcast %cst_293 : f32 to vector<16x32xf32>
    %529 = arith.mulf %528, %527 : vector<16x32xf32>
    %530 = arith.addf %525, %529 : vector<16x32xf32>
    %cst_294 = arith.constant dense<0.000000e+00> : vector<32x32xf32>
    %531 = tpu.matmul %78, %530, %cst_294 {dimension_numbers = #tpu.dot_dimension_numbers<[1], [0], [0], [1], [0, 0, 1, 1], [], []>} : vector<32x16xf32>, vector<16x32xf32>, vector<32x32xf32> -> vector<32x32xf32>
    %cst_295 = arith.constant 0.000000e+00 : f32
    %532 = vector.broadcast %cst_295 : f32 to vector<32x32xf32>
    %533 = arith.maximumf %531, %532 : vector<32x32xf32>
    %c0_296 = arith.constant 0 : index
    %c30 = arith.constant 30 : index
    %c0_297 = arith.constant 0 : index
    %c0_298 = arith.constant 0 : index
    %534 = vector.load %arg8[%c0_296, %c30, %c0_297, %c0_298] : memref<1x32x32x32xf32, #tpu.memory_space<vmem>>, vector<1x1x32x32xf32>
    %535 = vector.shape_cast %534 : vector<1x1x32x32xf32> to vector<32x32xf32>
    %536 = vector.shape_cast %533 : vector<32x32xf32> to vector<1x1x32x32xf32>
    tpu.vector_store %arg8[%c0_296, %c30, %c0_297, %c0_298], %536 {strides = array<i32>} : memref<1x32x32x32xf32, #tpu.memory_space<vmem>>, vector<1x1x32x32xf32>,
    %537 = vector.extract_strided_slice %77 {offsets = [15, 0, 0], sizes = [1, 16, 32], strides = [1, 1, 1]} : vector<16x16x32xf32> to vector<1x16x32xf32>
    %538 = vector.shape_cast %537 : vector<1x16x32xf32> to vector<16x32xf32>
    %cst_299 = arith.constant dense<0.000000e+00> : vector<32x32xf32>
    %539 = tpu.matmul %78, %538, %cst_299 {dimension_numbers = #tpu.dot_dimension_numbers<[1], [0], [0], [1], [0, 0, 1, 1], [], []>} : vector<32x16xf32>, vector<16x32xf32>, vector<32x32xf32> -> vector<32x32xf32>
    %cst_300 = arith.constant 0.000000e+00 : f32
    %540 = vector.broadcast %cst_300 : f32 to vector<32x32xf32>
    %541 = arith.maximumf %539, %540 : vector<32x32xf32>
    %c0_301 = arith.constant 0 : index
    %c31 = arith.constant 31 : index
    %c0_302 = arith.constant 0 : index
    %c0_303 = arith.constant 0 : index
    %542 = vector.load %arg8[%c0_301, %c31, %c0_302, %c0_303] : memref<1x32x32x32xf32, #tpu.memory_space<vmem>>, vector<1x1x32x32xf32>
    %543 = vector.shape_cast %542 : vector<1x1x32x32xf32> to vector<32x32xf32>
    %544 = vector.shape_cast %541 : vector<32x32xf32> to vector<1x1x32x32xf32>
    tpu.vector_store %arg8[%c0_301, %c31, %c0_302, %c0_303], %544 {strides = array<i32>} : memref<1x32x32x32xf32, #tpu.memory_space<vmem>>, vector<1x1x32x32xf32>,
    return
  }
  func.func @transform_0(%arg0: i32) -> (i32, i32, i32, i32) {
    %c0_i32 = arith.constant 0 : i32
    %c0_i32_0 = arith.constant 0 : i32
    %c0_i32_1 = arith.constant 0 : i32
    %c0_i32_2 = arith.constant 0 : i32
    return %arg0, %c0_i32, %c0_i32_0, %c0_i32_1 : i32, i32, i32, i32
  }
  func.func @transform_1(%arg0: i32) -> (i32, i32, i32) {
    %c0_i32 = arith.constant 0 : i32
    %c0_i32_0 = arith.constant 0 : i32
    %c0_i32_1 = arith.constant 0 : i32
    %c0_i32_2 = arith.constant 0 : i32
    return %c0_i32, %c0_i32_0, %c0_i32_1 : i32, i32, i32
  }
  func.func @transform_2(%arg0: i32) -> (i32, i32) {
    %c0_i32 = arith.constant 0 : i32
    %c0_i32_0 = arith.constant 0 : i32
    %c0_i32_1 = arith.constant 0 : i32
    return %c0_i32, %c0_i32_0 : i32, i32
  }
  func.func @transform_3(%arg0: i32) -> (i32, i32) {
    %c0_i32 = arith.constant 0 : i32
    %c0_i32_0 = arith.constant 0 : i32
    %c0_i32_1 = arith.constant 0 : i32
    return %c0_i32, %c0_i32_0 : i32, i32
  }
  func.func @transform_4(%arg0: i32) -> (i32, i32) {
    %c0_i32 = arith.constant 0 : i32
    %c0_i32_0 = arith.constant 0 : i32
    %c0_i32_1 = arith.constant 0 : i32
    return %c0_i32, %c0_i32_0 : i32, i32
  }
  func.func @transform_5(%arg0: i32) -> (i32, i32) {
    %c0_i32 = arith.constant 0 : i32
    %c0_i32_0 = arith.constant 0 : i32
    %c0_i32_1 = arith.constant 0 : i32
    return %c0_i32, %c0_i32_0 : i32, i32
  }
  func.func @transform_6(%arg0: i32) -> (i32, i32) {
    %c0_i32 = arith.constant 0 : i32
    %c0_i32_0 = arith.constant 0 : i32
    %c0_i32_1 = arith.constant 0 : i32
    return %c0_i32, %c0_i32_0 : i32, i32
  }
  func.func @transform_7(%arg0: i32) -> (i32, i32, i32, i32) {
    %c0_i32 = arith.constant 0 : i32
    %c0_i32_0 = arith.constant 0 : i32
    %c0_i32_1 = arith.constant 0 : i32
    %c0_i32_2 = arith.constant 0 : i32
    return %arg0, %c0_i32, %c0_i32_0, %c0_i32_1 : i32, i32, i32, i32
  }
}

</mosaic_0001>

<bundles_post_ra>
// kernel: conv_block_forward.1
= control target key start
LH: loop header
LB: loop body
LE: loop exit
PB: predicated region body
PF: predicated region fallthrough
CT: control target
= control target key end

     0   :  { %s10011_s24 = smov 0   ;;  %s11845_s0 = inlined_call_operand.vmem [shape: f32[2,18,18,4], index: 0, kind: input, shape index: {}]   ;;  %s11846_s1 = inlined_call_operand.vmem [shape: f32[9,4,4], index: 1, kind: input, shape index: {}]   ;;  %s11847_s2 = inlined_call_operand.vmem [shape: f32[1,4], index: 2, kind: input, shape index: {}]   ;;  %s11848_s3 = inlined_call_operand.vmem [shape: f32[1,4], index: 3, kind: input, shape index: {}]   ;;  %s11849_s4 = inlined_call_operand.vmem [shape: f32[4,32], index: 4, kind: input, shape index: {}]   ;;  %s11850_s5 = inlined_call_operand.vmem [shape: f32[1,32], index: 5, kind: input, shape index: {}]   ;;  %s11851_s6 = inlined_call_operand.vmem [shape: f32[32,16], index: 6, kind: input, shape index: {}]   ;;  %s11852_s7 = inlined_call_operand.vmem [shape: f32[2,32,32,32], index: 7, kind: output, shape index: {}]  }
   0x1 LB: > { %s7430_s25 = sadd.s32 4294967295, %s9969_s24   ;;  %p7434_p0 = scmp.ge.s32.totalorder %s9969_s24, 1  ;;  %s9969_s24 = sphi %s10011_s24, %s17_s24  }
   0x2   : > { %p237_p1 = scmp.lt.s32.totalorder %s9969_s24, 3 }
   0x4   : > { %p238_p2 = pnand %p7434_p0, %p237_p1 }
   0x6   : > { %241 = sbr.rel (%p238_p2) target bundleno = 1316 (0x524), region = 48 }
   0xd   : > { %vm443_vm0 = vcmask 1043456   ;;  %v7505_v0 = vld [vmem:[%s11846_s1 + $0x8] sm:$0xf]  ;;  %p269_p3 = scmp.lt.s32.totalorder %s7430_s25, 1  ;;  %v7571_v1 = vld [vmem:[%s11846_s1 + $0xc] sm:$0xf] }
   0xe   : > { %8848 = vmatprep.subr.msk.mxu0 %vm443_vm0, %v7505_v0  ;;  %vm346_vm1 = vcmask 31744   ;;  %v10045_v5 = vld [vmem:[%s11846_s1 + $0x10] sm:$0xf]  ;;  %v10212_v38 = vld [vmem:[%s11846_s1 + $0x14] sm:$0xf]  ;;  %vm4174_vm2 = vcmask 130048  }
   0xf   : > { %8849 = vmatpush3.msk.msra.mxu0 %vm443_vm0, %v7505_v0  ;;  %s11956_s25 = smov (!%p269_p3, %s7430_s25), 1  ;;  %vm4276_vm3 = vcmask 261120  }
  0x10   : > { %8898 = vmatprep.subr.msk.mxu0 %vm443_vm0, %v7571_v1  ;;  %s9952_s30 = smul.u32 432, %s11956_s25  ;;  %s8225_s20 = sshll.u32 %s11956_s25, 10 }
  0x11   : > { %s11531_s23 = scalar_lea.vmem %s11852_s7, %s8225_s20 }
  0x12   : > { %s10034_s10 = scalar_lea.vmem %s11845_s0, %s9952_s30 }
  0x13   : > { %v996_v2 = vld [vmem:[%s10034_s10 + $0x2] sm:$0xff]  ;;  %v997_v3 = vld [vmem:[%s10034_s10 + $0xa] sm:$0xff]  ;;  %v10039_v4 = vld [vmem:[%s10034_s10 + $0x1a] sm:$0xff] }
  0x14   : > { %8850 = vmatprep.mubr.msk.f32.mxu0 %vm346_vm1, %v996_v2  ;;  %v10051_v6 = vld [vmem:[%s10034_s10 + $0x22] sm:$0xff]  ;;  %v10055_v7 = vld [vmem:[%s10034_s10 + $0x32] sm:$0xff]  ;;  %v10064_v8 = vld [vmem:[%s10034_s10 + $0x3a] sm:$0xff] }
  0x15   : > { %8851 = vmatmul.mubr.msk.f32.vlgmr.msra.gmra.mrb[0].mxu0 %vm346_vm1, %v997_v3  ;;  %v10067_v9 = vld [vmem:[%s10034_s10 + $0x4a] sm:$0xff]  ;;  %v10074_v10 = vld [vmem:[%s10034_s10 + $0x52] sm:$0xff]  ;;  %v10077_v11 = vld [vmem:[%s10034_s10 + $0x62] sm:$0xff] }
  0x16   : > { %8853 = vmatprep.mubr.msk.f32.mxu0 %vm346_vm1, %v10039_v4  ;;  %8899 = vmatpush3.msk.msra.mxu0 %vm443_vm0, %v7571_v1  ;;  %v10084_v12 = vld [vmem:[%s10034_s10 + $0x6a] sm:$0xff]  ;;  %v10087_v13 = vld [vmem:[%s10034_s10 + $0x7a] sm:$0xff]  ;;  %v10094_v14 = vld [vmem:[%s10034_s10 + $0x82] sm:$0xff] }
  0x17   : > { %8948 = vmatprep.subr.msk.mxu0 %vm443_vm0, %v10045_v5  ;;  %v10097_v15 = vld [vmem:[%s10034_s10 + $0x92] sm:$0xff]  ;;  %v10104_v16 = vld [vmem:[%s10034_s10 + $0x9a] sm:$0xff]  ;;  %v10107_v17 = vld [vmem:[%s10034_s10 + $0xaa] sm:$0xff] }
  0x18   : > { %v10114_v18 = vld [vmem:[%s10034_s10 + $0xb2] sm:$0xff]  ;;  %v10117_v19 = vld [vmem:[%s10034_s10 + $0xc2] sm:$0xff]  ;;  %v10124_v20 = vld [vmem:[%s10034_s10 + $0xca] sm:$0xff] }
  0x19   : > { %8854 = vmatmul.mubr.msk.f32.gmra.mrb[2].mxu0 %vm346_vm1, %v10051_v6  ;;  %v10127_v21 = vld [vmem:[%s10034_s10 + $0xda] sm:$0xff]  ;;  %v10134_v22 = vld [vmem:[%s10034_s10 + $0xe2] sm:$0xff]  ;;  %v10137_v23 = vld [vmem:[%s10034_s10 + $0xf2] sm:$0xff] }
  0x1a   : > { %8856 = vmatprep.mubr.msk.f32.mxu0 %vm346_vm1, %v10055_v7  ;;  %v10144_v24 = vld [vmem:[%s10034_s10 + $0xfa] sm:$0xff]  ;;  %v10147_v25 = vld [vmem:[%s10034_s10 + $0x10a] sm:$0xff]  ;;  %v10154_v26 = vld [vmem:[%s10034_s10 + $0x112] sm:$0xff] }
  0x1b   : > { %v10157_v27 = vld [vmem:[%s10034_s10 + $0x122] sm:$0xff]  ;;  %v10164_v28 = vld [vmem:[%s10034_s10 + $0x12a] sm:$0xff]  ;;  %v10167_v29 = vld [vmem:[%s10034_s10 + $0x13a] sm:$0xff] }
  0x1c   : > { %v10174_v30 = vld [vmem:[%s10034_s10 + $0x142] sm:$0xff]  ;;  %v10177_v31 = vld [vmem:[%s10034_s10 + $0x152] sm:$0xff]  ;;  %v10184_v32 = vld [vmem:[%s10034_s10 + $0x15a] sm:$0xff] }
  0x1d   : > { %8857 = vmatmul.mubr.msk.f32.gmra.mrb[4].mxu0 %vm346_vm1, %v10064_v8  ;;  %v10187_v33 = vld [vmem:[%s10034_s10 + $0x16a] sm:$0xff]  ;;  %v10194_v34 = vld [vmem:[%s10034_s10 + $0x172] sm:$0xff]  ;;  %v10204_v36 = vld [vmem:[%s10034_s10 + $0x20] sm:$0xff] }
  0x1e   : > { %8859 = vmatprep.mubr.msk.f32.mxu0 %vm346_vm1, %v10067_v9  ;;  %11889 = vst [vmem:[#allocation2_spill] sm:$0xff] %v10194_v34  ;;  %v10197_v35 = vld [vmem:[%s10034_s10 + $0x18] sm:$0xff]  ;;  %v10207_v37 = vld [vmem:[%s10034_s10 + $0x30] sm:$0xff]  ;;  %v10224_v40 = vld [vmem:[%s10034_s10 + $0x48] sm:$0xff] }
  0x1f   : > { %v10219_v39 = vld [vmem:[%s10034_s10 + $0x38] sm:$0xff]  ;;  %v10233_v41 = vld [vmem:[%s10034_s10 + $0x50] sm:$0xff]  ;;  %v10236_v42 = vld [vmem:[%s10034_s10 + $0x60] sm:$0xff] }
  0x20   : > { %v10243_v43 = vld [vmem:[%s10034_s10 + $0x68] sm:$0xff]  ;;  %v10246_v44 = vld [vmem:[%s10034_s10 + $0x78] sm:$0xff]  ;;  %v10253_v45 = vld [vmem:[%s10034_s10 + $0x80] sm:$0xff] }
  0x21   : > { %8860 = vmatmul.mubr.msk.f32.gmra.mrb[6].mxu0 %vm346_vm1, %v10074_v10  ;;  %v10256_v46 = vld [vmem:[%s10034_s10 + $0x90] sm:$0xff]  ;;  %v10263_v47 = vld [vmem:[%s10034_s10 + $0x98] sm:$0xff]  ;;  %v10266_v48 = vld [vmem:[%s10034_s10 + $0xa8] sm:$0xff] }
  0x22   : > { %8862 = vmatprep.mubr.msk.f32.mxu0 %vm346_vm1, %v10077_v11  ;;  %v10273_v49 = vld [vmem:[%s10034_s10 + $0xb0] sm:$0xff]  ;;  %v10276_v50 = vld [vmem:[%s10034_s10 + $0xc0] sm:$0xff]  ;;  %v10283_v51 = vld [vmem:[%s10034_s10 + $0xc8] sm:$0xff] }
  0x23   : > { %v10286_v52 = vld [vmem:[%s10034_s10 + $0xd8] sm:$0xff]  ;;  %v10293_v53 = vld [vmem:[%s10034_s10 + $0xe0] sm:$0xff]  ;;  %v10296_v54 = vld [vmem:[%s10034_s10 + $0xf0] sm:$0xff] }
  0x24   : > { %v10303_v55 = vld [vmem:[%s10034_s10 + $0xf8] sm:$0xff]  ;;  %v10306_v56 = vld [vmem:[%s10034_s10 + $0x108] sm:$0xff]  ;;  %v10313_v57 = vld [vmem:[%s10034_s10 + $0x110] sm:$0xff] }
  0x25   : > { %8863 = vmatmul.mubr.msk.f32.gmra.mrb[8].mxu0 %vm346_vm1, %v10084_v12  ;;  %v10316_v58 = vld [vmem:[%s10034_s10 + $0x120] sm:$0xff]  ;;  %v10323_v59 = vld [vmem:[%s10034_s10 + $0x128] sm:$0xff]  ;;  %v10326_v60 = vld [vmem:[%s10034_s10 + $0x138] sm:$0xff] }
  0x26   : > { %8865 = vmatprep.mubr.msk.f32.mxu0 %vm346_vm1, %v10087_v13  ;;  %v10333_v61 = vld [vmem:[%s10034_s10 + $0x140] sm:$0xff]  ;;  %v10336_v62 = vld [vmem:[%s10034_s10 + $0x150] sm:$0xff]  ;;  %v10343_v63 = vld [vmem:[%s10034_s10 + $0x158] sm:$0xff] }
  0x27   : > { %11890 = vst [vmem:[#allocation3_spill] sm:$0xff] %v10343_v63  ;;  %v10346_v0 = vld [vmem:[%s10034_s10 + $0x168] sm:$0xff]  ;;  %v10353_v1 = vld [vmem:[%s10034_s10 + $0x170] sm:$0xff]  ;;  %v10356_v2 = vld [vmem:[%s10034_s10 + $0x180] sm:$0xff] }
  0x28   : > { %11891 = vst [vmem:[#allocation4_spill] sm:$0xff] %v10346_v0  ;;  %11892 = vst [vmem:[#allocation5_spill] sm:$0xff] %v10353_v1  ;;  %v10363_v3 = vld [vmem:[%s10034_s10 + $0x188] sm:$0xff] }
  0x29   : > { %8866 = vmatmul.mubr.msk.f32.gmra.mrb[10].mxu0 %vm346_vm1, %v10094_v14  ;;  %11893 = vst [vmem:[#allocation6_spill] sm:$0xff] %v10356_v2  ;;  %11894 = vst [vmem:[#allocation7_spill] sm:$0xff] %v10363_v3 }
  0x2a   : > { %8868 = vmatprep.mubr.msk.f32.mxu0 %vm346_vm1, %v10097_v15 }
  0x2d   : > { %8869 = vmatmul.mubr.msk.f32.gmra.mrb[12].mxu0 %vm346_vm1, %v10104_v16 }
  0x2e   : > { %8871 = vmatprep.mubr.msk.f32.mxu0 %vm346_vm1, %v10107_v17 }
  0x31   : > { %8872 = vmatmul.mubr.msk.f32.gmra.mrb[14].mxu0 %vm346_vm1, %v10114_v18 }
  0x32   : > { %8874 = vmatprep.mubr.msk.f32.mxu0 %vm346_vm1, %v10117_v19 }
  0x35   : > { %8875 = vmatmul.mubr.msk.f32.gmra.mrb[16].mxu0 %vm346_vm1, %v10124_v20 }
  0x36   : > { %8877 = vmatprep.mubr.msk.f32.mxu0 %vm346_vm1, %v10127_v21 }
  0x39   : > { %8878 = vmatmul.mubr.msk.f32.gmra.mrb[18].mxu0 %vm346_vm1, %v10134_v22 }
  0x3a   : > { %8880 = vmatprep.mubr.msk.f32.mxu0 %vm346_vm1, %v10137_v23 }
  0x3d   : > { %8881 = vmatmul.mubr.msk.f32.gmra.mrb[20].mxu0 %vm346_vm1, %v10144_v24 }
  0x3e   : > { %8883 = vmatprep.mubr.msk.f32.mxu0 %vm346_vm1, %v10147_v25 }
  0x41   : > { %8884 = vmatmul.mubr.msk.f32.gmra.mrb[22].mxu0 %vm346_vm1, %v10154_v26 }
  0x42   : > { %8886 = vmatprep.mubr.msk.f32.mxu0 %vm346_vm1, %v10157_v27 }
  0x45   : > { %8887 = vmatmul.mubr.msk.f32.gmra.mrb[24].mxu0 %vm346_vm1, %v10164_v28 }
  0x46   : > { %8889 = vmatprep.mubr.msk.f32.mxu0 %vm346_vm1, %v10167_v29 }
  0x49   : > { %8890 = vmatmul.mubr.msk.f32.gmra.mrb[26].mxu0 %vm346_vm1, %v10174_v30 }
  0x4a   : > { %8892 = vmatprep.mubr.msk.f32.mxu0 %vm346_vm1, %v10177_v31 }
  0x4d   : > { %8893 = vmatmul.mubr.msk.f32.gmra.mrb[28].mxu0 %vm346_vm1, %v10184_v32 }
  0x4e   : > { %8895 = vmatprep.mubr.msk.f32.mxu0 %vm346_vm1, %v10187_v33 }
  0x51   : > { %8896 = vmatmul.mubr.msk.f32.gmra.mrb[30].mxu0 %vm346_vm1, %v10194_v34  ;;  %v312_v34 = vld [vmem:[%s10034_s10 + $0x1] sm:$0xff] }
  0x52   : > { %8900 = vmatprep.mubr.msk.f32.mxu0 %vm346_vm1, %v10197_v35  ;;  %8750 = vmatprep.mubr.msk.f32.mxu1 %vm346_vm1, %v312_v34  ;;  %v10397_v34 = vld [vmem:[%s10034_s10 + $0x49] sm:$0xff] }
  0x53   : > { %11896 = vst [vmem:[#allocation9_spill] sm:$0xff] %v10397_v34 }
  0x55   : > { %8901 = vmatmul.mubr.msk.f32.vlgmr.msra.gmra.mrb[0].mxu0 %vm346_vm1, %v10204_v36 }
  0x56   : > { %8903 = vmatprep.mubr.msk.f32.mxu0 %vm346_vm1, %v10207_v37  ;;  %8949 = vmatpush3.msk.msra.mxu0 %vm443_vm0, %v10045_v5  ;;  %v7605_v5 = vld [vmem:[%s10034_s10 + $0x19] sm:$0xff] }
  0x57   : > { %8998 = vmatprep.subr.msk.mxu0 %vm443_vm0, %v10212_v38 }
  0x59   : > { %8904 = vmatmul.mubr.msk.f32.gmra.mrb[2].mxu0 %vm346_vm1, %v10219_v39 }
  0x5a   : > { %8906 = vmatprep.mubr.msk.f32.mxu0 %vm346_vm1, %v10224_v40 }
  0x5d   : > { %8907 = vmatmul.mubr.msk.f32.gmra.mrb[4].mxu0 %vm346_vm1, %v10233_v41 }
  0x5e   : > { %8909 = vmatprep.mubr.msk.f32.mxu0 %vm346_vm1, %v10236_v42 }
  0x61   : > { %8910 = vmatmul.mubr.msk.f32.gmra.mrb[6].mxu0 %vm346_vm1, %v10243_v43 }
  0x62   : > { %8912 = vmatprep.mubr.msk.f32.mxu0 %vm346_vm1, %v10246_v44 }
  0x65   : > { %8913 = vmatmul.mubr.msk.f32.gmra.mrb[8].mxu0 %vm346_vm1, %v10253_v45 }
  0x66   : > { %8915 = vmatprep.mubr.msk.f32.mxu0 %vm346_vm1, %v10256_v46 }
  0x69   : > { %8916 = vmatmul.mubr.msk.f32.gmra.mrb[10].mxu0 %vm346_vm1, %v10263_v47 }
  0x6a   : > { %8918 = vmatprep.mubr.msk.f32.mxu0 %vm346_vm1, %v10266_v48 }
  0x6d   : > { %8919 = vmatmul.mubr.msk.f32.gmra.mrb[12].mxu0 %vm346_vm1, %v10273_v49 }
  0x6e   : > { %8921 = vmatprep.mubr.msk.f32.mxu0 %vm346_vm1, %v10276_v50 }
  0x71   : > { %8922 = vmatmul.mubr.msk.f32.gmra.mrb[14].mxu0 %vm346_vm1, %v10283_v51 }
  0x72   : > { %8924 = vmatprep.mubr.msk.f32.mxu0 %vm346_vm1, %v10286_v52 }
  0x75   : > { %8925 = vmatmul.mubr.msk.f32.gmra.mrb[16].mxu0 %vm346_vm1, %v10293_v53 }
  0x76   : > { %8927 = vmatprep.mubr.msk.f32.mxu0 %vm346_vm1, %v10296_v54 }
  0x79   : > { %8928 = vmatmul.mubr.msk.f32.gmra.mrb[18].mxu0 %vm346_vm1, %v10303_v55 }
  0x7a   : > { %8930 = vmatprep.mubr.msk.f32.mxu0 %vm346_vm1, %v10306_v56 }
  0x7d   : > { %8931 = vmatmul.mubr.msk.f32.gmra.mrb[20].mxu0 %vm346_vm1, %v10313_v57 }
  0x7e   : > { %8933 = vmatprep.mubr.msk.f32.mxu0 %vm346_vm1, %v10316_v58 }
  0x81   : > { %8934 = vmatmul.mubr.msk.f32.gmra.mrb[22].mxu0 %vm346_vm1, %v10323_v59 }
  0x82   : > { %8936 = vmatprep.mubr.msk.f32.mxu0 %vm346_vm1, %v10326_v60 }
  0x85   : > { %8937 = vmatmul.mubr.msk.f32.gmra.mrb[24].mxu0 %vm346_vm1, %v10333_v61 }
  0x86   : > { %8939 = vmatprep.mubr.msk.f32.mxu0 %vm346_vm1, %v10336_v62 }
  0x89   : > { %8940 = vmatmul.mubr.msk.f32.gmra.mrb[26].mxu0 %vm346_vm1, %v10343_v63  ;;  %v7606_v63 = vld [vmem:[%s10034_s10 + $0x21] sm:$0xff] }
  0x8a   : > { %8942 = vmatprep.mubr.msk.f32.mxu0 %vm346_vm1, %v10346_v0  ;;  %v7438_v0 = vld [vmem:[%s11846_s1 + $0x4] sm:$0xf] }
  0x8b   : > { %8748 = vmatprep.subr.msk.mxu1 %vm443_vm0, %v7438_v0 }
  0x8c   : > { %8749 = vmatpush3.msk.msra.mxu1 %vm443_vm0, %v7438_v0  ;;  %v10392_v0 = vld [vmem:[%s10034_s10 + $0x39] sm:$0xff] }
  0x8d   : > { %8943 = vmatmul.mubr.msk.f32.gmra.mrb[28].mxu0 %vm346_vm1, %v10353_v1  ;;  %v313_v1 = vld [vmem:[%s10034_s10 + $0x9] sm:$0xff]  ;;  %11895 = vst [vmem:[#allocation8_spill] sm:$0xff] %v10392_v0 }
  0x8e   : > { %8945 = vmatprep.mubr.msk.f32.mxu0 %vm346_vm1, %v10356_v2  ;;  %v10377_v2 = vld [vmem:[%s10034_s10 + $0x31] sm:$0xff]  ;;  %8751 = vmatmul.mubr.msk.f32.vlgmr.msra.gmra.mrb[0].mxu1 %vm346_vm1, %v313_v1 }
  0x8f   : > { %8753 = vmatprep.mubr.msk.f32.mxu1 %vm346_vm1, %v7605_v5  ;;  %v10409_v1 = vld [vmem:[%s10034_s10 + $0x51] sm:$0xff] }
  0x90   : > { %11897 = vst [vmem:[#allocation10_spill] sm:$0xff] %v10409_v1 }
  0x91   : > { %8946 = vmatmul.mubr.msk.f32.gmra.mrb[30].mxu0 %vm346_vm1, %v10363_v3  ;;  %v10384_v3 = vld [vmem:[%s11846_s1 + $0x18] sm:$0xf] }
  0x92   : > { %8950 = vmatprep.mubr.msk.f32.mxu0 %vm346_vm1, %v7605_v5  ;;  %8754 = vmatmul.mubr.msk.f32.gmra.mrb[2].mxu1 %vm346_vm1, %v7606_v63  ;;  %v10426_v5 = vld [vmem:[%s10034_s10 + $0x79] sm:$0xff] }
  0x93   : > { %8756 = vmatprep.mubr.msk.f32.mxu1 %vm346_vm1, %v10377_v2  ;;  %11900 = vst [vmem:[#allocation13_spill] sm:$0xff] %v10426_v5 }
  0x95   : > { %8951 = vmatmul.mubr.msk.f32.vlgmr.msra.gmra.mrb[0].mxu0 %vm346_vm1, %v7606_v63  ;;  %v10423_v63 = vld [vmem:[%s10034_s10 + $0x69] sm:$0xff] }
  0x96   : > { %8953 = vmatprep.mubr.msk.f32.mxu0 %vm346_vm1, %v10377_v2  ;;  %8999 = vmatpush3.msk.msra.mxu0 %vm443_vm0, %v10212_v38  ;;  %v10412_v38 = vld [vmem:[%s10034_s10 + $0x61] sm:$0xff]  ;;  %11899 = vst [vmem:[#allocation12_spill] sm:$0xff] %v10423_v63 }
  0x97   : > { %9048 = vmatprep.subr.msk.mxu0 %vm443_vm0, %v10384_v3  ;;  %11898 = vst [vmem:[#allocation11_spill] sm:$0xff] %v10412_v38  ;;  %8757 = vmatmul.mubr.msk.f32.gmra.mrb[4].mxu1 %vm346_vm1, %v10392_v0 }
  0x98   : > { %8759 = vmatprep.mubr.msk.f32.mxu1 %vm346_vm1, %v10397_v34 }
  0x99   : > { %8954 = vmatmul.mubr.msk.f32.gmra.mrb[2].mxu0 %vm346_vm1, %v10392_v0  ;;  %v10440_v0 = vld [vmem:[%s10034_s10 + $0x91] sm:$0xff] }
  0x9a   : > { %8956 = vmatprep.mubr.msk.f32.mxu0 %vm346_vm1, %v10397_v34  ;;  %v10437_v34 = vld [vmem:[%s10034_s10 + $0x81] sm:$0xff]  ;;  %11902 = vst [vmem:[#allocation15_spill] sm:$0xff] %v10440_v0 }
  0x9b   : > { %8760 = vmatmul.mubr.msk.f32.gmra.mrb[6].mxu1 %vm346_vm1, %v10409_v1  ;;  %11901 = vst [vmem:[#allocation14_spill] sm:$0xff] %v10437_v34 }
  0x9c   : > { %8762 = vmatprep.mubr.msk.f32.mxu1 %vm346_vm1, %v10412_v38 }
  0x9d   : > { %8957 = vmatmul.mubr.msk.f32.gmra.mrb[4].mxu0 %vm346_vm1, %v10409_v1  ;;  %v10454_v1 = vld [vmem:[%s10034_s10 + $0xa9] sm:$0xff] }
  0x9e   : > { %8959 = vmatprep.mubr.msk.f32.mxu0 %vm346_vm1, %v10412_v38  ;;  %v10451_v38 = vld [vmem:[%s10034_s10 + $0x99] sm:$0xff]  ;;  %11904 = vst [vmem:[#allocation17_spill] sm:$0xff] %v10454_v1 }
  0x9f   : > { %8763 = vmatmul.mubr.msk.f32.gmra.mrb[8].mxu1 %vm346_vm1, %v10423_v63  ;;  %11903 = vst [vmem:[#allocation16_spill] sm:$0xff] %v10451_v38 }
  0xa0   : > { %8765 = vmatprep.mubr.msk.f32.mxu1 %vm346_vm1, %v10426_v5 }
  0xa1   : > { %8960 = vmatmul.mubr.msk.f32.gmra.mrb[6].mxu0 %vm346_vm1, %v10423_v63  ;;  %v10468_v63 = vld [vmem:[%s10034_s10 + $0xc1] sm:$0xff] }
  0xa2   : > { %8962 = vmatprep.mubr.msk.f32.mxu0 %vm346_vm1, %v10426_v5  ;;  %v10465_v5 = vld [vmem:[%s10034_s10 + $0xb1] sm:$0xff]  ;;  %11906 = vst [vmem:[#allocation19_spill] sm:$0xff] %v10468_v63 }
  0xa3   : > { %8766 = vmatmul.mubr.msk.f32.gmra.mrb[10].mxu1 %vm346_vm1, %v10437_v34  ;;  %11905 = vst [vmem:[#allocation18_spill] sm:$0xff] %v10465_v5 }
  0xa4   : > { %8768 = vmatprep.mubr.msk.f32.mxu1 %vm346_vm1, %v10440_v0 }
  0xa5   : > { %8963 = vmatmul.mubr.msk.f32.gmra.mrb[8].mxu0 %vm346_vm1, %v10437_v34  ;;  %v10482_v34 = vld [vmem:[%s10034_s10 + $0xd9] sm:$0xff] }
  0xa6   : > { %8965 = vmatprep.mubr.msk.f32.mxu0 %vm346_vm1, %v10440_v0  ;;  %v10479_v0 = vld [vmem:[%s10034_s10 + $0xc9] sm:$0xff]  ;;  %11908 = vst [vmem:[#allocation21_spill] sm:$0xff] %v10482_v34 }
  0xa7   : > { %8769 = vmatmul.mubr.msk.f32.gmra.mrb[12].mxu1 %vm346_vm1, %v10451_v38  ;;  %11907 = vst [vmem:[#allocation20_spill] sm:$0xff] %v10479_v0 }
  0xa8   : > { %8771 = vmatprep.mubr.msk.f32.mxu1 %vm346_vm1, %v10454_v1 }
  0xa9   : > { %8966 = vmatmul.mubr.msk.f32.gmra.mrb[10].mxu0 %vm346_vm1, %v10451_v38  ;;  %v10496_v38 = vld [vmem:[%s10034_s10 + $0xf1] sm:$0xff] }
  0xaa   : > { %8968 = vmatprep.mubr.msk.f32.mxu0 %vm346_vm1, %v10454_v1  ;;  %v10493_v1 = vld [vmem:[%s10034_s10 + $0xe1] sm:$0xff]  ;;  %11910 = vst [vmem:[#allocation23_spill] sm:$0xff] %v10496_v38 }
  0xab   : > { %8772 = vmatmul.mubr.msk.f32.gmra.mrb[14].mxu1 %vm346_vm1, %v10465_v5  ;;  %11909 = vst [vmem:[#allocation22_spill] sm:$0xff] %v10493_v1 }
  0xac   : > { %8774 = vmatprep.mubr.msk.f32.mxu1 %vm346_vm1, %v10468_v63 }
  0xad   : > { %8969 = vmatmul.mubr.msk.f32.gmra.mrb[12].mxu0 %vm346_vm1, %v10465_v5  ;;  %v10510_v5 = vld [vmem:[%s10034_s10 + $0x109] sm:$0xff] }
  0xae   : > { %8971 = vmatprep.mubr.msk.f32.mxu0 %vm346_vm1, %v10468_v63  ;;  %v10507_v63 = vld [vmem:[%s10034_s10 + $0xf9] sm:$0xff]  ;;  %11912 = vst [vmem:[#allocation25_spill] sm:$0xff] %v10510_v5 }
  0xaf   : > { %8775 = vmatmul.mubr.msk.f32.gmra.mrb[16].mxu1 %vm346_vm1, %v10479_v0  ;;  %11911 = vst [vmem:[#allocation24_spill] sm:$0xff] %v10507_v63 }
  0xb0   : > { %8777 = vmatprep.mubr.msk.f32.mxu1 %vm346_vm1, %v10482_v34 }
  0xb1   : > { %8972 = vmatmul.mubr.msk.f32.gmra.mrb[14].mxu0 %vm346_vm1, %v10479_v0  ;;  %v10524_v0 = vld [vmem:[%s10034_s10 + $0x121] sm:$0xff] }
  0xb2   : > { %8974 = vmatprep.mubr.msk.f32.mxu0 %vm346_vm1, %v10482_v34  ;;  %v10521_v34 = vld [vmem:[%s10034_s10 + $0x111] sm:$0xff]  ;;  %11914 = vst [vmem:[#allocation27_spill] sm:$0xff] %v10524_v0 }
  0xb3   : > { %8778 = vmatmul.mubr.msk.f32.gmra.mrb[18].mxu1 %vm346_vm1, %v10493_v1  ;;  %11913 = vst [vmem:[#allocation26_spill] sm:$0xff] %v10521_v34 }
  0xb4   : > { %8780 = vmatprep.mubr.msk.f32.mxu1 %vm346_vm1, %v10496_v38 }
  0xb5   : > { %8975 = vmatmul.mubr.msk.f32.gmra.mrb[16].mxu0 %vm346_vm1, %v10493_v1  ;;  %v10538_v1 = vld [vmem:[%s10034_s10 + $0x139] sm:$0xff] }
  0xb6   : > { %8977 = vmatprep.mubr.msk.f32.mxu0 %vm346_vm1, %v10496_v38  ;;  %v10535_v38 = vld [vmem:[%s10034_s10 + $0x129] sm:$0xff]  ;;  %11916 = vst [vmem:[#allocation29_spill] sm:$0xff] %v10538_v1 }
  0xb7   : > { %8781 = vmatmul.mubr.msk.f32.gmra.mrb[20].mxu1 %vm346_vm1, %v10507_v63  ;;  %11915 = vst [vmem:[#allocation28_spill] sm:$0xff] %v10535_v38 }
  0xb8   : > { %8783 = vmatprep.mubr.msk.f32.mxu1 %vm346_vm1, %v10510_v5 }
  0xb9   : > { %8978 = vmatmul.mubr.msk.f32.gmra.mrb[18].mxu0 %vm346_vm1, %v10507_v63  ;;  %v10552_v63 = vld [vmem:[%s10034_s10 + $0x151] sm:$0xff] }
  0xba   : > { %8980 = vmatprep.mubr.msk.f32.mxu0 %vm346_vm1, %v10510_v5  ;;  %v10549_v5 = vld [vmem:[%s10034_s10 + $0x141] sm:$0xff]  ;;  %11918 = vst [vmem:[#allocation31_spill] sm:$0xff] %v10552_v63 }
  0xbb   : > { %8784 = vmatmul.mubr.msk.f32.gmra.mrb[22].mxu1 %vm346_vm1, %v10521_v34  ;;  %11917 = vst [vmem:[#allocation30_spill] sm:$0xff] %v10549_v5 }
  0xbc   : > { %8786 = vmatprep.mubr.msk.f32.mxu1 %vm346_vm1, %v10524_v0 }
  0xbd   : > { %8981 = vmatmul.mubr.msk.f32.gmra.mrb[20].mxu0 %vm346_vm1, %v10521_v34  ;;  %v10566_v34 = vld [vmem:[%s10034_s10 + $0x169] sm:$0xff] }
  0xbe   : > { %8983 = vmatprep.mubr.msk.f32.mxu0 %vm346_vm1, %v10524_v0  ;;  %v10563_v0 = vld [vmem:[%s10034_s10 + $0x159] sm:$0xff]  ;;  %11920 = vst [vmem:[#allocation33_spill] sm:$0xff] %v10566_v34 }
  0xbf   : > { %8787 = vmatmul.mubr.msk.f32.gmra.mrb[24].mxu1 %vm346_vm1, %v10535_v38  ;;  %11919 = vst [vmem:[#allocation32_spill] sm:$0xff] %v10563_v0 }
  0xc0   : > { %8789 = vmatprep.mubr.msk.f32.mxu1 %vm346_vm1, %v10538_v1 }
  0xc1   : > { %8984 = vmatmul.mubr.msk.f32.gmra.mrb[22].mxu0 %vm346_vm1, %v10535_v38  ;;  %v10580_v38 = vld [vmem:[%s10034_s10 + $0x181] sm:$0xff] }
  0xc2   : > { %8986 = vmatprep.mubr.msk.f32.mxu0 %vm346_vm1, %v10538_v1  ;;  %v10577_v1 = vld [vmem:[%s10034_s10 + $0x171] sm:$0xff]  ;;  %11921 = vst [vmem:[#allocation34_spill] sm:$0xff] %v10580_v38 }
  0xc3   : > { %8790 = vmatmul.mubr.msk.f32.gmra.mrb[26].mxu1 %vm346_vm1, %v10549_v5 }
  0xc4   : > { %8792 = vmatprep.mubr.msk.f32.mxu1 %vm346_vm1, %v10552_v63 }
  0xc5   : > { %8987 = vmatmul.mubr.msk.f32.gmra.mrb[24].mxu0 %vm346_vm1, %v10549_v5  ;;  %v279_v5 = vld [vmem:[%s10034_s10] sm:$0xff] }
  0xc6   : > { %8989 = vmatprep.mubr.msk.f32.mxu0 %vm346_vm1, %v10552_v63  ;;  %v10591_v63 = vld [vmem:[%s10034_s10 + $0x189] sm:$0xff] }
  0xc7   : > { %8793 = vmatmul.mubr.msk.f32.gmra.mrb[28].mxu1 %vm346_vm1, %v10563_v0 }
  0xc8   : > { %8795 = vmatprep.mubr.msk.f32.mxu1 %vm346_vm1, %v10566_v34 }
  0xc9   : > { %8990 = vmatmul.mubr.msk.f32.gmra.mrb[26].mxu0 %vm346_vm1, %v10563_v0  ;;  %v311_v0 = vld [vmem:[%s11846_s1] sm:$0xf] }
  0xca   : > { %8992 = vmatprep.mubr.msk.f32.mxu0 %vm346_vm1, %v10566_v34  ;;  %8798 = vmatprep.subr.msk.mxu1 %vm443_vm0, %v311_v0  ;;  %v280_v34 = vld [vmem:[%s10034_s10 + $0x8] sm:$0xff] }
  0xcb   : > { %8796 = vmatmul.mubr.msk.f32.gmra.mrb[30].mxu1 %vm346_vm1, %v10577_v1 }
  0xcc   : > { %8799 = vmatpush3.msk.msra.mxu1 %vm443_vm0, %v311_v0  ;;  %8800 = vmatprep.mubr.msk.f32.mxu1 %vm346_vm1, %v279_v5  ;;  %v7886_v5 = vld [vmem:[%s10034_s10 + $0xfa] sm:$0xff] }
  0xcd   : > { %8993 = vmatmul.mubr.msk.f32.gmra.mrb[28].mxu0 %vm346_vm1, %v10577_v1 }
  0xce   : > { %8995 = vmatprep.mubr.msk.f32.mxu0 %vm346_vm1, %v10580_v38  ;;  %v10610_v38 = vld [vmem:[%s11846_s1 + $0x1c] sm:$0xf] }
  0xcf   : > { %8801 = vmatmul.mubr.msk.f32.vlgmr.msra.gmra.mrb[0].mxu1 %vm346_vm1, %v280_v34  ;;  %v7884_v34 = vld [vmem:[%s10034_s10 + $0xe2] sm:$0xff] }
  0xd0   : > { %8803 = vmatprep.mubr.msk.f32.mxu1 %vm346_vm1, %v10197_v35  ;;  %v11946_v35 = vld [vmem:[#allocation26_spill] sm:$0xff] }
  0xd1   : > { %8996 = vmatmul.mubr.msk.f32.gmra.mrb[30].mxu0 %vm346_vm1, %v10591_v63 }
  0xd2   : > { %9000 = vmatprep.mubr.msk.f32.mxu0 %vm346_vm1, %v10039_v4  ;;  %v10728_v4 = vld [vmem:[%s10034_s10 + $0x182] sm:$0xff] }
  0xd3   : > { %8804 = vmatmul.mubr.msk.f32.gmra.mrb[2].mxu1 %vm346_vm1, %v10204_v36  ;;  %v11947_v36 = vld [vmem:[#allocation27_spill] sm:$0xff] }
  0xd4   : > { %8806 = vmatprep.mubr.msk.f32.mxu1 %vm346_vm1, %v10207_v37 }
  0xd5   : > { %9001 = vmatmul.mubr.msk.f32.vlgmr.msra.gmra.mrb[0].mxu0 %vm346_vm1, %v10051_v6  ;;  %v11922_v6 = vld [vmem:[#allocation3_spill] sm:$0xff] }
  0xd6   : > { %9003 = vmatprep.mubr.msk.f32.mxu0 %vm346_vm1, %v10055_v7  ;;  %9049 = vmatpush3.msk.msra.mxu0 %vm443_vm0, %v10384_v3  ;;  %v11923_v7 = vld [vmem:[#allocation2_spill] sm:$0xff] }
  0xd7   : > { %9098 = vmatprep.subr.msk.mxu0 %vm443_vm0, %v10610_v38  ;;  %8807 = vmatmul.mubr.msk.f32.gmra.mrb[4].mxu1 %vm346_vm1, %v10219_v39 }
  0xd8   : > { %8809 = vmatprep.mubr.msk.f32.mxu1 %vm346_vm1, %v10224_v40 }
  0xd9   : > { %9004 = vmatmul.mubr.msk.f32.gmra.mrb[2].mxu0 %vm346_vm1, %v10064_v8  ;;  %v11924_v8 = vld [vmem:[#allocation4_spill] sm:$0xff] }
  0xda   : > { %9006 = vmatprep.mubr.msk.f32.mxu0 %vm346_vm1, %v10067_v9  ;;  %v10739_v9 = vld [vmem:[%s10034_s10 + $0x18a] sm:$0xff] }
  0xdb   : > { %8810 = vmatmul.mubr.msk.f32.gmra.mrb[6].mxu1 %vm346_vm1, %v10233_v41 }
  0xdc   : > { %8812 = vmatprep.mubr.msk.f32.mxu1 %vm346_vm1, %v10236_v42 }
  0xdd   : > { %9007 = vmatmul.mubr.msk.f32.gmra.mrb[4].mxu0 %vm346_vm1, %v10074_v10  ;;  %v11925_v10 = vld [vmem:[#allocation5_spill] sm:$0xff] }
  0xde   : > { %9009 = vmatprep.mubr.msk.f32.mxu0 %vm346_vm1, %v10077_v11  ;;  %v7901_v11 = vld [vmem:[%s11846_s1 + $0x20] sm:$0xf] }
  0xdf   : > { %8813 = vmatmul.mubr.msk.f32.gmra.mrb[8].mxu1 %vm346_vm1, %v10243_v43 }
  0xe0   : > { %8815 = vmatprep.mubr.msk.f32.mxu1 %vm346_vm1, %v10246_v44 }
  0xe1   : > { %9010 = vmatmul.mubr.msk.f32.gmra.mrb[6].mxu0 %vm346_vm1, %v10084_v12  ;;  %v11926_v12 = vld [vmem:[#allocation6_spill] sm:$0xff] }
  0xe2   : > { %9012 = vmatprep.mubr.msk.f32.mxu0 %vm346_vm1, %v10087_v13  ;;  %v7767_v13 = vld [vmem:[%s10034_s10 + $0x198] sm:$0xff] }
  0xe3   : > { %8816 = vmatmul.mubr.msk.f32.gmra.mrb[10].mxu1 %vm346_vm1, %v10253_v45 }
  0xe4   : > { %8818 = vmatprep.mubr.msk.f32.mxu1 %vm346_vm1, %v10256_v46 }
  0xe5   : > { %9013 = vmatmul.mubr.msk.f32.gmra.mrb[8].mxu0 %vm346_vm1, %v10094_v14  ;;  %v11927_v14 = vld [vmem:[#allocation7_spill] sm:$0xff] }
  0xe6   : > { %9015 = vmatprep.mubr.msk.f32.mxu0 %vm346_vm1, %v10097_v15  ;;  %v7768_v15 = vld [vmem:[%s10034_s10 + $0x1a0] sm:$0xff] }
  0xe7   : > { %8819 = vmatmul.mubr.msk.f32.gmra.mrb[12].mxu1 %vm346_vm1, %v10263_v47 }
  0xe8   : > { %8821 = vmatprep.mubr.msk.f32.mxu1 %vm346_vm1, %v10266_v48 }
  0xe9   : > { %9016 = vmatmul.mubr.msk.f32.gmra.mrb[10].mxu0 %vm346_vm1, %v10104_v16  ;;  %v11928_v16 = vld [vmem:[#allocation8_spill] sm:$0xff] }
  0xea   : > { %9018 = vmatprep.mubr.msk.f32.mxu0 %vm346_vm1, %v10107_v17  ;;  %v11929_v17 = vld [vmem:[#allocation9_spill] sm:$0xff] }
  0xeb   : > { %8822 = vmatmul.mubr.msk.f32.gmra.mrb[14].mxu1 %vm346_vm1, %v10273_v49 }
  0xec   : > { %8824 = vmatprep.mubr.msk.f32.mxu1 %vm346_vm1, %v10276_v50 }
  0xed   : > { %9019 = vmatmul.mubr.msk.f32.gmra.mrb[12].mxu0 %vm346_vm1, %v10114_v18  ;;  %v11930_v18 = vld [vmem:[#allocation10_spill] sm:$0xff] }
  0xee   : > { %9021 = vmatprep.mubr.msk.f32.mxu0 %vm346_vm1, %v10117_v19  ;;  %v11931_v19 = vld [vmem:[#allocation11_spill] sm:$0xff] }
  0xef   : > { %8825 = vmatmul.mubr.msk.f32.gmra.mrb[16].mxu1 %vm346_vm1, %v10283_v51 }
  0xf0   : > { %8827 = vmatprep.mubr.msk.f32.mxu1 %vm346_vm1, %v10286_v52 }
  0xf1   : > { %9022 = vmatmul.mubr.msk.f32.gmra.mrb[14].mxu0 %vm346_vm1, %v10124_v20  ;;  %v11932_v20 = vld [vmem:[#allocation12_spill] sm:$0xff] }
  0xf2   : > { %9024 = vmatprep.mubr.msk.f32.mxu0 %vm346_vm1, %v10127_v21  ;;  %v11933_v21 = vld [vmem:[#allocation13_spill] sm:$0xff] }
  0xf3   : > { %8828 = vmatmul.mubr.msk.f32.gmra.mrb[18].mxu1 %vm346_vm1, %v10293_v53 }
  0xf4   : > { %8830 = vmatprep.mubr.msk.f32.mxu1 %vm346_vm1, %v10296_v54 }
  0xf5   : > { %9025 = vmatmul.mubr.msk.f32.gmra.mrb[16].mxu0 %vm346_vm1, %v10134_v22  ;;  %v11934_v22 = vld [vmem:[#allocation14_spill] sm:$0xff] }
  0xf6   : > { %9027 = vmatprep.mubr.msk.f32.mxu0 %vm346_vm1, %v10137_v23  ;;  %v11935_v23 = vld [vmem:[#allocation15_spill] sm:$0xff] }
  0xf7   : > { %8831 = vmatmul.mubr.msk.f32.gmra.mrb[20].mxu1 %vm346_vm1, %v10303_v55 }
  0xf8   : > { %8833 = vmatprep.mubr.msk.f32.mxu1 %vm346_vm1, %v10306_v56 }
  0xf9   : > { %9028 = vmatmul.mubr.msk.f32.gmra.mrb[18].mxu0 %vm346_vm1, %v10144_v24  ;;  %v11936_v24 = vld [vmem:[#allocation16_spill] sm:$0xff] }
  0xfa   : > { %9030 = vmatprep.mubr.msk.f32.mxu0 %vm346_vm1, %v10147_v25  ;;  %v11937_v25 = vld [vmem:[#allocation17_spill] sm:$0xff] }
  0xfb   : > { %8834 = vmatmul.mubr.msk.f32.gmra.mrb[22].mxu1 %vm346_vm1, %v10313_v57 }
  0xfc   : > { %8836 = vmatprep.mubr.msk.f32.mxu1 %vm346_vm1, %v10316_v58 }
  0xfd   : > { %9031 = vmatmul.mubr.msk.f32.gmra.mrb[20].mxu0 %vm346_vm1, %v10154_v26  ;;  %v11938_v26 = vld [vmem:[#allocation18_spill] sm:$0xff] }
  0xfe   : > { %9033 = vmatprep.mubr.msk.f32.mxu0 %vm346_vm1, %v10157_v27  ;;  %v11939_v27 = vld [vmem:[#allocation19_spill] sm:$0xff] }
  0xff   : > { %8837 = vmatmul.mubr.msk.f32.gmra.mrb[24].mxu1 %vm346_vm1, %v10323_v59 }
 0x100   : > { %8839 = vmatprep.mubr.msk.f32.mxu1 %vm346_vm1, %v10326_v60 }
 0x101   : > { %9034 = vmatmul.mubr.msk.f32.gmra.mrb[22].mxu0 %vm346_vm1, %v10164_v28  ;;  %v11940_v28 = vld [vmem:[#allocation20_spill] sm:$0xff] }
 0x102   : > { %9036 = vmatprep.mubr.msk.f32.mxu0 %vm346_vm1, %v10167_v29  ;;  %v11941_v29 = vld [vmem:[#allocation21_spill] sm:$0xff] }
 0x103   : > { %8840 = vmatmul.mubr.msk.f32.gmra.mrb[26].mxu1 %vm346_vm1, %v10333_v61 }
 0x104   : > { %8842 = vmatprep.mubr.msk.f32.mxu1 %vm346_vm1, %v10336_v62 }
 0x105   : > { %9037 = vmatmul.mubr.msk.f32.gmra.mrb[24].mxu0 %vm346_vm1, %v10174_v30  ;;  %v11942_v30 = vld [vmem:[#allocation22_spill] sm:$0xff] }
 0x106   : > { %9039 = vmatprep.mubr.msk.f32.mxu0 %vm346_vm1, %v10177_v31  ;;  %v11943_v31 = vld [vmem:[#allocation23_spill] sm:$0xff] }
 0x107   : > { %8843 = vmatmul.mubr.msk.f32.gmra.mrb[28].mxu1 %vm346_vm1, %v11922_v6 }
 0x108   : > { %8845 = vmatprep.mubr.msk.f32.mxu1 %vm346_vm1, %v11924_v8 }
 0x109   : > { %9040 = vmatmul.mubr.msk.f32.gmra.mrb[26].mxu0 %vm346_vm1, %v10184_v32  ;;  %v11944_v32 = vld [vmem:[#allocation24_spill] sm:$0xff] }
 0x10a   : > { %9042 = vmatprep.mubr.msk.f32.mxu0 %vm346_vm1, %v10187_v33  ;;  %v11945_v33 = vld [vmem:[#allocation25_spill] sm:$0xff] }
 0x10b   : > { %8846 = vmatmul.mubr.msk.f32.gmra.mrb[30].mxu1 %vm346_vm1, %v11925_v10 }
 0x10d   : > { %9043 = vmatmul.mubr.msk.f32.gmra.mrb[28].mxu0 %vm346_vm1, %v11923_v7 }
 0x10e   : > { %9045 = vmatprep.mubr.msk.f32.mxu0 %vm346_vm1, %v10728_v4 }
 0x111   : > { %9046 = vmatmul.mubr.msk.f32.gmra.mrb[30].mxu0 %vm346_vm1, %v10739_v9 }
 0x112   : > { %9050 = vmatprep.mubr.msk.f32.mxu0 %vm346_vm1, %v10207_v37  ;;  %v11948_v37 = vld [vmem:[#allocation28_spill] sm:$0xff] }
 0x115   : > { %9051 = vmatmul.mubr.msk.f32.vlgmr.msra.gmra.mrb[0].mxu0 %vm346_vm1, %v10219_v39  ;;  %v11949_v39 = vld [vmem:[#allocation29_spill] sm:$0xff] }
 0x116   : > { %9053 = vmatprep.mubr.msk.f32.mxu0 %vm346_vm1, %v10224_v40  ;;  %9099 = vmatpush3.msk.msra.mxu0 %vm443_vm0, %v10610_v38  ;;  %v11950_v40 = vld [vmem:[#allocation30_spill] sm:$0xff] }
 0x117   : > { %9148 = vmatprep.subr.msk.mxu0 %vm443_vm0, %v7901_v11 }
 0x119   : > { %9054 = vmatmul.mubr.msk.f32.gmra.mrb[2].mxu0 %vm346_vm1, %v10233_v41  ;;  %v11951_v41 = vld [vmem:[#allocation31_spill] sm:$0xff] }
 0x11a   : > { %9056 = vmatprep.mubr.msk.f32.mxu0 %vm346_vm1, %v10236_v42  ;;  %v11952_v42 = vld [vmem:[#allocation32_spill] sm:$0xff] }
 0x11d   : > { %9057 = vmatmul.mubr.msk.f32.gmra.mrb[4].mxu0 %vm346_vm1, %v10243_v43  ;;  %v11953_v43 = vld [vmem:[#allocation33_spill] sm:$0xff] }
 0x11e   : > { %9059 = vmatprep.mubr.msk.f32.mxu0 %vm346_vm1, %v10246_v44  ;;  %v11954_v44 = vld [vmem:[#allocation34_spill] sm:$0xff] }
 0x121   : > { %9060 = vmatmul.mubr.msk.f32.gmra.mrb[6].mxu0 %vm346_vm1, %v10253_v45  ;;  %v7833_v45 = vld [vmem:[%s10034_s10 + $0x199] sm:$0xff] }
 0x122   : > { %9062 = vmatprep.mubr.msk.f32.mxu0 %vm346_vm1, %v10256_v46  ;;  %v7834_v46 = vld [vmem:[%s10034_s10 + $0x1a1] sm:$0xff] }
 0x125   : > { %9063 = vmatmul.mubr.msk.f32.gmra.mrb[8].mxu0 %vm346_vm1, %v10263_v47  ;;  %v7869_v47 = vld [vmem:[%s10034_s10 + $0x32] sm:$0xff] }
 0x126   : > { %9065 = vmatprep.mubr.msk.f32.mxu0 %vm346_vm1, %v10266_v48  ;;  %v7870_v48 = vld [vmem:[%s10034_s10 + $0x3a] sm:$0xff] }
 0x129   : > { %9066 = vmatmul.mubr.msk.f32.gmra.mrb[10].mxu0 %vm346_vm1, %v10273_v49  ;;  %v7871_v49 = vld [vmem:[%s10034_s10 + $0x4a] sm:$0xff] }
 0x12a   : > { %9068 = vmatprep.mubr.msk.f32.mxu0 %vm346_vm1, %v10276_v50  ;;  %v7872_v50 = vld [vmem:[%s10034_s10 + $0x52] sm:$0xff] }
 0x12d   : > { %9069 = vmatmul.mubr.msk.f32.gmra.mrb[12].mxu0 %vm346_vm1, %v10283_v51  ;;  %v7873_v51 = vld [vmem:[%s10034_s10 + $0x62] sm:$0xff] }
 0x12e   : > { %9071 = vmatprep.mubr.msk.f32.mxu0 %vm346_vm1, %v10286_v52  ;;  %v7874_v52 = vld [vmem:[%s10034_s10 + $0x6a] sm:$0xff] }
 0x131   : > { %9072 = vmatmul.mubr.msk.f32.gmra.mrb[14].mxu0 %vm346_vm1, %v10293_v53  ;;  %v7875_v53 = vld [vmem:[%s10034_s10 + $0x7a] sm:$0xff] }
 0x132   : > { %9074 = vmatprep.mubr.msk.f32.mxu0 %vm346_vm1, %v10296_v54  ;;  %v7876_v54 = vld [vmem:[%s10034_s10 + $0x82] sm:$0xff] }
 0x135   : > { %9075 = vmatmul.mubr.msk.f32.gmra.mrb[16].mxu0 %vm346_vm1, %v10303_v55  ;;  %v7877_v55 = vld [vmem:[%s10034_s10 + $0x92] sm:$0xff] }
 0x136   : > { %9077 = vmatprep.mubr.msk.f32.mxu0 %vm346_vm1, %v10306_v56  ;;  %v7878_v56 = vld [vmem:[%s10034_s10 + $0x9a] sm:$0xff] }
 0x139   : > { %9078 = vmatmul.mubr.msk.f32.gmra.mrb[18].mxu0 %vm346_vm1, %v10313_v57  ;;  %v7879_v57 = vld [vmem:[%s10034_s10 + $0xaa] sm:$0xff] }
 0x13a   : > { %9080 = vmatprep.mubr.msk.f32.mxu0 %vm346_vm1, %v10316_v58  ;;  %v7880_v58 = vld [vmem:[%s10034_s10 + $0xb2] sm:$0xff] }
 0x13d   : > { %9081 = vmatmul.mubr.msk.f32.gmra.mrb[20].mxu0 %vm346_vm1, %v10323_v59  ;;  %v7881_v59 = vld [vmem:[%s10034_s10 + $0xc2] sm:$0xff] }
 0x13e   : > { %9083 = vmatprep.mubr.msk.f32.mxu0 %vm346_vm1, %v10326_v60 }
 0x141   : > { %9084 = vmatmul.mubr.msk.f32.gmra.mrb[22].mxu0 %vm346_vm1, %v10333_v61 }
 0x142   : > { %9086 = vmatprep.mubr.msk.f32.mxu0 %vm346_vm1, %v10336_v62  ;;  %v7882_v62 = vld [vmem:[%s10034_s10 + $0xca] sm:$0xff] }
 0x145   : > { %9087 = vmatmul.mubr.msk.f32.gmra.mrb[24].mxu0 %vm346_vm1, %v11922_v6  ;;  %v7887_v6 = vld [vmem:[%s10034_s10 + $0x10a] sm:$0xff] }
 0x146   : > { %9089 = vmatprep.mubr.msk.f32.mxu0 %vm346_vm1, %v11924_v8 }
 0x149   : > { %9090 = vmatmul.mubr.msk.f32.gmra.mrb[26].mxu0 %vm346_vm1, %v11925_v10  ;;  %v7888_v10 = vld [vmem:[%s10034_s10 + $0x112] sm:$0xff] }
 0x14a   : > { %9092 = vmatprep.mubr.msk.f32.mxu0 %vm346_vm1, %v11926_v12 }
 0x14d   : > { %9093 = vmatmul.mubr.msk.f32.gmra.mrb[28].mxu0 %vm346_vm1, %v11927_v14  ;;  %v7890_v14 = vld [vmem:[%s10034_s10 + $0x12a] sm:$0xff] }
 0x14e   : > { %9095 = vmatprep.mubr.msk.f32.mxu0 %vm346_vm1, %v7767_v13 }
 0x151   : > { %9096 = vmatmul.mubr.msk.f32.gmra.mrb[30].mxu0 %vm346_vm1, %v7768_v15  ;;  %v7891_v15 = vld [vmem:[%s10034_s10 + $0x13a] sm:$0xff] }
 0x152   : > { %9100 = vmatprep.mubr.msk.f32.mxu0 %vm346_vm1, %v10377_v2  ;;  %v7883_v2 = vld [vmem:[%s10034_s10 + $0xda] sm:$0xff] }
 0x155   : > { %9101 = vmatmul.mubr.msk.f32.vlgmr.msra.gmra.mrb[0].mxu0 %vm346_vm1, %v11928_v16 }
 0x156   : > { %9103 = vmatprep.mubr.msk.f32.mxu0 %vm346_vm1, %v11929_v17  ;;  %9149 = vmatpush3.msk.msra.mxu0 %vm443_vm0, %v7901_v11  ;;  %v7889_v11 = vld [vmem:[%s10034_s10 + $0x122] sm:$0xff] }
 0x159   : > { %9104 = vmatmul.mubr.msk.f32.gmra.mrb[2].mxu0 %vm346_vm1, %v11930_v18  ;;  %v7892_v18 = vld [vmem:[%s10034_s10 + $0x142] sm:$0xff] }
 0x15a   : > { %9106 = vmatprep.mubr.msk.f32.mxu0 %vm346_vm1, %v11931_v19  ;;  %v7893_v19 = vld [vmem:[%s10034_s10 + $0x152] sm:$0xff] }
 0x15d   : > { %9107 = vmatmul.mubr.msk.f32.gmra.mrb[4].mxu0 %vm346_vm1, %v11932_v20 }
 0x15e   : > { %9109 = vmatprep.mubr.msk.f32.mxu0 %vm346_vm1, %v11933_v21 }
 0x161   : > { %9110 = vmatmul.mubr.msk.f32.gmra.mrb[6].mxu0 %vm346_vm1, %v11934_v22  ;;  %v7894_v22 = vld [vmem:[%s10034_s10 + $0x15a] sm:$0xff] }
 0x162   : > { %9112 = vmatprep.mubr.msk.f32.mxu0 %vm346_vm1, %v11935_v23  ;;  %v7895_v23 = vld [vmem:[%s10034_s10 + $0x16a] sm:$0xff] }
 0x165   : > { %9113 = vmatmul.mubr.msk.f32.gmra.mrb[8].mxu0 %vm346_vm1, %v11936_v24 }
 0x166   : > { %9115 = vmatprep.mubr.msk.f32.mxu0 %vm346_vm1, %v11937_v25 }
 0x169   : > { %9116 = vmatmul.mubr.msk.f32.gmra.mrb[10].mxu0 %vm346_vm1, %v11938_v26  ;;  %v7896_v26 = vld [vmem:[%s10034_s10 + $0x172] sm:$0xff] }
 0x16a   : > { %9118 = vmatprep.mubr.msk.f32.mxu0 %vm346_vm1, %v11939_v27 }
 0x16d   : > { %9119 = vmatmul.mubr.msk.f32.gmra.mrb[12].mxu0 %vm346_vm1, %v11940_v28 }
 0x16e   : > { %9121 = vmatprep.mubr.msk.f32.mxu0 %vm346_vm1, %v11941_v29  ;;  %v7899_v29 = vld [vmem:[%s10034_s10 + $0x19a] sm:$0xff] }
 0x171   : > { %9122 = vmatmul.mubr.msk.f32.gmra.mrb[14].mxu0 %vm346_vm1, %v11942_v30 }
 0x172   : > { %9124 = vmatprep.mubr.msk.f32.mxu0 %vm346_vm1, %v11943_v31 }
 0x175   : > { %9125 = vmatmul.mubr.msk.f32.gmra.mrb[16].mxu0 %vm346_vm1, %v11944_v32  ;;  %v7900_v32 = vld [vmem:[%s10034_s10 + $0x1a2] sm:$0xff] }
 0x176   : > { %9127 = vmatprep.mubr.msk.f32.mxu0 %vm346_vm1, %v11945_v33 }
 0x179   : > { %9128 = vmatmul.mubr.msk.f32.gmra.mrb[18].mxu0 %vm346_vm1, %v11946_v35 }
 0x17a   : > { %9130 = vmatprep.mubr.msk.f32.mxu0 %vm346_vm1, %v11947_v36 }
 0x17d   : > { %9131 = vmatmul.mubr.msk.f32.gmra.mrb[20].mxu0 %vm346_vm1, %v11948_v37 }
 0x17e   : > { %9133 = vmatprep.mubr.msk.f32.mxu0 %vm346_vm1, %v11949_v39 }
 0x181   : > { %9134 = vmatmul.mubr.msk.f32.gmra.mrb[22].mxu0 %vm346_vm1, %v11950_v40 }
 0x182   : > { %9136 = vmatprep.mubr.msk.f32.mxu0 %vm346_vm1, %v11951_v41 }
 0x185   : > { %9137 = vmatmul.mubr.msk.f32.gmra.mrb[24].mxu0 %vm346_vm1, %v11952_v42 }
 0x186   : > { %9139 = vmatprep.mubr.msk.f32.mxu0 %vm346_vm1, %v11953_v43 }
 0x189   : > { %9140 = vmatmul.mubr.msk.f32.gmra.mrb[26].mxu0 %vm346_vm1, %v10577_v1  ;;  %v7885_v1 = vld [vmem:[%s10034_s10 + $0xf2] sm:$0xff] }
 0x18a   : > { %9142 = vmatprep.mubr.msk.f32.mxu0 %vm346_vm1, %v11954_v44 }
 0x18d   : > { %9143 = vmatmul.mubr.msk.f32.gmra.mrb[28].mxu0 %vm346_vm1, %v10591_v63 }
 0x18e   : > { %9145 = vmatprep.mubr.msk.f32.mxu0 %vm346_vm1, %v7833_v45  ;;  %v3838_v45 = vld [vmem:[%s11849_s4] sm:$0xf] }
 0x18f   : > { %9198 = vmatprep.subr.msk.mxu1 %vm443_vm0, %v3838_v45 }
 0x190   : > { %9199 = vmatpush3.msk.msra.mxu1 %vm443_vm0, %v3838_v45 }
 0x191   : > { %9146 = vmatmul.mubr.msk.f32.gmra.mrb[30].mxu0 %vm346_vm1, %v7834_v46 }
 0x192   : > { %9150 = vmatprep.mubr.msk.f32.mxu0 %vm346_vm1, %v7869_v47  ;;  %v11016_v47 = vld [vmem:[%s11847_s2] ss:$0 sm:$0xff] }
 0x195   : > { %9151 = vmatmul.mubr.msk.f32.vlgmr.msra.gmra.mrb[0].mxu0 %vm346_vm1, %v7870_v48 }
 0x196   : > { %9153 = vmatprep.mubr.msk.f32.mxu0 %vm346_vm1, %v7871_v49 }
 0x199   : > { %9154 = vmatmul.mubr.msk.f32.gmra.mrb[2].mxu0 %vm346_vm1, %v7872_v50  ;;  %v11022_v50 = vld [vmem:[%s11848_s3] ss:$0 sm:$0xff] }
 0x19a   : > { %9156 = vmatprep.mubr.msk.f32.mxu0 %vm346_vm1, %v7873_v51 }
 0x19d   : > { %9157 = vmatmul.mubr.msk.f32.gmra.mrb[4].mxu0 %vm346_vm1, %v7874_v52 }
 0x19e   : > { %9159 = vmatprep.mubr.msk.f32.mxu0 %vm346_vm1, %v7875_v53 }
 0x1a1   : > { %9160 = vmatmul.mubr.msk.f32.gmra.mrb[6].mxu0 %vm346_vm1, %v7876_v54 }
 0x1a2   : > { %9162 = vmatprep.mubr.msk.f32.mxu0 %vm346_vm1, %v7877_v55  ;;  %v10904_v60 = vpop.f32.mrb[0].mxu1 }
 0x1a3   : > { %v10906_v61 = vpop.f32.mrb[1].mxu1 }
 0x1a5   : > { %9163 = vmatmul.mubr.msk.f32.gmra.mrb[8].mxu0 %vm346_vm1, %v7878_v56 }
 0x1a6   : > { %9165 = vmatprep.mubr.msk.f32.mxu0 %vm346_vm1, %v7879_v57  ;;  %v10912_v3 = vpop.f32.mrb[2].mxu1 }
 0x1a7   : > { %v10914_v0 = vpop.f32.mrb[3].mxu1 }
 0x1a9   : > { %9166 = vmatmul.mubr.msk.f32.gmra.mrb[10].mxu0 %vm346_vm1, %v7880_v58 }
 0x1aa   : > { %9168 = vmatprep.mubr.msk.f32.mxu0 %vm346_vm1, %v7881_v59  ;;  %v10920_v38 = vpop.f32.mrb[4].mxu1 }
 0x1ab   : > { %v10922_v63 = vpop.f32.mrb[5].mxu1 }
 0x1ad   : > { %9169 = vmatmul.mubr.msk.f32.gmra.mrb[12].mxu0 %vm346_vm1, %v7882_v62 }
 0x1ae   : > { %9171 = vmatprep.mubr.msk.f32.mxu0 %vm346_vm1, %v7883_v2  ;;  %v10928_v7 = vpop.f32.mrb[6].mxu1 }
 0x1af   : > { %v10930_v8 = vpop.f32.mrb[7].mxu1 }
 0x1b1   : > { %9172 = vmatmul.mubr.msk.f32.gmra.mrb[14].mxu0 %vm346_vm1, %v7884_v34 }
 0x1b2   : > { %9174 = vmatprep.mubr.msk.f32.mxu0 %vm346_vm1, %v7885_v1  ;;  %v10936_v12 = vpop.f32.mrb[8].mxu1 }
 0x1b3   : > { %v10938_v13 = vpop.f32.mrb[9].mxu1 }
 0x1b5   : > { %9175 = vmatmul.mubr.msk.f32.gmra.mrb[16].mxu0 %vm346_vm1, %v7886_v5 }
 0x1b6   : > { %9177 = vmatprep.mubr.msk.f32.mxu0 %vm346_vm1, %v7887_v6  ;;  %v10944_v16 = vpop.f32.mrb[10].mxu1 }
 0x1b7   : > { %v10946_v17 = vpop.f32.mrb[11].mxu1 }
 0x1b9   : > { %9178 = vmatmul.mubr.msk.f32.gmra.mrb[18].mxu0 %vm346_vm1, %v7888_v10 }
 0x1ba   : > { %9180 = vmatprep.mubr.msk.f32.mxu0 %vm346_vm1, %v7889_v11  ;;  %v10952_v20 = vpop.f32.mrb[12].mxu1 }
 0x1bb   : > { %v10954_v21 = vpop.f32.mrb[13].mxu1 }
 0x1bd   : > { %9181 = vmatmul.mubr.msk.f32.gmra.mrb[20].mxu0 %vm346_vm1, %v7890_v14 }
 0x1be   : > { %9183 = vmatprep.mubr.msk.f32.mxu0 %vm346_vm1, %v7891_v15  ;;  %v10960_v24 = vpop.f32.mrb[14].mxu1 }
 0x1bf   : > { %v10962_v25 = vpop.f32.mrb[15].mxu1 }
 0x1c1   : > { %9184 = vmatmul.mubr.msk.f32.gmra.mrb[22].mxu0 %vm346_vm1, %v7892_v18 }
 0x1c2   : > { %9186 = vmatprep.mubr.msk.f32.mxu0 %vm346_vm1, %v7893_v19  ;;  %v10967_v27 = vpop.f32.mrb[16].mxu1 }
 0x1c3   : > { %v10969_v28 = vpop.f32.mrb[17].mxu1 }
 0x1c5   : > { %9187 = vmatmul.mubr.msk.f32.gmra.mrb[24].mxu0 %vm346_vm1, %v7894_v22 }
 0x1c6   : > { %9189 = vmatprep.mubr.msk.f32.mxu0 %vm346_vm1, %v7895_v23  ;;  %v10975_v30 = vpop.f32.mrb[18].mxu1 }
 0x1c7   : > { %v10977_v31 = vpop.f32.mrb[19].mxu1 }
 0x1c9   : > { %9190 = vmatmul.mubr.msk.f32.gmra.mrb[26].mxu0 %vm346_vm1, %v7896_v26 }
 0x1ca   : > { %9192 = vmatprep.mubr.msk.f32.mxu0 %vm346_vm1, %v10728_v4  ;;  %v10983_v33 = vpop.f32.mrb[20].mxu1 }
 0x1cb   : > { %v10985_v35 = vpop.f32.mrb[21].mxu1 }
 0x1cd   : > { %9193 = vmatmul.mubr.msk.f32.gmra.mrb[28].mxu0 %vm346_vm1, %v10739_v9 }
 0x1ce   : > { %9195 = vmatprep.mubr.msk.f32.mxu0 %vm346_vm1, %v7899_v29  ;;  %v10988_v36 = vpop.f32.mrb[22].mxu1 }
 0x1cf   : > { %v10990_v4 = vpop.f32.mrb[23].mxu1 }
 0x1d1   : > { %9196 = vmatmul.mubr.msk.f32.gmra.mrb[30].mxu0 %vm346_vm1, %v7900_v32 }
 0x1d2   : > { %v10992_v37 = vpop.f32.mrb[24].mxu1 }
 0x1d3   : > { %v10994_v39 = vpop.f32.mrb[25].mxu1 }
 0x1d6   : > { %v10996_v40 = vpop.f32.mrb[26].mxu1 }
 0x1d7   : > { %v10998_v9 = vpop.f32.mrb[27].mxu1 }
 0x1da   : > { %v11000_v41 = vpop.f32.mrb[28].mxu1 }
 0x1db   : > { %v11002_v42 = vpop.f32.mrb[29].mxu1 }
 0x1de   : > { %v11004_v43 = vpop.f32.mrb[30].mxu1 }
 0x1df   : > { %v11006_v44 = vpop.f32.mrb[31].mxu1 }
 0x268   : > { %v9152_v46 = vpop.f32.mrb[0].mxu0 }
 0x269   : > { %v9696_v48 = vadd.f32 %v9152_v46, %v10904_v60  ;;  %v3537_v49 = vpop.f32.mrb[1].mxu0 }
 0x26a   : > { %v9697_v51 = vadd.f32 %v3537_v49, %v10906_v61 }
 0x26b   : > { %v3736_v52 = vmul.f32 %v9696_v48, %v11016_v47 }
 0x26c   : > { %v3735_v53 = vmul.f32 %v9697_v51, %v11016_v47  ;;  %v9155_v54 = vpop.f32.mrb[2].mxu0 }
 0x26d   : > { %v3775_v55 = vadd.f32 %v11022_v50, %v3736_v52  ;;  %v9698_v56 = vadd.f32 %v9155_v54, %v10912_v3  ;;  %v3547_v57 = vpop.f32.mrb[3].mxu0 }
 0x26e   : > { %v3774_v58 = vadd.f32 %v11022_v50, %v3735_v53  ;;  %v9699_v59 = vadd.f32 %v3547_v57, %v10914_v0 }
 0x26f   : > { %v3738_v60 = vmul.f32 %v9698_v56, %v11016_v47  ;;  %v3807_v34 = vmax.f32 %v3775_v55, 0.0 }
 0x270   : > { %v3806_v62 = vmax.f32 %v3774_v58, 0.0  ;;  %v3737_v2 = vmul.f32 %v9699_v59, %v11016_v47  ;;  %v9158_v61 = vpop.f32.mrb[4].mxu0 }
 0x271   : > { %v3777_v1 = vadd.f32 %v11022_v50, %v3738_v60  ;;  %v9700_v5 = vadd.f32 %v9158_v61, %v10920_v38  ;;  %v3557_v6 = vpop.f32.mrb[5].mxu0 }
 0x272   : > { %v3776_v10 = vadd.f32 %v11022_v50, %v3737_v2  ;;  %v9701_v3 = vadd.f32 %v3557_v6, %v10922_v63  ;;  %9200 = vmatprep.mubr.msk.f32.mxu1 %vm346_vm1, %v3806_v62 }
 0x273   : > { %v3740_v0 = vmul.f32 %v9700_v5, %v11016_v47  ;;  %9201 = vmatmul.mubr.msk.f32.vlgmr.msra.gmra.mrb[32].mxu1 %vm346_vm1, %v3807_v34  ;;  %v3809_v18 = vmax.f32 %v3777_v1, 0.0 }
 0x274   : > { %v3808_v11 = vmax.f32 %v3776_v10, 0.0  ;;  %v3739_v14 = vmul.f32 %v9701_v3, %v11016_v47  ;;  %v9161_v15 = vpop.f32.mrb[6].mxu0 }
 0x275   : > { %v3779_v19 = vadd.f32 %v11022_v50, %v3740_v0  ;;  %v9702_v38 = vadd.f32 %v9161_v15, %v10928_v7  ;;  %v3567_v22 = vpop.f32.mrb[7].mxu0 }
 0x276   : > { %v3778_v23 = vadd.f32 %v11022_v50, %v3739_v14  ;;  %v9703_v63 = vadd.f32 %v3567_v22, %v10930_v8  ;;  %9203 = vmatprep.mubr.msk.f32.mxu1 %vm346_vm1, %v3808_v11 }
 0x277   : > { %v3742_v26 = vmul.f32 %v9702_v38, %v11016_v47  ;;  %9204 = vmatmul.mubr.msk.f32.gmra.mrb[34].mxu1 %vm346_vm1, %v3809_v18  ;;  %v3811_v46 = vmax.f32 %v3779_v19, 0.0 }
 0x278   : > { %v3810_v29 = vmax.f32 %v3778_v23, 0.0  ;;  %v3741_v32 = vmul.f32 %v9703_v63, %v11016_v47  ;;  %v9164_v45 = vpop.f32.mrb[8].mxu0 }
 0x279   : > { %v3781_v48 = vadd.f32 %v11022_v50, %v3742_v26  ;;  %v9704_v7 = vadd.f32 %v9164_v45, %v10936_v12  ;;  %v3577_v49 = vpop.f32.mrb[9].mxu0 }
 0x27a   : > { %v3780_v51 = vadd.f32 %v11022_v50, %v3741_v32  ;;  %v9705_v8 = vadd.f32 %v3577_v49, %v10938_v13  ;;  %9206 = vmatprep.mubr.msk.f32.mxu1 %vm346_vm1, %v3810_v29 }
 0x27b   : > { %v3744_v52 = vmul.f32 %v9704_v7, %v11016_v47  ;;  %9207 = vmatmul.mubr.msk.f32.gmra.mrb[36].mxu1 %vm346_vm1, %v3811_v46  ;;  %v3813_v56 = vmax.f32 %v3781_v48, 0.0 }
 0x27c   : > { %v3812_v53 = vmax.f32 %v3780_v51, 0.0  ;;  %v3743_v54 = vmul.f32 %v9705_v8, %v11016_v47  ;;  %v9167_v55 = vpop.f32.mrb[10].mxu0 }
 0x27d   : > { %v3783_v57 = vadd.f32 %v11022_v50, %v3744_v52  ;;  %v9706_v12 = vadd.f32 %v9167_v55, %v10944_v16  ;;  %v3587_v58 = vpop.f32.mrb[11].mxu0 }
 0x27e   : > { %v3782_v59 = vadd.f32 %v11022_v50, %v3743_v54  ;;  %v9707_v13 = vadd.f32 %v3587_v58, %v10946_v17  ;;  %9209 = vmatprep.mubr.msk.f32.mxu1 %vm346_vm1, %v3812_v53 }
 0x27f   : > { %v3746_v60 = vmul.f32 %v9706_v12, %v11016_v47  ;;  %9210 = vmatmul.mubr.msk.f32.gmra.mrb[38].mxu1 %vm346_vm1, %v3813_v56  ;;  %v3815_v34 = vmax.f32 %v3783_v57, 0.0 }
 0x280   : > { %v3814_v62 = vmax.f32 %v3782_v59, 0.0  ;;  %v3745_v2 = vmul.f32 %v9707_v13, %v11016_v47  ;;  %v9170_v61 = vpop.f32.mrb[12].mxu0 }
 0x281   : > { %v3785_v1 = vadd.f32 %v11022_v50, %v3746_v60  ;;  %v9708_v16 = vadd.f32 %v9170_v61, %v10952_v20  ;;  %v3597_v5 = vpop.f32.mrb[13].mxu0 }
 0x282   : > { %v3784_v6 = vadd.f32 %v11022_v50, %v3745_v2  ;;  %v9709_v17 = vadd.f32 %v3597_v5, %v10954_v21  ;;  %9212 = vmatprep.mubr.msk.f32.mxu1 %vm346_vm1, %v3814_v62 }
 0x283   : > { %v3748_v10 = vmul.f32 %v9708_v16, %v11016_v47  ;;  %9213 = vmatmul.mubr.msk.f32.gmra.mrb[40].mxu1 %vm346_vm1, %v3815_v34  ;;  %v3817_v14 = vmax.f32 %v3785_v1, 0.0 }
 0x284   : > { %v3816_v3 = vmax.f32 %v3784_v6, 0.0  ;;  %v3747_v0 = vmul.f32 %v9709_v17, %v11016_v47  ;;  %v9173_v11 = vpop.f32.mrb[14].mxu0 }
 0x285   : > { %v3787_v15 = vadd.f32 %v11022_v50, %v3748_v10  ;;  %v9710_v20 = vadd.f32 %v9173_v11, %v10960_v24  ;;  %v3607_v18 = vpop.f32.mrb[15].mxu0 }
 0x286   : > { %v3786_v19 = vadd.f32 %v11022_v50, %v3747_v0  ;;  %v9711_v21 = vadd.f32 %v3607_v18, %v10962_v25  ;;  %9215 = vmatprep.mubr.msk.f32.mxu1 %vm346_vm1, %v3816_v3 }
 0x287   : > { %v3750_v38 = vmul.f32 %v9710_v20, %v11016_v47  ;;  %9216 = vmatmul.mubr.msk.f32.gmra.mrb[42].mxu1 %vm346_vm1, %v3817_v14  ;;  %v3819_v26 = vmax.f32 %v3787_v15, 0.0 }
 0x288   : > { %v3818_v22 = vmax.f32 %v3786_v19, 0.0  ;;  %v3749_v23 = vmul.f32 %v9711_v21, %v11016_v47  ;;  %v9176_v63 = vpop.f32.mrb[16].mxu0 }
 0x289   : > { %v3789_v29 = vadd.f32 %v11022_v50, %v3750_v38  ;;  %v9712_v24 = vadd.f32 %v9176_v63, %v10967_v27  ;;  %v3617_v32 = vpop.f32.mrb[17].mxu0 }
 0x28a   : > { %v3788_v45 = vadd.f32 %v11022_v50, %v3749_v23  ;;  %v9713_v25 = vadd.f32 %v3617_v32, %v10969_v28  ;;  %9218 = vmatprep.mubr.msk.f32.mxu1 %vm346_vm1, %v3818_v22 }
 0x28b   : > { %v3752_v46 = vmul.f32 %v9712_v24, %v11016_v47  ;;  %9219 = vmatmul.mubr.msk.f32.gmra.mrb[44].mxu1 %vm346_vm1, %v3819_v26  ;;  %v3821_v51 = vmax.f32 %v3789_v29, 0.0 }
 0x28c   : > { %v3820_v48 = vmax.f32 %v3788_v45, 0.0  ;;  %v3751_v7 = vmul.f32 %v9713_v25, %v11016_v47  ;;  %v9179_v49 = vpop.f32.mrb[18].mxu0 }
 0x28d   : > { %v3791_v8 = vadd.f32 %v11022_v50, %v3752_v46  ;;  %v9714_v27 = vadd.f32 %v9179_v49, %v10975_v30  ;;  %v3627_v52 = vpop.f32.mrb[19].mxu0 }
 0x28e   : > { %v3790_v53 = vadd.f32 %v11022_v50, %v3751_v7  ;;  %v9715_v28 = vadd.f32 %v3627_v52, %v10977_v31  ;;  %9221 = vmatprep.mubr.msk.f32.mxu1 %vm346_vm1, %v3820_v48 }
 0x28f   : > { %v3754_v54 = vmul.f32 %v9714_v27, %v11016_v47  ;;  %9222 = vmatmul.mubr.msk.f32.gmra.mrb[46].mxu1 %vm346_vm1, %v3821_v51  ;;  %v3823_v12 = vmax.f32 %v3791_v8, 0.0 }
 0x290   : > { %v3822_v55 = vmax.f32 %v3790_v53, 0.0  ;;  %v3753_v56 = vmul.f32 %v9715_v28, %v11016_v47  ;;  %v9182_v57 = vpop.f32.mrb[20].mxu0 }
 0x291   : > { %v3793_v58 = vadd.f32 %v11022_v50, %v3754_v54  ;;  %v9716_v30 = vadd.f32 %v9182_v57, %v10983_v33  ;;  %v3637_v59 = vpop.f32.mrb[21].mxu0 }
 0x292   : > { %v3792_v13 = vadd.f32 %v11022_v50, %v3753_v56  ;;  %v9717_v31 = vadd.f32 %v3637_v59, %v10985_v35  ;;  %9224 = vmatprep.mubr.msk.f32.mxu1 %vm346_vm1, %v3822_v55 }
 0x293   : > { %v3756_v60 = vmul.f32 %v9716_v30, %v11016_v47  ;;  %9225 = vmatmul.mubr.msk.f32.gmra.mrb[48].mxu1 %vm346_vm1, %v3823_v12  ;;  %v3825_v34 = vmax.f32 %v3793_v58, 0.0  ;;  %v11154_v30 = vld [vmem:[%s11851_s6] sm:$0xff] }
 0x294   : > { %v3824_v62 = vmax.f32 %v3792_v13, 0.0  ;;  %v3755_v2 = vmul.f32 %v9717_v31, %v11016_v47  ;;  %v9185_v61 = vpop.f32.mrb[22].mxu0 }
 0x295   : > { %v3795_v1 = vadd.f32 %v11022_v50, %v3756_v60  ;;  %v9718_v33 = vadd.f32 %v9185_v61, %v10988_v36  ;;  %v3647_v16 = vpop.f32.mrb[23].mxu0 }
 0x296   : > { %v3794_v5 = vadd.f32 %v11022_v50, %v3755_v2  ;;  %v9719_v35 = vadd.f32 %v3647_v16, %v10990_v4  ;;  %9227 = vmatprep.mubr.msk.f32.mxu1 %vm346_vm1, %v3824_v62 }
 0x297   : > { %v3758_v6 = vmul.f32 %v9718_v33, %v11016_v47  ;;  %9228 = vmatmul.mubr.msk.f32.gmra.mrb[50].mxu1 %vm346_vm1, %v3825_v34  ;;  %v3827_v0 = vmax.f32 %v3795_v1, 0.0  ;;  %v11169_v1 = vld [vmem:[%s11851_s6 + $0x8] sm:$0xff] }
 0x298   : > { %v3826_v17 = vmax.f32 %v3794_v5, 0.0  ;;  %v3757_v10 = vmul.f32 %v9719_v35, %v11016_v47  ;;  %v9188_v3 = vpop.f32.mrb[24].mxu0 }
 0x299   : > { %v3797_v11 = vadd.f32 %v11022_v50, %v3758_v6  ;;  %v9720_v36 = vadd.f32 %v9188_v3, %v10992_v37  ;;  %v3657_v14 = vpop.f32.mrb[25].mxu0 }
 0x29a   : > { %v3796_v15 = vadd.f32 %v11022_v50, %v3757_v10  ;;  %v9721_v4 = vadd.f32 %v3657_v14, %v10994_v39  ;;  %9230 = vmatprep.mubr.msk.f32.mxu1 %vm346_vm1, %v3826_v17 }
 0x29b   : > { %v3760_v20 = vmul.f32 %v9720_v36, %v11016_v47  ;;  %9231 = vmatmul.mubr.msk.f32.gmra.mrb[52].mxu1 %vm346_vm1, %v3827_v0  ;;  %v3829_v38 = vmax.f32 %v3797_v11, 0.0  ;;  %v11175_v0 = vld [vmem:[%s11851_s6 + $0x10] sm:$0xff] }
 0x29c   : > { %v3828_v18 = vmax.f32 %v3796_v15, 0.0  ;;  %v3759_v19 = vmul.f32 %v9721_v4, %v11016_v47  ;;  %v9191_v21 = vpop.f32.mrb[26].mxu0 }
 0x29d   : > { %v3799_v22 = vadd.f32 %v11022_v50, %v3760_v20  ;;  %v9722_v37 = vadd.f32 %v9191_v21, %v10996_v40  ;;  %v3667_v23 = vpop.f32.mrb[27].mxu0  ;;  %v11184_v21 = vld [vmem:[%s11851_s6 + $0x18] sm:$0xff] }
 0x29e   : > { %v3798_v63 = vadd.f32 %v11022_v50, %v3759_v19  ;;  %v9723_v39 = vadd.f32 %v3667_v23, %v10998_v9  ;;  %9233 = vmatprep.mubr.msk.f32.mxu1 %vm346_vm1, %v3828_v18 }
 0x29f   : > { %v3762_v26 = vmul.f32 %v9722_v37, %v11016_v47  ;;  %9234 = vmatmul.mubr.msk.f32.gmra.mrb[54].mxu1 %vm346_vm1, %v3829_v38  ;;  %v3831_v45 = vmax.f32 %v3799_v22, 0.0 }
 0x2a0   : > { %v3830_v29 = vmax.f32 %v3798_v63, 0.0  ;;  %v3761_v24 = vmul.f32 %v9723_v39, %v11016_v47  ;;  %v9194_v32 = vpop.f32.mrb[28].mxu0 }
 0x2a1   : > { %v3801_v25 = vadd.f32 %v11022_v50, %v3762_v26  ;;  %v9724_v40 = vadd.f32 %v9194_v32, %v11000_v41  ;;  %v3677_v46 = vpop.f32.mrb[29].mxu0 }
 0x2a2   : > { %v3800_v48 = vadd.f32 %v11022_v50, %v3761_v24  ;;  %v9725_v9 = vadd.f32 %v3677_v46, %v11002_v42  ;;  %9236 = vmatprep.mubr.msk.f32.mxu1 %vm346_vm1, %v3830_v29 }
 0x2a3   : > { %v3764_v7 = vmul.f32 %v9724_v40, %v11016_v47  ;;  %9237 = vmatmul.mubr.msk.f32.gmra.mrb[56].mxu1 %vm346_vm1, %v3831_v45  ;;  %v3833_v27 = vmax.f32 %v3801_v25, 0.0 }
 0x2a4   : > { %v3832_v49 = vmax.f32 %v3800_v48, 0.0  ;;  %v3763_v51 = vmul.f32 %v9725_v9, %v11016_v47  ;;  %v9197_v8 = vpop.f32.mrb[30].mxu0 }
 0x2a5   : > { %v3803_v52 = vadd.f32 %v11022_v50, %v3764_v7  ;;  %v9726_v41 = vadd.f32 %v9197_v8, %v11004_v43  ;;  %v3687_v53 = vpop.f32.mrb[31].mxu0 }
 0x2a6   : > { %v3802_v28 = vadd.f32 %v11022_v50, %v3763_v51  ;;  %v9727_v42 = vadd.f32 %v3687_v53, %v11006_v44  ;;  %9239 = vmatprep.mubr.msk.f32.mxu1 %vm346_vm1, %v3832_v49 }
 0x2a7   : > { %v3766_v54 = vmul.f32 %v9726_v41, %v11016_v47  ;;  %9240 = vmatmul.mubr.msk.f32.gmra.mrb[58].mxu1 %vm346_vm1, %v3833_v27  ;;  %v3835_v57 = vmax.f32 %v3803_v52, 0.0 }
 0x2a8   : > { %v3834_v55 = vmax.f32 %v3802_v28, 0.0  ;;  %v3765_v56 = vmul.f32 %v9727_v42, %v11016_v47  ;;  %v11161_v47 = vld [vmem:[%s11850_s5] ss:$0 sm:$0xff] }
 0x2a9   : > { %v3805_v12 = vadd.f32 %v11022_v50, %v3766_v54 }
 0x2aa   : > { %v3804_v58 = vadd.f32 %v11022_v50, %v3765_v56  ;;  %9242 = vmatprep.mubr.msk.f32.mxu1 %vm346_vm1, %v3834_v55 }
 0x2ab   : > { %9243 = vmatmul.mubr.msk.f32.gmra.mrb[60].mxu1 %vm346_vm1, %v3835_v57  ;;  %v3837_v44 = vmax.f32 %v3805_v12, 0.0 }
 0x2ac   : > { %v3836_v43 = vmax.f32 %v3804_v58, 0.0 }
 0x2ae   : > { %9245 = vmatprep.mubr.msk.f32.mxu1 %vm346_vm1, %v3836_v43 }
 0x2af   : > { %9246 = vmatmul.mubr.msk.f32.gmra.mrb[62].mxu1 %vm346_vm1, %v3837_v44 }
 0x2b0   : > { %9252 = vmatprep.mubr.msk.f32.mxu1 %vm4174_vm2, %v11154_v30 }
 0x346   : > { %v9202_v50 = vpop.f32.mrb[32].mxu1 }
 0x347   : > { %v4017_v59 = vadd.f32 %v9202_v50, %v11161_v47  ;;  %v4011_v13 = vpop.f32.mrb[33].mxu1 }
 0x348   : > { %v4012_v31 = vadd.f32 %v11161_v47, %v4011_v13 }
 0x349   : > { %v4282_v2 = vmul.f32 0.516129, %v4017_v59  ;;  %v4382_v33 = vmul.f32 0.032258064, %v4017_v59 }
 0x34a   : > { %v9205_v60 = vpop.f32.mrb[34].mxu1  ;;  %v9568_v62 = vpack.c.bf16 %v4017_v59, %v4012_v31  ;;  %v4281_v16 = vmul.f32 0.516129, %v4012_v31  ;;  %v4381_v5 = vmul.f32 0.032258064, %v4012_v31 }
 0x34b   : > { %v4027_v61 = vadd.f32 %v9205_v60, %v11161_v47  ;;  %v4021_v34 = vpop.f32.mrb[35].mxu1 }
 0x34c   : > { %v4022_v35 = vadd.f32 %v11161_v47, %v4021_v34  ;;  %9569 = vmatprep.subr.bf16.mxu1 %v9568_v62 }
 0x34d   : > { %9571 = vmatpush3.bf16.msra.mxu1 %v9568_v62  ;;  %v4284_v6 = vmul.f32 0.48387095, %v4027_v61  ;;  %v4384_v17 = vmul.f32 0.9677419, %v4027_v61  ;;  %v4482_v10 = vmul.f32 0.5483871, %v4027_v61 }
 0x34e   : > { %v9208_v3 = vpop.f32.mrb[36].mxu1  ;;  %v4283_v11 = vmul.f32 0.48387095, %v4022_v35  ;;  %v4383_v36 = vmul.f32 0.9677419, %v4022_v35 }
 0x34f   : > { %v4037_v14 = vadd.f32 %v9208_v3, %v11161_v47  ;;  %v4031_v15 = vpop.f32.mrb[37].mxu1  ;;  %v4286_v4 = vadd.f32 %v4284_v6, %v4282_v2  ;;  %v4386_v20 = vadd.f32 %v4384_v17, %v4382_v33  ;;  %v4481_v18 = vmul.f32 0.5483871, %v4022_v35 }
 0x350   : > { %v4032_v19 = vadd.f32 %v11161_v47, %v4031_v15  ;;  %9253 = vmatmul.mubr.msk.f32.vlgmr.msra.gmra.mrb[64].mxu1 %vm4174_vm2, %v11169_v1  ;;  %v4285_v38 = vadd.f32 %v4283_v11, %v4281_v16  ;;  %v4385_v22 = vadd.f32 %v4383_v36, %v4381_v5  ;;  %v4581_v37 = vmul.f32 0.06451613, %v4022_v35 }
 0x351   : > { %9255 = vmatprep.mubr.msk.f32.mxu1 %vm4174_vm2, %v11175_v0  ;;  %v4484_v23 = vmul.f32 0.4516129, %v4037_v14  ;;  %v4582_v63 = vmul.f32 0.06451613, %v4027_v61  ;;  %v4584_v39 = vmul.f32 0.9354839, %v4037_v14 }
 0x352   : > { %v9211_v26 = vpop.f32.mrb[38].mxu1  ;;  %v9572_v29 = vpack.c.bf16 %v4286_v4, %v4285_v38  ;;  %v9576_v24 = vpack.c.bf16 %v4386_v20, %v4385_v22  ;;  %v4483_v32 = vmul.f32 0.4516129, %v4032_v19  ;;  %v4583_v45 = vmul.f32 0.9354839, %v4032_v19 }
 0x353   : > { %v4047_v25 = vadd.f32 %v9211_v26, %v11161_v47  ;;  %v4041_v40 = vpop.f32.mrb[39].mxu1  ;;  %v4486_v46 = vadd.f32 %v4484_v23, %v4482_v10  ;;  %v4586_v48 = vadd.f32 %v4584_v39, %v4582_v63  ;;  %v4681_v9 = vmul.f32 0.58064514, %v4032_v19 }
 0x354   : > { %v4042_v7 = vadd.f32 %v11161_v47, %v4041_v40  ;;  %9256 = vmatmul.mubr.msk.f32.gmra.mrb[66].mxu1 %vm4174_vm2, %v11184_v21  ;;  %9573 = vmatprep.subr.bf16.mxu1 %v9572_v29  ;;  %v4485_v49 = vadd.f32 %v4483_v32, %v4481_v18  ;;  %v4585_v51 = vadd.f32 %v4583_v45, %v4581_v37  ;;  %v4682_v8 = vmul.f32 0.58064514, %v4037_v14 }
 0x355   : > { %9575 = vmatpush3.bf16.msra.mxu1 %v9572_v29  ;;  %9262 = vmatprep.mubr.msk.f32.mxu1 %vm4174_vm2, %v11154_v30  ;;  %v4684_v27 = vmul.f32 0.41935483, %v4047_v25  ;;  %v4781_v52 = vmul.f32 0.09677419, %v4032_v19  ;;  %v4782_v41 = vmul.f32 0.09677419, %v4037_v14 }
 0x356   : > { %v9214_v53 = vpop.f32.mrb[40].mxu1  ;;  %9577 = vmatprep.subr.bf16.mxu1 %v9576_v24  ;;  %v9580_v28 = vpack.c.bf16 %v4486_v46, %v4485_v49  ;;  %v11194_v42 = vpack.c.bf16 %v4586_v48, %v4585_v51  ;;  %v4683_v54 = vmul.f32 0.41935483, %v4042_v7  ;;  %v4783_v55 = vmul.f32 0.9032258, %v4042_v7 }
 0x357   : > { %v4057_v56 = vadd.f32 %v9214_v53, %v11161_v47  ;;  %v4051_v57 = vpop.f32.mrb[41].mxu1  ;;  %v4686_v12 = vadd.f32 %v4684_v27, %v4682_v8  ;;  %v4784_v58 = vmul.f32 0.9032258, %v4047_v25  ;;  %v4881_v43 = vmul.f32 0.61290324, %v4042_v7 }
 0x358   : > { %v4052_v44 = vadd.f32 %v11161_v47, %v4051_v57  ;;  %9263 = vmatmul.mubr.msk.f32.vlgmr.msra.gmra.mrb[68].mxu1 %vm4174_vm2, %v11169_v1  ;;  %v4685_v50 = vadd.f32 %v4683_v54, %v4681_v9  ;;  %v4785_v59 = vadd.f32 %v4783_v55, %v4781_v52  ;;  %v4882_v13 = vmul.f32 0.61290324, %v4047_v25 }
 0x359   : > { %9579 = vmatpush3.bf16.msra.mxu1 %v9576_v24  ;;  %9265 = vmatprep.mubr.msk.f32.mxu1 %vm4174_vm2, %v11175_v0  ;;  %v4786_v31 = vadd.f32 %v4784_v58, %v4782_v41  ;;  %v4884_v60 = vmul.f32 0.38709676, %v4057_v56  ;;  %v4981_v62 = vmul.f32 0.12903225, %v4042_v7  ;;  %v4982_v2 = vmul.f32 0.12903225, %v4047_v25 }
 0x35a   : > { %v9217_v61 = vpop.f32.mrb[42].mxu1  ;;  %9581 = vmatprep.subr.bf16.mxu1 %v9580_v28  ;;  %v11202_v34 = vpack.c.bf16 %v4686_v12, %v4685_v50  ;;  %v4883_v33 = vmul.f32 0.38709676, %v4052_v44  ;;  %v4983_v16 = vmul.f32 0.87096775, %v4052_v44 }
 0x35b   : > { %v4067_v5 = vadd.f32 %v9217_v61, %v11161_v47  ;;  %v4061_v35 = vpop.f32.mrb[43].mxu1  ;;  %v11205_v6 = vpack.c.bf16 %v4786_v31, %v4785_v59  ;;  %v4886_v17 = vadd.f32 %v4884_v60, %v4882_v13  ;;  %v4984_v10 = vmul.f32 0.87096775, %v4057_v56 }
 0x35c   : > { %v4062_v3 = vadd.f32 %v11161_v47, %v4061_v35  ;;  %9266 = vmatmul.mubr.msk.f32.gmra.mrb[70].mxu1 %vm4174_vm2, %v11184_v21  ;;  %v4885_v11 = vadd.f32 %v4883_v33, %v4881_v43  ;;  %v4985_v36 = vadd.f32 %v4983_v16, %v4981_v62  ;;  %v5081_v14 = vmul.f32 0.6451613, %v4052_v44 }
 0x35d   : > { %9272 = vmatprep.mubr.msk.f32.mxu1 %vm4174_vm2, %v11154_v30  ;;  %v4986_v15 = vadd.f32 %v4984_v10, %v4982_v2  ;;  %v5082_v4 = vmul.f32 0.6451613, %v4057_v56  ;;  %v5084_v20 = vmul.f32 0.3548387, %v4067_v5  ;;  %v5181_v18 = vmul.f32 0.16129032, %v4052_v44 }
 0x35e   : > { %v9220_v19 = vpop.f32.mrb[44].mxu1  ;;  %v11212_v38 = vpack.c.bf16 %v4886_v17, %v4885_v11  ;;  %v5083_v22 = vmul.f32 0.3548387, %v4062_v3  ;;  %v5182_v37 = vmul.f32 0.16129032, %v4057_v56 }
 0x35f   : > { %v4077_v23 = vadd.f32 %v9220_v19, %v11161_v47  ;;  %v4071_v63 = vpop.f32.mrb[45].mxu1  ;;  %v11215_v39 = vpack.c.bf16 %v4986_v15, %v4985_v36  ;;  %v5086_v26 = vadd.f32 %v5084_v20, %v5082_v4  ;;  %v5183_v29 = vmul.f32 0.83870965, %v4062_v3 }
 0x360   : > { %v4072_v24 = vadd.f32 %v11161_v47, %v4071_v63  ;;  %9273 = vmatmul.mubr.msk.f32.vlgmr.msra.gmra.mrb[72].mxu1 %vm4174_vm2, %v11169_v1  ;;  %v5085_v32 = vadd.f32 %v5083_v22, %v5081_v14  ;;  %v5184_v45 = vmul.f32 0.83870965, %v4067_v5  ;;  %v5281_v25 = vmul.f32 0.67741936, %v4062_v3 }
 0x361   : > { %9583 = vmatpush3.bf16.msra.mxu1 %v9580_v28  ;;  %9275 = vmatprep.mubr.msk.f32.mxu1 %vm4174_vm2, %v11175_v0  ;;  %v5185_v40 = vadd.f32 %v5183_v29, %v5181_v18  ;;  %v5282_v46 = vmul.f32 0.67741936, %v4067_v5  ;;  %v5284_v48 = vmul.f32 0.32258064, %v4077_v23  ;;  %v5381_v9 = vmul.f32 0.19354838, %v4062_v3 }
 0x362   : > { %9585 = vmatprep.subr.bf16.mxu1 %v11194_v42  ;;  %v9223_v7 = vpop.f32.mrb[46].mxu1  ;;  %v11223_v49 = vpack.c.bf16 %v5086_v26, %v5085_v32  ;;  %v5186_v51 = vadd.f32 %v5184_v45, %v5182_v37  ;;  %v5283_v8 = vmul.f32 0.32258064, %v4072_v24  ;;  %v5382_v27 = vmul.f32 0.19354838, %v4067_v5 }
 0x363   : > { %v4087_v52 = vadd.f32 %v9223_v7, %v11161_v47  ;;  %v4081_v41 = vpop.f32.mrb[47].mxu1  ;;  %v5286_v53 = vadd.f32 %v5284_v48, %v5282_v46  ;;  %v5383_v28 = vmul.f32 0.8064516, %v4072_v24  ;;  %v5384_v54 = vmul.f32 0.8064516, %v4077_v23 }
 0x364   : > { %v4082_v55 = vadd.f32 %v11161_v47, %v4081_v41  ;;  %9276 = vmatmul.mubr.msk.f32.gmra.mrb[74].mxu1 %vm4174_vm2, %v11184_v21  ;;  %v11229_v56 = vpack.c.bf16 %v5186_v51, %v5185_v40  ;;  %v5285_v57 = vadd.f32 %v5283_v8, %v5281_v25  ;;  %v5481_v12 = vmul.f32 0.7096774, %v4072_v24 }
 0x365   : > { %9282 = vmatprep.mubr.msk.f32.mxu1 %vm4174_vm2, %v11154_v30  ;;  %v5385_v58 = vadd.f32 %v5383_v28, %v5381_v9  ;;  %v5386_v43 = vadd.f32 %v5384_v54, %v5382_v27  ;;  %v5482_v44 = vmul.f32 0.7096774, %v4077_v23  ;;  %v5484_v50 = vmul.f32 0.29032257, %v4087_v52 }
 0x366   : > { %v9226_v59 = vpop.f32.mrb[48].mxu1  ;;  %v11233_v13 = vpack.c.bf16 %v5286_v53, %v5285_v57  ;;  %v5483_v31 = vmul.f32 0.29032257, %v4082_v55  ;;  %v5581_v60 = vmul.f32 0.22580644, %v4072_v24 }
 0x367   : > { %v4097_v62 = vadd.f32 %v9226_v59, %v11161_v47  ;;  %v4091_v2 = vpop.f32.mrb[49].mxu1  ;;  %v11236_v61 = vpack.c.bf16 %v5386_v43, %v5385_v58  ;;  %v5486_v33 = vadd.f32 %v5484_v50, %v5482_v44  ;;  %v5582_v16 = vmul.f32 0.22580644, %v4077_v23 }
 0x368   : > { %v4092_v5 = vadd.f32 %v11161_v47, %v4091_v2  ;;  %9283 = vmatmul.mubr.msk.f32.vlgmr.msra.gmra.mrb[76].mxu1 %vm4174_vm2, %v11169_v1  ;;  %v5485_v35 = vadd.f32 %v5483_v31, %v5481_v12  ;;  %v5583_v17 = vmul.f32 0.7741935, %v4082_v55  ;;  %v5584_v10 = vmul.f32 0.7741935, %v4087_v52 }
 0x369   : > { %9587 = vmatpush3.bf16.msra.mxu1 %v11194_v42  ;;  %9285 = vmatprep.mubr.msk.f32.mxu1 %vm4174_vm2, %v11175_v0  ;;  %v5681_v3 = vmul.f32 0.7419355, %v4082_v55  ;;  %v5682_v11 = vmul.f32 0.7419355, %v4087_v52  ;;  %v5684_v36 = vmul.f32 0.2580645, %v4097_v62 }
 0x36a   : > { %9589 = vmatprep.subr.bf16.mxu1 %v11202_v34  ;;  %v9229_v14 = vpop.f32.mrb[50].mxu1  ;;  %v11245_v15 = vpack.c.bf16 %v5486_v33, %v5485_v35  ;;  %v5585_v4 = vadd.f32 %v5583_v17, %v5581_v60  ;;  %v5586_v20 = vadd.f32 %v5584_v10, %v5582_v16  ;;  %v5683_v18 = vmul.f32 0.2580645, %v4092_v5 }
 0x36b   : > { %v4107_v19 = vadd.f32 %v9229_v14, %v11161_v47  ;;  %v4101_v22 = vpop.f32.mrb[51].mxu1  ;;  %v5686_v37 = vadd.f32 %v5684_v36, %v5682_v11  ;;  %v5781_v23 = vmul.f32 0.2580645, %v4082_v55  ;;  %v5782_v42 = vmul.f32 0.2580645, %v4087_v52 }
 0x36c   : > { %v4102_v63 = vadd.f32 %v11161_v47, %v4101_v22  ;;  %9286 = vmatmul.mubr.msk.f32.gmra.mrb[78].mxu1 %vm4174_vm2, %v11184_v21  ;;  %v11251_v26 = vpack.c.bf16 %v5586_v20, %v5585_v4  ;;  %v5685_v29 = vadd.f32 %v5683_v18, %v5681_v3  ;;  %v5783_v24 = vmul.f32 0.7419355, %v4092_v5 }
 0x36d   : > { %9292 = vmatprep.mubr.msk.f32.mxu1 %vm4174_vm2, %v11154_v30  ;;  %v5784_v32 = vmul.f32 0.7419355, %v4097_v62  ;;  %v5881_v45 = vmul.f32 0.7741935, %v4092_v5  ;;  %v5882_v25 = vmul.f32 0.7741935, %v4097_v62 }
 0x36e   : > { %v9232_v40 = vpop.f32.mrb[52].mxu1  ;;  %v11255_v46 = vpack.c.bf16 %v5686_v37, %v5685_v29  ;;  %v5785_v48 = vadd.f32 %v5783_v24, %v5781_v23  ;;  %v5883_v9 = vmul.f32 0.22580644, %v4102_v63  ;;  %v5884_v7 = vmul.f32 0.22580644, %v4107_v19 }
 0x36f   : > { %v4117_v51 = vadd.f32 %v9232_v40, %v11161_v47  ;;  %v4111_v8 = vpop.f32.mrb[53].mxu1  ;;  %v5786_v27 = vadd.f32 %v5784_v32, %v5782_v42  ;;  %v5981_v52 = vmul.f32 0.29032257, %v4092_v5  ;;  %v5982_v41 = vmul.f32 0.29032257, %v4097_v62 }
 0x370   : > { %v4112_v53 = vadd.f32 %v11161_v47, %v4111_v8  ;;  %9293 = vmatmul.mubr.msk.f32.vlgmr.msra.gmra.mrb[80].mxu1 %vm4174_vm2, %v11169_v1  ;;  %v5885_v28 = vadd.f32 %v5883_v9, %v5881_v45  ;;  %v5886_v54 = vadd.f32 %v5884_v7, %v5882_v25  ;;  %v5983_v55 = vmul.f32 0.7096774, %v4102_v63 }
 0x371   : > { %9591 = vmatpush3.bf16.msra.mxu1 %v11202_v34  ;;  %9295 = vmatprep.mubr.msk.f32.mxu1 %vm4174_vm2, %v11175_v0  ;;  %v11264_v57 = vpack.c.bf16 %v5786_v27, %v5785_v48  ;;  %v5984_v12 = vmul.f32 0.7096774, %v4107_v19  ;;  %v6081_v58 = vmul.f32 0.8064516, %v4102_v63  ;;  %v6082_v43 = vmul.f32 0.8064516, %v4107_v19 }
 0x372   : > { %9593 = vmatprep.subr.bf16.mxu1 %v11205_v6  ;;  %v9235_v44 = vpop.f32.mrb[54].mxu1  ;;  %v11267_v50 = vpack.c.bf16 %v5886_v54, %v5885_v28  ;;  %v5985_v59 = vadd.f32 %v5983_v55, %v5981_v52  ;;  %v6083_v31 = vmul.f32 0.19354838, %v4112_v53  ;;  %v6084_v60 = vmul.f32 0.19354838, %v4117_v51 }
 0x373   : > { %v4127_v62 = vadd.f32 %v9235_v44, %v11161_v47  ;;  %v4121_v2 = vpop.f32.mrb[55].mxu1  ;;  %v5986_v34 = vadd.f32 %v5984_v12, %v5982_v41  ;;  %v6181_v33 = vmul.f32 0.32258064, %v4102_v63  ;;  %v6182_v16 = vmul.f32 0.32258064, %v4107_v19 }
 0x374   : > { %v4122_v5 = vadd.f32 %v11161_v47, %v4121_v2  ;;  %9296 = vmatmul.mubr.msk.f32.gmra.mrb[82].mxu1 %vm4174_vm2, %v11184_v21  ;;  %v6085_v35 = vadd.f32 %v6083_v31, %v6081_v58  ;;  %v6086_v17 = vadd.f32 %v6084_v60, %v6082_v43  ;;  %v6183_v10 = vmul.f32 0.67741936, %v4112_v53 }
 0x375   : > { %9302 = vmatprep.mubr.msk.f32.mxu1 %vm4174_vm2, %v11154_v30  ;;  %v11275_v3 = vpack.c.bf16 %v5986_v34, %v5985_v59  ;;  %v6184_v11 = vmul.f32 0.67741936, %v4117_v51  ;;  %v6281_v36 = vmul.f32 0.83870965, %v4112_v53  ;;  %v6282_v14 = vmul.f32 0.83870965, %v4117_v51 }
 0x376   : > { %v9238_v4 = vpop.f32.mrb[56].mxu1  ;;  %v11277_v20 = vpack.c.bf16 %v6086_v17, %v6085_v35  ;;  %v6185_v18 = vadd.f32 %v6183_v10, %v6181_v33  ;;  %v6283_v19 = vmul.f32 0.16129032, %v4122_v5  ;;  %v6284_v22 = vmul.f32 0.16129032, %v4127_v62 }
 0x377   : > { %v4137_v37 = vadd.f32 %v9238_v4, %v11161_v47  ;;  %v4131_v23 = vpop.f32.mrb[57].mxu1  ;;  %v6186_v42 = vadd.f32 %v6184_v11, %v6182_v16  ;;  %v6381_v63 = vmul.f32 0.3548387, %v4112_v53  ;;  %v6382_v29 = vmul.f32 0.3548387, %v4117_v51 }
 0x378   : > { %v4132_v24 = vadd.f32 %v11161_v47, %v4131_v23  ;;  %9303 = vmatmul.mubr.msk.f32.vlgmr.msra.gmra.mrb[84].mxu1 %vm4174_vm2, %v11169_v1  ;;  %v6285_v32 = vadd.f32 %v6283_v19, %v6281_v36  ;;  %v6286_v45 = vadd.f32 %v6284_v22, %v6282_v14  ;;  %v6383_v25 = vmul.f32 0.6451613, %v4122_v5 }
 0x379   : > { %9595 = vmatpush3.bf16.msra.mxu1 %v11205_v6  ;;  %9305 = vmatprep.mubr.msk.f32.mxu1 %vm4174_vm2, %v11175_v0  ;;  %v11286_v40 = vpack.c.bf16 %v6186_v42, %v6185_v18  ;;  %v6384_v48 = vmul.f32 0.6451613, %v4127_v62  ;;  %v6481_v9 = vmul.f32 0.87096775, %v4122_v5  ;;  %v6482_v7 = vmul.f32 0.87096775, %v4127_v62 }
 0x37a   : > { %9597 = vmatprep.subr.bf16.mxu1 %v11212_v38  ;;  %v9241_v51 = vpop.f32.mrb[58].mxu1  ;;  %v11289_v8 = vpack.c.bf16 %v6286_v45, %v6285_v32  ;;  %v6385_v27 = vadd.f32 %v6383_v25, %v6381_v63  ;;  %v6483_v52 = vmul.f32 0.12903225, %v4132_v24  ;;  %v6484_v41 = vmul.f32 0.12903225, %v4137_v37 }
 0x37b   : > { %v4147_v53 = vadd.f32 %v9241_v51, %v11161_v47  ;;  %v4141_v28 = vpop.f32.mrb[59].mxu1  ;;  %v6386_v6 = vadd.f32 %v6384_v48, %v6382_v29  ;;  %v6581_v54 = vmul.f32 0.38709676, %v4122_v5  ;;  %v6582_v55 = vmul.f32 0.38709676, %v4127_v62 }
 0x37c   : > { %v4142_v12 = vadd.f32 %v11161_v47, %v4141_v28  ;;  %9306 = vmatmul.mubr.msk.f32.gmra.mrb[86].mxu1 %vm4174_vm2, %v11184_v21  ;;  %v6485_v58 = vadd.f32 %v6483_v52, %v6481_v9  ;;  %v6486_v43 = vadd.f32 %v6484_v41, %v6482_v7  ;;  %v6583_v44 = vmul.f32 0.61290324, %v4132_v24 }
 0x37d   : > { %9312 = vmatprep.mubr.msk.f32.mxu1 %vm4174_vm2, %v11154_v30  ;;  %v11297_v59 = vpack.c.bf16 %v6386_v6, %v6385_v27  ;;  %v6584_v31 = vmul.f32 0.61290324, %v4137_v37  ;;  %v6681_v60 = vmul.f32 0.9032258, %v4132_v24  ;;  %v6682_v2 = vmul.f32 0.9032258, %v4137_v37 }
 0x37e   : > { %v9244_v34 = vpop.f32.mrb[60].mxu1  ;;  %v11299_v33 = vpack.c.bf16 %v6486_v43, %v6485_v58  ;;  %v6585_v62 = vadd.f32 %v6583_v44, %v6581_v54  ;;  %v6683_v16 = vmul.f32 0.09677419, %v4142_v12  ;;  %v6684_v5 = vmul.f32 0.09677419, %v4147_v53 }
 0x37f   : > { %v4157_v35 = vadd.f32 %v9244_v34, %v11161_v47  ;;  %v4151_v17 = vpop.f32.mrb[61].mxu1  ;;  %v6586_v10 = vadd.f32 %v6584_v31, %v6582_v55  ;;  %v6781_v11 = vmul.f32 0.41935483, %v4132_v24  ;;  %v6782_v36 = vmul.f32 0.41935483, %v4137_v37 }
 0x380   : > { %v4152_v14 = vadd.f32 %v11161_v47, %v4151_v17  ;;  %9313 = vmatmul.mubr.msk.f32.vlgmr.msra.gmra.mrb[88].mxu1 %vm4174_vm2, %v11169_v1  ;;  %v6685_v4 = vadd.f32 %v6683_v16, %v6681_v60  ;;  %v6686_v18 = vadd.f32 %v6684_v5, %v6682_v2  ;;  %v6783_v19 = vmul.f32 0.58064514, %v4142_v12 }
 0x381   : > { %9599 = vmatpush3.bf16.msra.mxu1 %v11212_v38  ;;  %9315 = vmatprep.mubr.msk.f32.mxu1 %vm4174_vm2, %v11175_v0  ;;  %v11308_v22 = vpack.c.bf16 %v6586_v10, %v6585_v62  ;;  %v6784_v23 = vmul.f32 0.58064514, %v4147_v53  ;;  %v6881_v42 = vmul.f32 0.9354839, %v4142_v12  ;;  %v6882_v63 = vmul.f32 0.9354839, %v4147_v53 }
 0x382   : > { %9601 = vmatprep.subr.bf16.mxu1 %v11215_v39  ;;  %v9247_v37 = vpop.f32.mrb[62].mxu1  ;;  %v11311_v29 = vpack.c.bf16 %v6686_v18, %v6685_v4  ;;  %v6785_v24 = vadd.f32 %v6783_v19, %v6781_v11  ;;  %v6883_v32 = vmul.f32 0.06451613, %v4152_v14  ;;  %v6884_v45 = vmul.f32 0.06451613, %v4157_v35 }
 0x383   : > { %v4167_v25 = vadd.f32 %v9247_v37, %v11161_v47  ;;  %v4161_v48 = vpop.f32.mrb[63].mxu1  ;;  %v6786_v38 = vadd.f32 %v6784_v23, %v6782_v36  ;;  %v6981_v9 = vmul.f32 0.4516129, %v4142_v12  ;;  %v6982_v7 = vmul.f32 0.4516129, %v4147_v53 }
 0x384   : > { %v4162_v51 = vadd.f32 %v11161_v47, %v4161_v48  ;;  %9316 = vmatmul.mubr.msk.f32.gmra.mrb[90].mxu1 %vm4174_vm2, %v11184_v21  ;;  %v6885_v27 = vadd.f32 %v6883_v32, %v6881_v42  ;;  %v6886_v52 = vadd.f32 %v6884_v45, %v6882_v63  ;;  %v6983_v41 = vmul.f32 0.5483871, %v4152_v14 }
 0x385   : > { %v7084_v28 = vmul.f32 0.032258064, %v4167_v25  ;;  %v7184_v6 = vmul.f32 0.516129, %v4167_v25  ;;  %9322 = vmatprep.mubr.msk.f32.mxu1 %vm4174_vm2, %v11154_v30  ;;  %v11319_v54 = vpack.c.bf16 %v6786_v38, %v6785_v24  ;;  %v6984_v55 = vmul.f32 0.5483871, %v4157_v35 }
 0x386   : > { %v7083_v58 = vmul.f32 0.032258064, %v4162_v51  ;;  %v7183_v43 = vmul.f32 0.516129, %v4162_v51  ;;  %v11321_v12 = vpack.c.bf16 %v6886_v52, %v6885_v27  ;;  %v6985_v53 = vadd.f32 %v6983_v41, %v6981_v9  ;;  %v9962_v41 = vld [vmem:[%s11851_s6 + $0x8] sm:$0xff] }
 0x387   : > { %v6986_v47 = vadd.f32 %v6984_v55, %v6982_v7  ;;  %v7081_v44 = vmul.f32 0.9677419, %v4152_v14  ;;  %v7082_v31 = vmul.f32 0.9677419, %v4157_v35  ;;  %v7181_v60 = vmul.f32 0.48387095, %v4152_v14 }
 0x388   : > { %9323 = vmatmul.mubr.msk.f32.vlgmr.msra.gmra.mrb[92].mxu1 %vm4174_vm2, %v11169_v1  ;;  %v7182_v2 = vmul.f32 0.48387095, %v4157_v35  ;;  %v11325_v34 = vpack.c.bf16 %v4167_v25, %v4162_v51  ;;  %v9961_v7 = vld [vmem:[%s11851_s6] sm:$0xff] }
 0x389   : > { %9603 = vmatpush3.bf16.msra.mxu1 %v11215_v39  ;;  %9325 = vmatprep.mubr.msk.f32.mxu1 %vm4174_vm2, %v11175_v0  ;;  %v11330_v62 = vpack.c.bf16 %v6986_v47, %v6985_v53  ;;  %v7085_v16 = vadd.f32 %v7083_v58, %v7081_v44  ;;  %v7086_v5 = vadd.f32 %v7084_v28, %v7082_v31 }
 0x38a   : > { %9605 = vmatprep.subr.bf16.mxu1 %v11223_v49  ;;  %v7185_v17 = vadd.f32 %v7183_v43, %v7181_v60  ;;  %v7186_v10 = vadd.f32 %v7184_v6, %v7182_v2 }
 0x38b   : > { %v11333_v11 = vpack.c.bf16 %v7086_v5, %v7085_v16 }
 0x38c   : > { %9326 = vmatmul.mubr.msk.f32.gmra.mrb[94].mxu1 %vm4174_vm2, %v11184_v21  ;;  %v11337_v35 = vpack.c.bf16 %v7186_v10, %v7185_v17 }
 0x38d   : > { %9332 = vmatprep.mubr.msk.f32.mxu1 %vm4174_vm2, %v11154_v30 }
 0x390   : > { %9333 = vmatmul.mubr.msk.f32.vlgmr.msra.gmra.mrb[96].mxu1 %vm4174_vm2, %v11169_v1 }
 0x391   : > { %9607 = vmatpush3.bf16.msra.mxu1 %v11223_v49  ;;  %9335 = vmatprep.mubr.msk.f32.mxu1 %vm4174_vm2, %v11175_v0 }
 0x392   : > { %9609 = vmatprep.subr.bf16.mxu1 %v11229_v56 }
 0x394   : > { %9336 = vmatmul.mubr.msk.f32.gmra.mrb[98].mxu1 %vm4174_vm2, %v11184_v21 }
 0x395   : > { %9342 = vmatprep.mubr.msk.f32.mxu1 %vm4174_vm2, %v11154_v30 }
 0x398   : > { %9343 = vmatmul.mubr.msk.f32.vlgmr.msra.gmra.mrb[100].mxu1 %vm4174_vm2, %v11169_v1 }
 0x399   : > { %9611 = vmatpush3.bf16.msra.mxu1 %v11229_v56  ;;  %9345 = vmatprep.mubr.msk.f32.mxu1 %vm4174_vm2, %v11175_v0 }
 0x39a   : > { %9613 = vmatprep.subr.bf16.mxu1 %v11233_v13 }
 0x39c   : > { %9346 = vmatmul.mubr.msk.f32.gmra.mrb[102].mxu1 %vm4174_vm2, %v11184_v21 }
 0x39d   : > { %9352 = vmatprep.mubr.msk.f32.mxu1 %vm4174_vm2, %v11154_v30 }
 0x3a0   : > { %9353 = vmatmul.mubr.msk.f32.vlgmr.msra.gmra.mrb[104].mxu1 %vm4174_vm2, %v11169_v1 }
 0x3a1   : > { %9615 = vmatpush3.bf16.msra.mxu1 %v11233_v13  ;;  %9355 = vmatprep.mubr.msk.f32.mxu1 %vm4174_vm2, %v11175_v0 }
 0x3a2   : > { %9617 = vmatprep.subr.bf16.mxu1 %v11236_v61 }
 0x3a4   : > { %9356 = vmatmul.mubr.msk.f32.gmra.mrb[106].mxu1 %vm4174_vm2, %v11184_v21 }
 0x3a5   : > { %9362 = vmatprep.mubr.msk.f32.mxu1 %vm4174_vm2, %v11154_v30 }
 0x3a8   : > { %9363 = vmatmul.mubr.msk.f32.vlgmr.msra.gmra.mrb[108].mxu1 %vm4174_vm2, %v11169_v1 }
 0x3a9   : > { %9619 = vmatpush3.bf16.msra.mxu1 %v11236_v61  ;;  %9365 = vmatprep.mubr.msk.f32.mxu1 %vm4174_vm2, %v11175_v0 }
 0x3aa   : > { %9621 = vmatprep.subr.bf16.mxu1 %v11245_v15 }
 0x3ac   : > { %9366 = vmatmul.mubr.msk.f32.gmra.mrb[110].mxu1 %vm4174_vm2, %v11184_v21 }
 0x3ad   : > { %9372 = vmatprep.mubr.msk.f32.mxu1 %vm4174_vm2, %v11154_v30 }
 0x3b0   : > { %9373 = vmatmul.mubr.msk.f32.vlgmr.msra.gmra.mrb[112].mxu1 %vm4174_vm2, %v11169_v1 }
 0x3b1   : > { %9623 = vmatpush3.bf16.msra.mxu1 %v11245_v15  ;;  %9375 = vmatprep.mubr.msk.f32.mxu1 %vm4174_vm2, %v11175_v0 }
 0x3b2   : > { %9625 = vmatprep.subr.bf16.mxu1 %v11251_v26 }
 0x3b4   : > { %9376 = vmatmul.mubr.msk.f32.gmra.mrb[114].mxu1 %vm4174_vm2, %v11184_v21 }
 0x3b5   : > { %9382 = vmatprep.mubr.msk.f32.mxu1 %vm4174_vm2, %v11154_v30 }
 0x3b8   : > { %9383 = vmatmul.mubr.msk.f32.vlgmr.msra.gmra.mrb[116].mxu1 %vm4174_vm2, %v11169_v1 }
 0x3b9   : > { %9627 = vmatpush3.bf16.msra.mxu1 %v11251_v26  ;;  %9385 = vmatprep.mubr.msk.f32.mxu1 %vm4174_vm2, %v11175_v0 }
 0x3ba   : > { %9629 = vmatprep.subr.bf16.mxu1 %v11255_v46 }
 0x3bc   : > { %9386 = vmatmul.mubr.msk.f32.gmra.mrb[118].mxu1 %vm4174_vm2, %v11184_v21 }
 0x3bd   : > { %9392 = vmatprep.mubr.msk.f32.mxu1 %vm4174_vm2, %v11154_v30 }
 0x3c0   : > { %9393 = vmatmul.mubr.msk.f32.vlgmr.msra.gmra.mrb[120].mxu1 %vm4174_vm2, %v11169_v1 }
 0x3c1   : > { %9631 = vmatpush3.bf16.msra.mxu1 %v11255_v46  ;;  %9395 = vmatprep.mubr.msk.f32.mxu1 %vm4174_vm2, %v11175_v0 }
 0x3c2   : > { %9633 = vmatprep.subr.bf16.mxu1 %v11264_v57 }
 0x3c4   : > { %9396 = vmatmul.mubr.msk.f32.gmra.mrb[122].mxu1 %vm4174_vm2, %v11184_v21 }
 0x3c5   : > { %9402 = vmatprep.mubr.msk.f32.mxu1 %vm4174_vm2, %v11154_v30 }
 0x3c8   : > { %9403 = vmatmul.mubr.msk.f32.vlgmr.msra.gmra.mrb[124].mxu1 %vm4174_vm2, %v11169_v1 }
 0x3c9   : > { %9635 = vmatpush3.bf16.msra.mxu1 %v11264_v57  ;;  %9405 = vmatprep.mubr.msk.f32.mxu1 %vm4174_vm2, %v11175_v0 }
 0x3ca   : > { %9637 = vmatprep.subr.bf16.mxu1 %v11267_v50 }
 0x3cc   : > { %9406 = vmatmul.mubr.msk.f32.gmra.mrb[126].mxu1 %vm4174_vm2, %v11184_v21 }
 0x3cd   : > { %9412 = vmatprep.mubr.msk.f32.mxu1 %vm4174_vm2, %v11154_v30 }
 0x3d0   : > { %9413 = vmatmul.mubr.msk.f32.vlgmr.msra.gmra.mrb[128].mxu1 %vm4174_vm2, %v11169_v1 }
 0x3d1   : > { %9639 = vmatpush3.bf16.msra.mxu1 %v11267_v50  ;;  %9415 = vmatprep.mubr.msk.f32.mxu1 %vm4174_vm2, %v11175_v0 }
 0x3d2   : > { %9641 = vmatprep.subr.bf16.mxu1 %v11275_v3 }
 0x3d4   : > { %9416 = vmatmul.mubr.msk.f32.gmra.mrb[130].mxu1 %vm4174_vm2, %v11184_v21 }
 0x3d5   : > { %9422 = vmatprep.mubr.msk.f32.mxu1 %vm4174_vm2, %v11154_v30 }
 0x3d8   : > { %9423 = vmatmul.mubr.msk.f32.vlgmr.msra.gmra.mrb[132].mxu1 %vm4174_vm2, %v11169_v1 }
 0x3d9   : > { %9643 = vmatpush3.bf16.msra.mxu1 %v11275_v3  ;;  %9425 = vmatprep.mubr.msk.f32.mxu1 %vm4174_vm2, %v11175_v0 }
 0x3da   : > { %9645 = vmatprep.subr.bf16.mxu1 %v11277_v20 }
 0x3dc   : > { %9426 = vmatmul.mubr.msk.f32.gmra.mrb[134].mxu1 %vm4174_vm2, %v11184_v21 }
 0x3dd   : > { %9432 = vmatprep.mubr.msk.f32.mxu1 %vm4174_vm2, %v11154_v30 }
 0x3e0   : > { %9433 = vmatmul.mubr.msk.f32.vlgmr.msra.gmra.mrb[136].mxu1 %vm4174_vm2, %v11169_v1 }
 0x3e1   : > { %9647 = vmatpush3.bf16.msra.mxu1 %v11277_v20  ;;  %9435 = vmatprep.mubr.msk.f32.mxu1 %vm4174_vm2, %v11175_v0 }
 0x3e2   : > { %9649 = vmatprep.subr.bf16.mxu1 %v11286_v40 }
 0x3e4   : > { %9436 = vmatmul.mubr.msk.f32.gmra.mrb[138].mxu1 %vm4174_vm2, %v11184_v21 }
 0x3e5   : > { %9442 = vmatprep.mubr.msk.f32.mxu1 %vm4174_vm2, %v11154_v30 }
 0x3e8   : > { %9443 = vmatmul.mubr.msk.f32.vlgmr.msra.gmra.mrb[140].mxu1 %vm4174_vm2, %v11169_v1 }
 0x3e9   : > { %9651 = vmatpush3.bf16.msra.mxu1 %v11286_v40  ;;  %9445 = vmatprep.mubr.msk.f32.mxu1 %vm4174_vm2, %v11175_v0 }
 0x3ea   : > { %9653 = vmatprep.subr.bf16.mxu1 %v11289_v8 }
 0x3ec   : > { %9446 = vmatmul.mubr.msk.f32.gmra.mrb[142].mxu1 %vm4174_vm2, %v11184_v21 }
 0x3ed   : > { %9452 = vmatprep.mubr.msk.f32.mxu1 %vm4174_vm2, %v11154_v30 }
 0x3f0   : > { %9453 = vmatmul.mubr.msk.f32.vlgmr.msra.gmra.mrb[144].mxu1 %vm4174_vm2, %v11169_v1 }
 0x3f1   : > { %9655 = vmatpush3.bf16.msra.mxu1 %v11289_v8  ;;  %9455 = vmatprep.mubr.msk.f32.mxu1 %vm4174_vm2, %v11175_v0 }
 0x3f2   : > { %9657 = vmatprep.subr.bf16.mxu1 %v11297_v59 }
 0x3f4   : > { %9456 = vmatmul.mubr.msk.f32.gmra.mrb[146].mxu1 %vm4174_vm2, %v11184_v21 }
 0x3f5   : > { %9462 = vmatprep.mubr.msk.f32.mxu1 %vm4174_vm2, %v11154_v30 }
 0x3f8   : > { %9463 = vmatmul.mubr.msk.f32.vlgmr.msra.gmra.mrb[148].mxu1 %vm4174_vm2, %v11169_v1 }
 0x3f9   : > { %9659 = vmatpush3.bf16.msra.mxu1 %v11297_v59  ;;  %9465 = vmatprep.mubr.msk.f32.mxu1 %vm4174_vm2, %v11175_v0 }
 0x3fa   : > { %9661 = vmatprep.subr.bf16.mxu1 %v11299_v33 }
 0x3fc   : > { %9466 = vmatmul.mubr.msk.f32.gmra.mrb[150].mxu1 %vm4174_vm2, %v11184_v21 }
 0x3fd   : > { %9472 = vmatprep.mubr.msk.f32.mxu1 %vm4174_vm2, %v11154_v30 }
 0x400   : > { %9473 = vmatmul.mubr.msk.f32.vlgmr.msra.gmra.mrb[152].mxu1 %vm4174_vm2, %v11169_v1 }
 0x401   : > { %9663 = vmatpush3.bf16.msra.mxu1 %v11299_v33  ;;  %9475 = vmatprep.mubr.msk.f32.mxu1 %vm4174_vm2, %v11175_v0 }
 0x402   : > { %9665 = vmatprep.subr.bf16.mxu1 %v11308_v22 }
 0x404   : > { %9476 = vmatmul.mubr.msk.f32.gmra.mrb[154].mxu1 %vm4174_vm2, %v11184_v21 }
 0x405   : > { %9482 = vmatprep.mubr.msk.f32.mxu1 %vm4174_vm2, %v11154_v30 }
 0x408   : > { %9483 = vmatmul.mubr.msk.f32.vlgmr.msra.gmra.mrb[156].mxu1 %vm4174_vm2, %v11169_v1 }
 0x409   : > { %9667 = vmatpush3.bf16.msra.mxu1 %v11308_v22  ;;  %9485 = vmatprep.mubr.msk.f32.mxu1 %vm4174_vm2, %v11175_v0 }
 0x40a   : > { %9669 = vmatprep.subr.bf16.mxu1 %v11311_v29 }
 0x40c   : > { %9486 = vmatmul.mubr.msk.f32.gmra.mrb[158].mxu1 %vm4174_vm2, %v11184_v21 }
 0x40d   : > { %9492 = vmatprep.mubr.msk.f32.mxu1 %vm4174_vm2, %v11154_v30 }
 0x410   : > { %9493 = vmatmul.mubr.msk.f32.vlgmr.msra.gmra.mrb[160].mxu1 %vm4174_vm2, %v11169_v1 }
 0x411   : > { %9671 = vmatpush3.bf16.msra.mxu1 %v11311_v29  ;;  %9495 = vmatprep.mubr.msk.f32.mxu1 %vm4174_vm2, %v11175_v0 }
 0x412   : > { %9673 = vmatprep.subr.bf16.mxu1 %v11319_v54 }
 0x414   : > { %9496 = vmatmul.mubr.msk.f32.gmra.mrb[162].mxu1 %vm4174_vm2, %v11184_v21 }
 0x415   : > { %9502 = vmatprep.mubr.msk.f32.mxu1 %vm4174_vm2, %v11154_v30 }
 0x418   : > { %9503 = vmatmul.mubr.msk.f32.vlgmr.msra.gmra.mrb[164].mxu1 %vm4174_vm2, %v11169_v1 }
 0x419   : > { %9675 = vmatpush3.bf16.msra.mxu1 %v11319_v54  ;;  %9505 = vmatprep.mubr.msk.f32.mxu1 %vm4174_vm2, %v11175_v0 }
 0x41a   : > { %9677 = vmatprep.subr.bf16.mxu1 %v11321_v12 }
 0x41c   : > { %9506 = vmatmul.mubr.msk.f32.gmra.mrb[166].mxu1 %vm4174_vm2, %v11184_v21 }
 0x41d   : > { %9512 = vmatprep.mubr.msk.f32.mxu1 %vm4174_vm2, %v11154_v30 }
 0x420   : > { %9513 = vmatmul.mubr.msk.f32.vlgmr.msra.gmra.mrb[168].mxu1 %vm4174_vm2, %v11169_v1 }
 0x421   : > { %9679 = vmatpush3.bf16.msra.mxu1 %v11321_v12  ;;  %9515 = vmatprep.mubr.msk.f32.mxu1 %vm4174_vm2, %v11175_v0 }
 0x422   : > { %9681 = vmatprep.subr.bf16.mxu1 %v11330_v62 }
 0x423   : > { %v9254_v39 = vpop.f32.mrb[64].mxu1 }
 0x424   : > { %9516 = vmatmul.mubr.msk.f32.gmra.mrb[170].mxu1 %vm4174_vm2, %v11184_v21  ;;  %v4273_v49 = vmax.f32 %v9254_v39, 0.0  ;;  %v4253_v56 = vpop.f32.mrb[65].mxu1 }
 0x425   : > { %9522 = vmatprep.mubr.msk.f32.mxu1 %vm4174_vm2, %v11154_v30  ;;  %v4272_v13 = vmax.f32 %v4253_v56, 0.0 }
 0x426   : > { %4278 = vst.msk [vmem:[%s11531_s23 + $0x8] sm:$0xff] %vm4276_vm3, %v4273_v49 }
 0x427   : > { %4277 = vst.msk [vmem:[%s11531_s23] sm:$0xff] %vm4276_vm3, %v4272_v13  ;;  %v9257_v61 = vpop.f32.mrb[66].mxu1 }
 0x428   : > { %9523 = vmatmul.mubr.msk.f32.vlgmr.msra.gmra.mrb[172].mxu1 %vm4174_vm2, %v11169_v1  ;;  %v4275_v15 = vmax.f32 %v9257_v61, 0.0  ;;  %v4263_v26 = vpop.f32.mrb[67].mxu1 }
 0x429   : > { %9683 = vmatpush3.bf16.msra.mxu1 %v11330_v62  ;;  %9525 = vmatprep.mubr.msk.f32.mxu1 %vm4174_vm2, %v11175_v0  ;;  %v4274_v46 = vmax.f32 %v4263_v26, 0.0 }
 0x42a   : > { %9685 = vmatprep.subr.bf16.mxu1 %v11333_v11  ;;  %4280 = vst.msk [vmem:[%s11531_s23 + $0x18] sm:$0xff] %vm4276_vm3, %v4275_v15 }
 0x42b   : > { %4279 = vst.msk [vmem:[%s11531_s23 + $0x10] sm:$0xff] %vm4276_vm3, %v4274_v46  ;;  %v9264_v57 = vpop.f32.mrb[68].mxu1 }
 0x42c   : > { %9526 = vmatmul.mubr.msk.f32.gmra.mrb[174].mxu1 %vm4174_vm2, %v11184_v21  ;;  %v4373_v50 = vmax.f32 %v9264_v57, 0.0  ;;  %v4353_v3 = vpop.f32.mrb[69].mxu1 }
 0x42d   : > { %9532 = vmatprep.mubr.msk.f32.mxu1 %vm4174_vm2, %v11154_v30  ;;  %v4372_v20 = vmax.f32 %v4353_v3, 0.0 }
 0x42e   : > { %7980 = vst.msk [vmem:[%s11531_s23 + $0x28] sm:$0xff] %vm4276_vm3, %v4373_v50 }
 0x42f   : > { %7979 = vst.msk [vmem:[%s11531_s23 + $0x20] sm:$0xff] %vm4276_vm3, %v4372_v20  ;;  %v9267_v40 = vpop.f32.mrb[70].mxu1 }
 0x430   : > { %9533 = vmatmul.mubr.msk.f32.vlgmr.msra.gmra.mrb[176].mxu1 %vm4174_vm2, %v11169_v1  ;;  %v4375_v8 = vmax.f32 %v9267_v40, 0.0  ;;  %v4363_v59 = vpop.f32.mrb[71].mxu1 }
 0x431   : > { %9687 = vmatpush3.bf16.msra.mxu1 %v11333_v11  ;;  %9535 = vmatprep.mubr.msk.f32.mxu1 %vm4174_vm2, %v11175_v0  ;;  %v4374_v33 = vmax.f32 %v4363_v59, 0.0 }
 0x432   : > { %9689 = vmatprep.subr.bf16.mxu1 %v11337_v35  ;;  %7982 = vst.msk [vmem:[%s11531_s23 + $0x38] sm:$0xff] %vm4276_vm3, %v4375_v8 }
 0x433   : > { %7981 = vst.msk [vmem:[%s11531_s23 + $0x30] sm:$0xff] %vm4276_vm3, %v4374_v33  ;;  %v9274_v36 = vpop.f32.mrb[72].mxu1 }
 0x434   : > { %9536 = vmatmul.mubr.msk.f32.gmra.mrb[178].mxu1 %vm4174_vm2, %v11184_v21  ;;  %v4473_v14 = vmax.f32 %v9274_v36, 0.0  ;;  %v4453_v4 = vpop.f32.mrb[73].mxu1 }
 0x435   : > { %9542 = vmatprep.mubr.msk.f32.mxu1 %vm4174_vm2, %v11154_v30  ;;  %v4472_v18 = vmax.f32 %v4453_v4, 0.0 }
 0x436   : > { %7988 = vst.msk [vmem:[%s11531_s23 + $0x48] sm:$0xff] %vm4276_vm3, %v4473_v14 }
 0x437   : > { %7987 = vst.msk [vmem:[%s11531_s23 + $0x40] sm:$0xff] %vm4276_vm3, %v4472_v18  ;;  %v9277_v19 = vpop.f32.mrb[74].mxu1 }
 0x438   : > { %9543 = vmatmul.mubr.msk.f32.vlgmr.msra.gmra.mrb[180].mxu1 %vm4174_vm2, %v11169_v1  ;;  %v4475_v22 = vmax.f32 %v9277_v19, 0.0  ;;  %v4463_v23 = vpop.f32.mrb[75].mxu1 }
 0x439   : > { %9691 = vmatpush3.bf16.msra.mxu1 %v11337_v35  ;;  %9545 = vmatprep.mubr.msk.f32.mxu1 %vm4174_vm2, %v11175_v0  ;;  %v4474_v42 = vmax.f32 %v4463_v23, 0.0 }
 0x43a   : > { %9693 = vmatprep.subr.bf16.mxu1 %v11325_v34  ;;  %7990 = vst.msk [vmem:[%s11531_s23 + $0x58] sm:$0xff] %vm4276_vm3, %v4475_v22 }
 0x43b   : > { %7989 = vst.msk [vmem:[%s11531_s23 + $0x50] sm:$0xff] %vm4276_vm3, %v4474_v42  ;;  %v9284_v63 = vpop.f32.mrb[76].mxu1 }
 0x43c   : > { %9546 = vmatmul.mubr.msk.f32.gmra.mrb[182].mxu1 %vm4174_vm2, %v11184_v21  ;;  %v4573_v37 = vmax.f32 %v9284_v63, 0.0  ;;  %v4553_v29 = vpop.f32.mrb[77].mxu1 }
 0x43d   : > { %9552 = vmatprep.mubr.msk.f32.mxu1 %vm4174_vm2, %v11154_v30  ;;  %v4572_v24 = vmax.f32 %v4553_v29, 0.0 }
 0x43e   : > { %7996 = vst.msk [vmem:[%s11531_s23 + $0x68] sm:$0xff] %vm4276_vm3, %v4573_v37 }
 0x43f   : > { %7995 = vst.msk [vmem:[%s11531_s23 + $0x60] sm:$0xff] %vm4276_vm3, %v4572_v24  ;;  %v9287_v32 = vpop.f32.mrb[78].mxu1 }
 0x440   : > { %9553 = vmatmul.mubr.msk.f32.vlgmr.msra.gmra.mrb[184].mxu1 %vm4174_vm2, %v11169_v1  ;;  %v4575_v45 = vmax.f32 %v9287_v32, 0.0  ;;  %v4563_v25 = vpop.f32.mrb[79].mxu1 }
 0x441   : > { %9695 = vmatpush3.bf16.msra.mxu1 %v11325_v34  ;;  %v4574_v48 = vmax.f32 %v4563_v25, 0.0  ;;  %9555 = vmatprep.mubr.msk.f32.mxu1 %vm4174_vm2, %v11175_v0 }
 0x442   : > { %7998 = vst.msk [vmem:[%s11531_s23 + $0x78] sm:$0xff] %vm4276_vm3, %v4575_v45 }
 0x443   : > { %7997 = vst.msk [vmem:[%s11531_s23 + $0x70] sm:$0xff] %vm4276_vm3, %v4574_v48  ;;  %v9294_v30 = vpop.f32.mrb[80].mxu1 }
 0x444   : > { %v4673_v38 = vmax.f32 %v9294_v30, 0.0  ;;  %v4653_v9 = vpop.f32.mrb[81].mxu1  ;;  %9556 = vmatmul.mubr.msk.f32.gmra.mrb[186].mxu1 %vm4174_vm2, %v11184_v21 }
 0x445   : > { %v4672_v1 = vmax.f32 %v4653_v9, 0.0  ;;  %9562 = vmatprep.mubr.msk.f32.mxu1 %vm4174_vm2, %v9961_v7 }
 0x446   : > { %8004 = vst.msk [vmem:[%s11531_s23 + $0x88] sm:$0xff] %vm4276_vm3, %v4673_v38 }
 0x447   : > { %8003 = vst.msk [vmem:[%s11531_s23 + $0x80] sm:$0xff] %vm4276_vm3, %v4672_v1  ;;  %v9297_v51 = vpop.f32.mrb[82].mxu1 }
 0x448   : > { %v4675_v27 = vmax.f32 %v9297_v51, 0.0  ;;  %v4663_v52 = vpop.f32.mrb[83].mxu1  ;;  %9563 = vmatmul.mubr.msk.f32.vlgmr.msra.gmra.mrb[188].mxu1 %vm4174_vm2, %v9962_v41 }
 0x449   : > { %v4674_v28 = vmax.f32 %v4663_v52, 0.0  ;;  %9565 = vmatprep.mubr.msk.f32.mxu1 %vm4174_vm2, %v11175_v0 }
 0x44a   : > { %8006 = vst.msk [vmem:[%s11531_s23 + $0x98] sm:$0xff] %vm4276_vm3, %v4675_v27 }
 0x44b   : > { %8005 = vst.msk [vmem:[%s11531_s23 + $0x90] sm:$0xff] %vm4276_vm3, %v4674_v28  ;;  %v9304_v6 = vpop.f32.mrb[84].mxu1 }
 0x44c   : > { %v4773_v54 = vmax.f32 %v9304_v6, 0.0  ;;  %v4753_v55 = vpop.f32.mrb[85].mxu1  ;;  %9566 = vmatmul.mubr.msk.f32.gmra.mrb[190].mxu1 %vm4174_vm2, %v11184_v21 }
 0x44d   : > { %v4772_v58 = vmax.f32 %v4753_v55, 0.0 }
 0x44e   : > { %8012 = vst.msk [vmem:[%s11531_s23 + $0xa8] sm:$0xff] %vm4276_vm3, %v4773_v54 }
 0x44f   : > { %8011 = vst.msk [vmem:[%s11531_s23 + $0xa0] sm:$0xff] %vm4276_vm3, %v4772_v58  ;;  %v9307_v43 = vpop.f32.mrb[86].mxu1 }
 0x450   : > { %v4775_v0 = vmax.f32 %v9307_v43, 0.0  ;;  %v4763_v12 = vpop.f32.mrb[87].mxu1 }
 0x451   : > { %v4774_v53 = vmax.f32 %v4763_v12, 0.0 }
 0x452   : > { %8014 = vst.msk [vmem:[%s11531_s23 + $0xb8] sm:$0xff] %vm4276_vm3, %v4775_v0 }
 0x453   : > { %8013 = vst.msk [vmem:[%s11531_s23 + $0xb0] sm:$0xff] %vm4276_vm3, %v4774_v53  ;;  %v9314_v47 = vpop.f32.mrb[88].mxu1 }
 0x454   : > { %v4873_v44 = vmax.f32 %v9314_v47, 0.0  ;;  %v4853_v21 = vpop.f32.mrb[89].mxu1 }
 0x455   : > { %v4872_v31 = vmax.f32 %v4853_v21, 0.0 }
 0x456   : > { %8020 = vst.msk [vmem:[%s11531_s23 + $0xc8] sm:$0xff] %vm4276_vm3, %v4873_v44 }
 0x457   : > { %8019 = vst.msk [vmem:[%s11531_s23 + $0xc0] sm:$0xff] %vm4276_vm3, %v4872_v31  ;;  %v9317_v60 = vpop.f32.mrb[90].mxu1 }
 0x458   : > { %v4875_v2 = vmax.f32 %v9317_v60, 0.0  ;;  %v4863_v34 = vpop.f32.mrb[91].mxu1 }
 0x459   : > { %v4874_v62 = vmax.f32 %v4863_v34, 0.0 }
 0x45a   : > { %8022 = vst.msk [vmem:[%s11531_s23 + $0xd8] sm:$0xff] %vm4276_vm3, %v4875_v2 }
 0x45b   : > { %8021 = vst.msk [vmem:[%s11531_s23 + $0xd0] sm:$0xff] %vm4276_vm3, %v4874_v62  ;;  %v9324_v16 = vpop.f32.mrb[92].mxu1 }
 0x45c   : > { %v4973_v5 = vmax.f32 %v9324_v16, 0.0  ;;  %v4953_v17 = vpop.f32.mrb[93].mxu1 }
 0x45d   : > { %v4972_v10 = vmax.f32 %v4953_v17, 0.0 }
 0x45e   : > { %8028 = vst.msk [vmem:[%s11531_s23 + $0xe8] sm:$0xff] %vm4276_vm3, %v4973_v5 }
 0x45f   : > { %8027 = vst.msk [vmem:[%s11531_s23 + $0xe0] sm:$0xff] %vm4276_vm3, %v4972_v10  ;;  %v9327_v11 = vpop.f32.mrb[94].mxu1 }
 0x460   : > { %v4975_v35 = vmax.f32 %v9327_v11, 0.0  ;;  %v4963_v39 = vpop.f32.mrb[95].mxu1 }
 0x461   : > { %v4974_v49 = vmax.f32 %v4963_v39, 0.0 }
 0x462   : > { %8030 = vst.msk [vmem:[%s11531_s23 + $0xf8] sm:$0xff] %vm4276_vm3, %v4975_v35 }
 0x463   : > { %8029 = vst.msk [vmem:[%s11531_s23 + $0xf0] sm:$0xff] %vm4276_vm3, %v4974_v49  ;;  %v9334_v56 = vpop.f32.mrb[96].mxu1 }
 0x464   : > { %v5073_v13 = vmax.f32 %v9334_v56, 0.0  ;;  %v5053_v61 = vpop.f32.mrb[97].mxu1 }
 0x465   : > { %v5072_v15 = vmax.f32 %v5053_v61, 0.0 }
 0x466   : > { %8036 = vst.msk [vmem:[%s11531_s23 + $0x108] sm:$0xff] %vm4276_vm3, %v5073_v13 }
 0x467   : > { %8035 = vst.msk [vmem:[%s11531_s23 + $0x100] sm:$0xff] %vm4276_vm3, %v5072_v15  ;;  %v9337_v26 = vpop.f32.mrb[98].mxu1 }
 0x468   : > { %v5075_v46 = vmax.f32 %v9337_v26, 0.0  ;;  %v5063_v57 = vpop.f32.mrb[99].mxu1 }
 0x469   : > { %v5074_v50 = vmax.f32 %v5063_v57, 0.0 }
 0x46a   : > { %8038 = vst.msk [vmem:[%s11531_s23 + $0x118] sm:$0xff] %vm4276_vm3, %v5075_v46 }
 0x46b   : > { %8037 = vst.msk [vmem:[%s11531_s23 + $0x110] sm:$0xff] %vm4276_vm3, %v5074_v50  ;;  %v9344_v3 = vpop.f32.mrb[100].mxu1 }
 0x46c   : > { %v5173_v20 = vmax.f32 %v9344_v3, 0.0  ;;  %v5153_v40 = vpop.f32.mrb[101].mxu1 }
 0x46d   : > { %v5172_v8 = vmax.f32 %v5153_v40, 0.0 }
 0x46e   : > { %8044 = vst.msk [vmem:[%s11531_s23 + $0x128] sm:$0xff] %vm4276_vm3, %v5173_v20 }
 0x46f   : > { %8043 = vst.msk [vmem:[%s11531_s23 + $0x120] sm:$0xff] %vm4276_vm3, %v5172_v8  ;;  %v9347_v59 = vpop.f32.mrb[102].mxu1 }
 0x470   : > { %v5175_v33 = vmax.f32 %v9347_v59, 0.0  ;;  %v5163_v36 = vpop.f32.mrb[103].mxu1 }
 0x471   : > { %v5174_v14 = vmax.f32 %v5163_v36, 0.0 }
 0x472   : > { %8046 = vst.msk [vmem:[%s11531_s23 + $0x138] sm:$0xff] %vm4276_vm3, %v5175_v33 }
 0x473   : > { %8045 = vst.msk [vmem:[%s11531_s23 + $0x130] sm:$0xff] %vm4276_vm3, %v5174_v14  ;;  %v9354_v4 = vpop.f32.mrb[104].mxu1 }
 0x474   : > { %v5273_v18 = vmax.f32 %v9354_v4, 0.0  ;;  %v5253_v19 = vpop.f32.mrb[105].mxu1 }
 0x475   : > { %v5272_v22 = vmax.f32 %v5253_v19, 0.0 }
 0x476   : > { %8052 = vst.msk [vmem:[%s11531_s23 + $0x148] sm:$0xff] %vm4276_vm3, %v5273_v18 }
 0x477   : > { %8051 = vst.msk [vmem:[%s11531_s23 + $0x140] sm:$0xff] %vm4276_vm3, %v5272_v22  ;;  %v9357_v23 = vpop.f32.mrb[106].mxu1 }
 0x478   : > { %v5275_v42 = vmax.f32 %v9357_v23, 0.0  ;;  %v5263_v63 = vpop.f32.mrb[107].mxu1 }
 0x479   : > { %v5274_v37 = vmax.f32 %v5263_v63, 0.0 }
 0x47a   : > { %8054 = vst.msk [vmem:[%s11531_s23 + $0x158] sm:$0xff] %vm4276_vm3, %v5275_v42 }
 0x47b   : > { %8053 = vst.msk [vmem:[%s11531_s23 + $0x150] sm:$0xff] %vm4276_vm3, %v5274_v37  ;;  %v9364_v29 = vpop.f32.mrb[108].mxu1 }
 0x47c   : > { %v5373_v24 = vmax.f32 %v9364_v29, 0.0  ;;  %v5353_v32 = vpop.f32.mrb[109].mxu1 }
 0x47d   : > { %v5372_v45 = vmax.f32 %v5353_v32, 0.0 }
 0x47e   : > { %8060 = vst.msk [vmem:[%s11531_s23 + $0x168] sm:$0xff] %vm4276_vm3, %v5373_v24 }
 0x47f   : > { %8059 = vst.msk [vmem:[%s11531_s23 + $0x160] sm:$0xff] %vm4276_vm3, %v5372_v45  ;;  %v9367_v25 = vpop.f32.mrb[110].mxu1 }
 0x480   : > { %v5375_v48 = vmax.f32 %v9367_v25, 0.0  ;;  %v5363_v30 = vpop.f32.mrb[111].mxu1 }
 0x481   : > { %v5374_v38 = vmax.f32 %v5363_v30, 0.0 }
 0x482   : > { %8062 = vst.msk [vmem:[%s11531_s23 + $0x178] sm:$0xff] %vm4276_vm3, %v5375_v48 }
 0x483   : > { %8061 = vst.msk [vmem:[%s11531_s23 + $0x170] sm:$0xff] %vm4276_vm3, %v5374_v38  ;;  %v9374_v9 = vpop.f32.mrb[112].mxu1 }
 0x484   : > { %v5473_v1 = vmax.f32 %v9374_v9, 0.0  ;;  %v5453_v7 = vpop.f32.mrb[113].mxu1 }
 0x485   : > { %v5472_v51 = vmax.f32 %v5453_v7, 0.0 }
 0x486   : > { %8068 = vst.msk [vmem:[%s11531_s23 + $0x188] sm:$0xff] %vm4276_vm3, %v5473_v1 }
 0x487   : > { %8067 = vst.msk [vmem:[%s11531_s23 + $0x180] sm:$0xff] %vm4276_vm3, %v5472_v51  ;;  %v9377_v27 = vpop.f32.mrb[114].mxu1 }
 0x488   : > { %v5475_v52 = vmax.f32 %v9377_v27, 0.0  ;;  %v5463_v41 = vpop.f32.mrb[115].mxu1 }
 0x489   : > { %v5474_v28 = vmax.f32 %v5463_v41, 0.0 }
 0x48a   : > { %8070 = vst.msk [vmem:[%s11531_s23 + $0x198] sm:$0xff] %vm4276_vm3, %v5475_v52 }
 0x48b   : > { %8069 = vst.msk [vmem:[%s11531_s23 + $0x190] sm:$0xff] %vm4276_vm3, %v5474_v28  ;;  %v9384_v6 = vpop.f32.mrb[116].mxu1 }
 0x48c   : > { %v5573_v54 = vmax.f32 %v9384_v6, 0.0  ;;  %v5553_v55 = vpop.f32.mrb[117].mxu1 }
 0x48d   : > { %v5572_v58 = vmax.f32 %v5553_v55, 0.0 }
 0x48e   : > { %8076 = vst.msk [vmem:[%s11531_s23 + $0x1a8] sm:$0xff] %vm4276_vm3, %v5573_v54 }
 0x48f   : > { %8075 = vst.msk [vmem:[%s11531_s23 + $0x1a0] sm:$0xff] %vm4276_vm3, %v5572_v58  ;;  %v9387_v43 = vpop.f32.mrb[118].mxu1 }
 0x490   : > { %v5575_v0 = vmax.f32 %v9387_v43, 0.0  ;;  %v5563_v12 = vpop.f32.mrb[119].mxu1 }
 0x491   : > { %v5574_v53 = vmax.f32 %v5563_v12, 0.0 }
 0x492   : > { %8078 = vst.msk [vmem:[%s11531_s23 + $0x1b8] sm:$0xff] %vm4276_vm3, %v5575_v0 }
 0x493   : > { %8077 = vst.msk [vmem:[%s11531_s23 + $0x1b0] sm:$0xff] %vm4276_vm3, %v5574_v53  ;;  %v9394_v47 = vpop.f32.mrb[120].mxu1 }
 0x494   : > { %v5673_v44 = vmax.f32 %v9394_v47, 0.0  ;;  %v5653_v21 = vpop.f32.mrb[121].mxu1 }
 0x495   : > { %v5672_v31 = vmax.f32 %v5653_v21, 0.0 }
 0x496   : > { %8084 = vst.msk [vmem:[%s11531_s23 + $0x1c8] sm:$0xff] %vm4276_vm3, %v5673_v44 }
 0x497   : > { %8083 = vst.msk [vmem:[%s11531_s23 + $0x1c0] sm:$0xff] %vm4276_vm3, %v5672_v31  ;;  %v9397_v60 = vpop.f32.mrb[122].mxu1 }
 0x498   : > { %v5675_v2 = vmax.f32 %v9397_v60, 0.0  ;;  %v5663_v34 = vpop.f32.mrb[123].mxu1 }
 0x499   : > { %v5674_v62 = vmax.f32 %v5663_v34, 0.0 }
 0x49a   : > { %8086 = vst.msk [vmem:[%s11531_s23 + $0x1d8] sm:$0xff] %vm4276_vm3, %v5675_v2 }
 0x49b   : > { %8085 = vst.msk [vmem:[%s11531_s23 + $0x1d0] sm:$0xff] %vm4276_vm3, %v5674_v62  ;;  %v9404_v16 = vpop.f32.mrb[124].mxu1 }
 0x49c   : > { %v5773_v5 = vmax.f32 %v9404_v16, 0.0  ;;  %v5753_v17 = vpop.f32.mrb[125].mxu1 }
 0x49d   : > { %v5772_v10 = vmax.f32 %v5753_v17, 0.0 }
 0x49e   : > { %8092 = vst.msk [vmem:[%s11531_s23 + $0x1e8] sm:$0xff] %vm4276_vm3, %v5773_v5 }
 0x49f   : > { %8091 = vst.msk [vmem:[%s11531_s23 + $0x1e0] sm:$0xff] %vm4276_vm3, %v5772_v10  ;;  %v9407_v11 = vpop.f32.mrb[126].mxu1 }
 0x4a0   : > { %v5775_v35 = vmax.f32 %v9407_v11, 0.0  ;;  %v5763_v39 = vpop.f32.mrb[127].mxu1 }
 0x4a1   : > { %v5774_v49 = vmax.f32 %v5763_v39, 0.0 }
 0x4a2   : > { %8094 = vst.msk [vmem:[%s11531_s23 + $0x1f8] sm:$0xff] %vm4276_vm3, %v5775_v35 }
 0x4a3   : > { %8093 = vst.msk [vmem:[%s11531_s23 + $0x1f0] sm:$0xff] %vm4276_vm3, %v5774_v49  ;;  %v9414_v56 = vpop.f32.mrb[128].mxu1 }
 0x4a4   : > { %v5873_v13 = vmax.f32 %v9414_v56, 0.0  ;;  %v5853_v61 = vpop.f32.mrb[129].mxu1 }
 0x4a5   : > { %v5872_v15 = vmax.f32 %v5853_v61, 0.0 }
 0x4a6   : > { %8100 = vst.msk [vmem:[%s11531_s23 + $0x208] sm:$0xff] %vm4276_vm3, %v5873_v13 }
 0x4a7   : > { %8099 = vst.msk [vmem:[%s11531_s23 + $0x200] sm:$0xff] %vm4276_vm3, %v5872_v15  ;;  %v9417_v26 = vpop.f32.mrb[130].mxu1 }
 0x4a8   : > { %v5875_v46 = vmax.f32 %v9417_v26, 0.0  ;;  %v5863_v57 = vpop.f32.mrb[131].mxu1 }
 0x4a9   : > { %v5874_v50 = vmax.f32 %v5863_v57, 0.0 }
 0x4aa   : > { %8102 = vst.msk [vmem:[%s11531_s23 + $0x218] sm:$0xff] %vm4276_vm3, %v5875_v46 }
 0x4ab   : > { %8101 = vst.msk [vmem:[%s11531_s23 + $0x210] sm:$0xff] %vm4276_vm3, %v5874_v50  ;;  %v9424_v3 = vpop.f32.mrb[132].mxu1 }
 0x4ac   : > { %v5973_v20 = vmax.f32 %v9424_v3, 0.0  ;;  %v5953_v40 = vpop.f32.mrb[133].mxu1 }
 0x4ad   : > { %v5972_v8 = vmax.f32 %v5953_v40, 0.0 }
 0x4ae   : > { %8108 = vst.msk [vmem:[%s11531_s23 + $0x228] sm:$0xff] %vm4276_vm3, %v5973_v20 }
 0x4af   : > { %8107 = vst.msk [vmem:[%s11531_s23 + $0x220] sm:$0xff] %vm4276_vm3, %v5972_v8  ;;  %v9427_v59 = vpop.f32.mrb[134].mxu1 }
 0x4b0   : > { %v5975_v33 = vmax.f32 %v9427_v59, 0.0  ;;  %v5963_v36 = vpop.f32.mrb[135].mxu1 }
 0x4b1   : > { %v5974_v14 = vmax.f32 %v5963_v36, 0.0 }
 0x4b2   : > { %8110 = vst.msk [vmem:[%s11531_s23 + $0x238] sm:$0xff] %vm4276_vm3, %v5975_v33 }
 0x4b3   : > { %8109 = vst.msk [vmem:[%s11531_s23 + $0x230] sm:$0xff] %vm4276_vm3, %v5974_v14  ;;  %v9434_v4 = vpop.f32.mrb[136].mxu1 }
 0x4b4   : > { %v6073_v18 = vmax.f32 %v9434_v4, 0.0  ;;  %v6053_v19 = vpop.f32.mrb[137].mxu1 }
 0x4b5   : > { %v6072_v22 = vmax.f32 %v6053_v19, 0.0 }
 0x4b6   : > { %8116 = vst.msk [vmem:[%s11531_s23 + $0x248] sm:$0xff] %vm4276_vm3, %v6073_v18 }
 0x4b7   : > { %8115 = vst.msk [vmem:[%s11531_s23 + $0x240] sm:$0xff] %vm4276_vm3, %v6072_v22  ;;  %v9437_v23 = vpop.f32.mrb[138].mxu1 }
 0x4b8   : > { %v6075_v42 = vmax.f32 %v9437_v23, 0.0  ;;  %v6063_v63 = vpop.f32.mrb[139].mxu1 }
 0x4b9   : > { %v6074_v37 = vmax.f32 %v6063_v63, 0.0 }
 0x4ba   : > { %8118 = vst.msk [vmem:[%s11531_s23 + $0x258] sm:$0xff] %vm4276_vm3, %v6075_v42 }
 0x4bb   : > { %8117 = vst.msk [vmem:[%s11531_s23 + $0x250] sm:$0xff] %vm4276_vm3, %v6074_v37  ;;  %v9444_v29 = vpop.f32.mrb[140].mxu1 }
 0x4bc   : > { %v6173_v24 = vmax.f32 %v9444_v29, 0.0  ;;  %v6153_v32 = vpop.f32.mrb[141].mxu1 }
 0x4bd   : > { %v6172_v45 = vmax.f32 %v6153_v32, 0.0 }
 0x4be   : > { %8124 = vst.msk [vmem:[%s11531_s23 + $0x268] sm:$0xff] %vm4276_vm3, %v6173_v24 }
 0x4bf   : > { %8123 = vst.msk [vmem:[%s11531_s23 + $0x260] sm:$0xff] %vm4276_vm3, %v6172_v45  ;;  %v9447_v25 = vpop.f32.mrb[142].mxu1 }
 0x4c0   : > { %v6175_v48 = vmax.f32 %v9447_v25, 0.0  ;;  %v6163_v30 = vpop.f32.mrb[143].mxu1 }
 0x4c1   : > { %v6174_v38 = vmax.f32 %v6163_v30, 0.0 }
 0x4c2   : > { %8126 = vst.msk [vmem:[%s11531_s23 + $0x278] sm:$0xff] %vm4276_vm3, %v6175_v48 }
 0x4c3   : > { %8125 = vst.msk [vmem:[%s11531_s23 + $0x270] sm:$0xff] %vm4276_vm3, %v6174_v38  ;;  %v9454_v9 = vpop.f32.mrb[144].mxu1 }
 0x4c4   : > { %v6273_v1 = vmax.f32 %v9454_v9, 0.0  ;;  %v6253_v7 = vpop.f32.mrb[145].mxu1 }
 0x4c5   : > { %v6272_v51 = vmax.f32 %v6253_v7, 0.0 }
 0x4c6   : > { %8132 = vst.msk [vmem:[%s11531_s23 + $0x288] sm:$0xff] %vm4276_vm3, %v6273_v1 }
 0x4c7   : > { %8131 = vst.msk [vmem:[%s11531_s23 + $0x280] sm:$0xff] %vm4276_vm3, %v6272_v51  ;;  %v9457_v27 = vpop.f32.mrb[146].mxu1 }
 0x4c8   : > { %v6275_v52 = vmax.f32 %v9457_v27, 0.0  ;;  %v6263_v41 = vpop.f32.mrb[147].mxu1 }
 0x4c9   : > { %v6274_v28 = vmax.f32 %v6263_v41, 0.0 }
 0x4ca   : > { %8134 = vst.msk [vmem:[%s11531_s23 + $0x298] sm:$0xff] %vm4276_vm3, %v6275_v52 }
 0x4cb   : > { %8133 = vst.msk [vmem:[%s11531_s23 + $0x290] sm:$0xff] %vm4276_vm3, %v6274_v28  ;;  %v9464_v6 = vpop.f32.mrb[148].mxu1 }
 0x4cc   : > { %v6373_v54 = vmax.f32 %v9464_v6, 0.0  ;;  %v6353_v55 = vpop.f32.mrb[149].mxu1 }
 0x4cd   : > { %v6372_v58 = vmax.f32 %v6353_v55, 0.0 }
 0x4ce   : > { %8140 = vst.msk [vmem:[%s11531_s23 + $0x2a8] sm:$0xff] %vm4276_vm3, %v6373_v54 }
 0x4cf   : > { %8139 = vst.msk [vmem:[%s11531_s23 + $0x2a0] sm:$0xff] %vm4276_vm3, %v6372_v58  ;;  %v9467_v43 = vpop.f32.mrb[150].mxu1 }
 0x4d0   : > { %v6375_v0 = vmax.f32 %v9467_v43, 0.0  ;;  %v6363_v12 = vpop.f32.mrb[151].mxu1 }
 0x4d1   : > { %v6374_v53 = vmax.f32 %v6363_v12, 0.0 }
 0x4d2   : > { %8142 = vst.msk [vmem:[%s11531_s23 + $0x2b8] sm:$0xff] %vm4276_vm3, %v6375_v0 }
 0x4d3   : > { %8141 = vst.msk [vmem:[%s11531_s23 + $0x2b0] sm:$0xff] %vm4276_vm3, %v6374_v53  ;;  %v9474_v47 = vpop.f32.mrb[152].mxu1 }
 0x4d4   : > { %v6473_v44 = vmax.f32 %v9474_v47, 0.0  ;;  %v6453_v21 = vpop.f32.mrb[153].mxu1 }
 0x4d5   : > { %v6472_v31 = vmax.f32 %v6453_v21, 0.0 }
 0x4d6   : > { %8148 = vst.msk [vmem:[%s11531_s23 + $0x2c8] sm:$0xff] %vm4276_vm3, %v6473_v44 }
 0x4d7   : > { %8147 = vst.msk [vmem:[%s11531_s23 + $0x2c0] sm:$0xff] %vm4276_vm3, %v6472_v31  ;;  %v9477_v60 = vpop.f32.mrb[154].mxu1 }
 0x4d8   : > { %v6475_v2 = vmax.f32 %v9477_v60, 0.0  ;;  %v6463_v34 = vpop.f32.mrb[155].mxu1 }
 0x4d9   : > { %v6474_v62 = vmax.f32 %v6463_v34, 0.0 }
 0x4da   : > { %8150 = vst.msk [vmem:[%s11531_s23 + $0x2d8] sm:$0xff] %vm4276_vm3, %v6475_v2 }
 0x4db   : > { %8149 = vst.msk [vmem:[%s11531_s23 + $0x2d0] sm:$0xff] %vm4276_vm3, %v6474_v62  ;;  %v9484_v16 = vpop.f32.mrb[156].mxu1 }
 0x4dc   : > { %v6573_v5 = vmax.f32 %v9484_v16, 0.0  ;;  %v6553_v17 = vpop.f32.mrb[157].mxu1 }
 0x4dd   : > { %v6572_v10 = vmax.f32 %v6553_v17, 0.0 }
 0x4de   : > { %8156 = vst.msk [vmem:[%s11531_s23 + $0x2e8] sm:$0xff] %vm4276_vm3, %v6573_v5 }
 0x4df   : > { %8155 = vst.msk [vmem:[%s11531_s23 + $0x2e0] sm:$0xff] %vm4276_vm3, %v6572_v10  ;;  %v9487_v11 = vpop.f32.mrb[158].mxu1 }
 0x4e0   : > { %v6575_v35 = vmax.f32 %v9487_v11, 0.0  ;;  %v6563_v39 = vpop.f32.mrb[159].mxu1 }
 0x4e1   : > { %v6574_v49 = vmax.f32 %v6563_v39, 0.0 }
 0x4e2   : > { %8158 = vst.msk [vmem:[%s11531_s23 + $0x2f8] sm:$0xff] %vm4276_vm3, %v6575_v35 }
 0x4e3   : > { %8157 = vst.msk [vmem:[%s11531_s23 + $0x2f0] sm:$0xff] %vm4276_vm3, %v6574_v49  ;;  %v9494_v56 = vpop.f32.mrb[160].mxu1 }
 0x4e4   : > { %v6673_v13 = vmax.f32 %v9494_v56, 0.0  ;;  %v6653_v61 = vpop.f32.mrb[161].mxu1 }
 0x4e5   : > { %v6672_v15 = vmax.f32 %v6653_v61, 0.0 }
 0x4e6   : > { %8164 = vst.msk [vmem:[%s11531_s23 + $0x308] sm:$0xff] %vm4276_vm3, %v6673_v13 }
 0x4e7   : > { %8163 = vst.msk [vmem:[%s11531_s23 + $0x300] sm:$0xff] %vm4276_vm3, %v6672_v15  ;;  %v9497_v26 = vpop.f32.mrb[162].mxu1 }
 0x4e8   : > { %v6675_v46 = vmax.f32 %v9497_v26, 0.0  ;;  %v6663_v57 = vpop.f32.mrb[163].mxu1 }
 0x4e9   : > { %v6674_v50 = vmax.f32 %v6663_v57, 0.0 }
 0x4ea   : > { %8166 = vst.msk [vmem:[%s11531_s23 + $0x318] sm:$0xff] %vm4276_vm3, %v6675_v46 }
 0x4eb   : > { %8165 = vst.msk [vmem:[%s11531_s23 + $0x310] sm:$0xff] %vm4276_vm3, %v6674_v50  ;;  %v9504_v3 = vpop.f32.mrb[164].mxu1 }
 0x4ec   : > { %v6773_v20 = vmax.f32 %v9504_v3, 0.0  ;;  %v6753_v40 = vpop.f32.mrb[165].mxu1 }
 0x4ed   : > { %v6772_v8 = vmax.f32 %v6753_v40, 0.0 }
 0x4ee   : > { %8172 = vst.msk [vmem:[%s11531_s23 + $0x328] sm:$0xff] %vm4276_vm3, %v6773_v20 }
 0x4ef   : > { %8171 = vst.msk [vmem:[%s11531_s23 + $0x320] sm:$0xff] %vm4276_vm3, %v6772_v8  ;;  %v9507_v59 = vpop.f32.mrb[166].mxu1 }
 0x4f0   : > { %v6775_v33 = vmax.f32 %v9507_v59, 0.0  ;;  %v6763_v36 = vpop.f32.mrb[167].mxu1 }
 0x4f1   : > { %v6774_v14 = vmax.f32 %v6763_v36, 0.0 }
 0x4f2   : > { %8174 = vst.msk [vmem:[%s11531_s23 + $0x338] sm:$0xff] %vm4276_vm3, %v6775_v33 }
 0x4f3   : > { %8173 = vst.msk [vmem:[%s11531_s23 + $0x330] sm:$0xff] %vm4276_vm3, %v6774_v14  ;;  %v9514_v4 = vpop.f32.mrb[168].mxu1 }
 0x4f4   : > { %v6873_v18 = vmax.f32 %v9514_v4, 0.0  ;;  %v6853_v19 = vpop.f32.mrb[169].mxu1 }
 0x4f5   : > { %v6872_v22 = vmax.f32 %v6853_v19, 0.0 }
 0x4f6   : > { %8180 = vst.msk [vmem:[%s11531_s23 + $0x348] sm:$0xff] %vm4276_vm3, %v6873_v18 }
 0x4f7   : > { %8179 = vst.msk [vmem:[%s11531_s23 + $0x340] sm:$0xff] %vm4276_vm3, %v6872_v22  ;;  %v9517_v23 = vpop.f32.mrb[170].mxu1 }
 0x4f8   : > { %v6875_v42 = vmax.f32 %v9517_v23, 0.0  ;;  %v6863_v63 = vpop.f32.mrb[171].mxu1 }
 0x4f9   : > { %v6874_v37 = vmax.f32 %v6863_v63, 0.0 }
 0x4fa   : > { %8182 = vst.msk [vmem:[%s11531_s23 + $0x358] sm:$0xff] %vm4276_vm3, %v6875_v42 }
 0x4fb   : > { %8181 = vst.msk [vmem:[%s11531_s23 + $0x350] sm:$0xff] %vm4276_vm3, %v6874_v37  ;;  %v9524_v29 = vpop.f32.mrb[172].mxu1 }
 0x4fc   : > { %v6973_v24 = vmax.f32 %v9524_v29, 0.0  ;;  %v6953_v32 = vpop.f32.mrb[173].mxu1 }
 0x4fd   : > { %v6972_v45 = vmax.f32 %v6953_v32, 0.0 }
 0x4fe   : > { %8188 = vst.msk [vmem:[%s11531_s23 + $0x368] sm:$0xff] %vm4276_vm3, %v6973_v24 }
 0x4ff   : > { %8187 = vst.msk [vmem:[%s11531_s23 + $0x360] sm:$0xff] %vm4276_vm3, %v6972_v45  ;;  %v9527_v25 = vpop.f32.mrb[174].mxu1 }
 0x500   : > { %v6975_v48 = vmax.f32 %v9527_v25, 0.0  ;;  %v6963_v30 = vpop.f32.mrb[175].mxu1 }
 0x501   : > { %v6974_v38 = vmax.f32 %v6963_v30, 0.0 }
 0x502   : > { %8190 = vst.msk [vmem:[%s11531_s23 + $0x378] sm:$0xff] %vm4276_vm3, %v6975_v48 }
 0x503   : > { %8189 = vst.msk [vmem:[%s11531_s23 + $0x370] sm:$0xff] %vm4276_vm3, %v6974_v38  ;;  %v9534_v9 = vpop.f32.mrb[176].mxu1 }
 0x504   : > { %v7073_v1 = vmax.f32 %v9534_v9, 0.0  ;;  %v7053_v7 = vpop.f32.mrb[177].mxu1 }
 0x505   : > { %v7072_v51 = vmax.f32 %v7053_v7, 0.0 }
 0x506   : > { %8196 = vst.msk [vmem:[%s11531_s23 + $0x388] sm:$0xff] %vm4276_vm3, %v7073_v1 }
 0x507   : > { %8195 = vst.msk [vmem:[%s11531_s23 + $0x380] sm:$0xff] %vm4276_vm3, %v7072_v51  ;;  %v9537_v27 = vpop.f32.mrb[178].mxu1 }
 0x508   : > { %v7075_v52 = vmax.f32 %v9537_v27, 0.0  ;;  %v7063_v41 = vpop.f32.mrb[179].mxu1 }
 0x509   : > { %v7074_v28 = vmax.f32 %v7063_v41, 0.0 }
 0x50a   : > { %8198 = vst.msk [vmem:[%s11531_s23 + $0x398] sm:$0xff] %vm4276_vm3, %v7075_v52 }
 0x50b   : > { %8197 = vst.msk [vmem:[%s11531_s23 + $0x390] sm:$0xff] %vm4276_vm3, %v7074_v28  ;;  %v9544_v6 = vpop.f32.mrb[180].mxu1 }
 0x50c   : > { %v7173_v54 = vmax.f32 %v9544_v6, 0.0  ;;  %v7153_v55 = vpop.f32.mrb[181].mxu1 }
 0x50d   : > { %v7172_v58 = vmax.f32 %v7153_v55, 0.0 }
 0x50e   : > { %8204 = vst.msk [vmem:[%s11531_s23 + $0x3a8] sm:$0xff] %vm4276_vm3, %v7173_v54 }
 0x50f   : > { %8203 = vst.msk [vmem:[%s11531_s23 + $0x3a0] sm:$0xff] %vm4276_vm3, %v7172_v58  ;;  %v9547_v43 = vpop.f32.mrb[182].mxu1 }
 0x510   : > { %v7175_v0 = vmax.f32 %v9547_v43, 0.0  ;;  %v7163_v12 = vpop.f32.mrb[183].mxu1 }
 0x511   : > { %v7174_v53 = vmax.f32 %v7163_v12, 0.0 }
 0x512   : > { %8206 = vst.msk [vmem:[%s11531_s23 + $0x3b8] sm:$0xff] %vm4276_vm3, %v7175_v0 }
 0x513   : > { %8205 = vst.msk [vmem:[%s11531_s23 + $0x3b0] sm:$0xff] %vm4276_vm3, %v7174_v53  ;;  %v9554_v47 = vpop.f32.mrb[184].mxu1 }
 0x514   : > { %v7273_v44 = vmax.f32 %v9554_v47, 0.0  ;;  %v7253_v21 = vpop.f32.mrb[185].mxu1 }
 0x515   : > { %v7272_v31 = vmax.f32 %v7253_v21, 0.0 }
 0x516   : > { %8212 = vst.msk [vmem:[%s11531_s23 + $0x3c8] sm:$0xff] %vm4276_vm3, %v7273_v44 }
 0x517   : > { %8211 = vst.msk [vmem:[%s11531_s23 + $0x3c0] sm:$0xff] %vm4276_vm3, %v7272_v31  ;;  %v9557_v60 = vpop.f32.mrb[186].mxu1 }
 0x518   : > { %v7275_v2 = vmax.f32 %v9557_v60, 0.0  ;;  %v7263_v34 = vpop.f32.mrb[187].mxu1 }
 0x519   : > { %v7274_v62 = vmax.f32 %v7263_v34, 0.0 }
 0x51a   : > { %8214 = vst.msk [vmem:[%s11531_s23 + $0x3d8] sm:$0xff] %vm4276_vm3, %v7275_v2 }
 0x51b   : > { %8213 = vst.msk [vmem:[%s11531_s23 + $0x3d0] sm:$0xff] %vm4276_vm3, %v7274_v62  ;;  %v9564_v16 = vpop.f32.mrb[188].mxu1 }
 0x51c   : > { %v7367_v5 = vmax.f32 %v9564_v16, 0.0  ;;  %v7347_v17 = vpop.f32.mrb[189].mxu1 }
 0x51d   : > { %v7366_v10 = vmax.f32 %v7347_v17, 0.0 }
 0x51e   : > { %8220 = vst.msk [vmem:[%s11531_s23 + $0x3e8] sm:$0xff] %vm4276_vm3, %v7367_v5 }
 0x51f   : > { %8219 = vst.msk [vmem:[%s11531_s23 + $0x3e0] sm:$0xff] %vm4276_vm3, %v7366_v10  ;;  %v9567_v11 = vpop.f32.mrb[190].mxu1 }
 0x520   : > { %v7369_v35 = vmax.f32 %v9567_v11, 0.0  ;;  %v7357_v39 = vpop.f32.mrb[191].mxu1 }
 0x521   : > { %v7368_v49 = vmax.f32 %v7357_v39, 0.0 }
 0x522   : > { %8222 = vst.msk [vmem:[%s11531_s23 + $0x3f8] sm:$0xff] %vm4276_vm3, %v7369_v35 }
 0x523   : > { %8221 = vst.msk [vmem:[%s11531_s23 + $0x3f0] sm:$0xff] %vm4276_vm3, %v7368_v49 }
 0x524 PF: > { %s17_s24 = sadd.s32 1, %s9969_s24  }
 0x525   : > { %p14_p4 = scmp.ge.s32.totalorder %s17_s24, 4  }
 0x527   :  { %16 = sbr.rel (!%p14_p4) target bundleno = 1 (0x1), region = 119 }

</bundles_post_ra>
